<compile_context>
chip_gen: v7x
topology: tpu7x:2x2x1
jax: 0.10.0
libtpu: 0.0.40
codegen_flags: <defaults>
</compile_context>

<pallas_src>
import functools

import jax
import jax.numpy as jnp
import numpy as np
from jax import lax
from jax.experimental import pallas as pl
from jax.experimental.pallas import tpu as pltpu

EPS = 1e-5
LANES = 128


def _row_tile(n, target):
    """Largest legal row tile: `target` when it divides n, else the full extent.

    At real shapes pick the biggest tile that fits the VMEM budget (re-derive for
    v7x's 64 MiB); the small defaults here just exercise multi-step grids in the test.
    """
    return target if (n % target == 0) else n


def _silu(v):
    return v / (1.0 + jnp.exp(-v))


def _softplus(v):
    return jnp.maximum(v, 0.0) + jnp.log(1.0 + jnp.exp(-jnp.abs(v)))


def _softmax_last(s):
    s = s - jnp.max(s, axis=-1, keepdims=True)
    e = jnp.exp(s)
    return e / jnp.sum(e, axis=-1, keepdims=True)


# ---------------------------------------------------------------------------
# generic row-tiled linear: out = x @ W + b      (bf16 MXU operands, f32 accum)
# ---------------------------------------------------------------------------
def _linear_kernel(x_ref, w_ref, b_ref, o_ref):
    x = x_ref[...].astype(jnp.bfloat16)
    acc = jnp.dot(x, w_ref[...], preferred_element_type=jnp.float32)
    o_ref[...] = acc + b_ref[...]


def linear(x2d, w, b, row_tile=32):
    n, k = x2d.shape
    m = w.shape[1]
    tr = _row_tile(n, row_tile)
    return pl.pallas_call(
        _linear_kernel,
        out_shape=jax.ShapeDtypeStruct((n, m), jnp.float32),
        grid=(n // tr,),
        in_specs=[
            pl.BlockSpec((tr, k), lambda i: (i, 0)),
            pl.BlockSpec((k, m), lambda i: (0, 0)),
            pl.BlockSpec((1, m), lambda i: (0, 0)),
        ],
        out_specs=pl.BlockSpec((tr, m), lambda i: (i, 0)),
        compiler_params=pltpu.CompilerParams(dimension_semantics=("parallel",)),
    )(x2d, w, b)


# ---------------------------------------------------------------------------
# fused multi-head self-attention (per-batch grid step)
# ---------------------------------------------------------------------------
def _mha_kernel(x_ref, wq_ref, bq_ref, wk_ref, bk_ref, wv_ref, bv_ref, wo_ref, o_ref,
                *, n_heads):
    x = x_ref[0]                                   # (L, D) f32
    _, d_model = x.shape
    dk = d_model // n_heads
    xb = x.astype(jnp.bfloat16)
    q = jnp.dot(xb, wq_ref[...], preferred_element_type=jnp.float32) + bq_ref[...]
    k = jnp.dot(xb, wk_ref[...], preferred_element_type=jnp.float32) + bk_ref[...]
    v = jnp.dot(xb, wv_ref[...], preferred_element_type=jnp.float32) + bv_ref[...]
    ctx = []
    for h in range(n_heads):                       # static unroll over heads
        sl = slice(h * dk, (h + 1) * dk)
        qh = q[:, sl].astype(jnp.bfloat16)
        kh = k[:, sl].astype(jnp.bfloat16)
        vh = v[:, sl].astype(jnp.bfloat16)
        # softmax scale d_k**-0.5 is folded into W_Q / b_Q in the wrapper (exact).
        s = jnp.einsum('qd,kd->qk', qh, kh, preferred_element_type=jnp.float32)
        attw = _softmax_last(s)
        ctx.append(jnp.einsum('qk,kd->qd', attw.astype(jnp.bfloat16), vh,
                              preferred_element_type=jnp.float32))
    ctx = jnp.concatenate(ctx, axis=-1).astype(jnp.bfloat16)
    # to_out bias omitted: a per-channel constant is exactly cancelled by the
    # training-mode BatchNorm that follows the residual add.
    o_ref[0] = jnp.dot(ctx, wo_ref[...], preferred_element_type=jnp.float32)


def mha(x, p, *, n_heads):
    B, L, D = x.shape
    wspec = pl.BlockSpec((D, D), lambda b: (0, 0))
    bspec = pl.BlockSpec((1, D), lambda b: (0, 0))
    return pl.pallas_call(
        functools.partial(_mha_kernel, n_heads=n_heads),
        out_shape=jax.ShapeDtypeStruct((B, L, D), jnp.float32),
        grid=(B,),
        in_specs=[pl.BlockSpec((1, L, D), lambda b: (b, 0, 0)),
                  wspec, bspec, wspec, bspec, wspec, bspec, wspec],
        out_specs=pl.BlockSpec((1, L, D), lambda b: (b, 0, 0)),
        compiler_params=pltpu.CompilerParams(dimension_semantics=("parallel",)),
    )(x, p['wq'], p['bq'], p['wk'], p['bk'], p['wv'], p['bv'], p['wo'])


# ---------------------------------------------------------------------------
# position-wise FFN: Linear -> GELU -> Linear (row-tiled, bf16 MXU, f32 accum)
# ---------------------------------------------------------------------------
def _ffn_kernel(x_ref, w1_ref, b1_ref, w2_ref, o_ref):
    h = jnp.dot(x_ref[...].astype(jnp.bfloat16), w1_ref[...],
                preferred_element_type=jnp.float32) + b1_ref[...]
    # TODO(synk): PyTorch nn.GELU() is the exact erf form; tanh approximation used here.
    h = jax.nn.gelu(h, approximate=True)
    # second-linear bias omitted: cancelled by the following batch-stat BatchNorm.
    o_ref[...] = jnp.dot(h.astype(jnp.bfloat16), w2_ref[...],
                         preferred_element_type=jnp.float32)


def ffn(x2d, w1, b1, w2, row_tile=32):
    n, d = x2d.shape
    f = w1.shape[1]
    tr = _row_tile(n, row_tile)
    return pl.pallas_call(
        _ffn_kernel,
        out_shape=jax.ShapeDtypeStruct((n, d), jnp.float32),
        grid=(n // tr,),
        in_specs=[
            pl.BlockSpec((tr, d), lambda i: (i, 0)),
            pl.BlockSpec((d, f), lambda i: (0, 0)),
            pl.BlockSpec((1, f), lambda i: (0, 0)),
            pl.BlockSpec((f, d), lambda i: (0, 0)),
        ],
        out_specs=pl.BlockSpec((tr, d), lambda i: (i, 0)),
        compiler_params=pltpu.CompilerParams(dimension_semantics=("parallel",)),
    )(x2d, w1, b1, w2)


# ---------------------------------------------------------------------------
# residual add + BatchNorm1d (training-mode batch stats over (B, L)), two-pass,
# operating on a lane-dense (rows, 128) view of the (B, L, D) tensors.
# ---------------------------------------------------------------------------
def _add_stats_kernel(x_ref, y_ref, ret_ref, sum_ref, sq_ref):
    @pl.when(pl.program_id(0) == 0)
    def _init():
        sum_ref[...] = jnp.zeros_like(sum_ref)
        sq_ref[...] = jnp.zeros_like(sq_ref)

    r = x_ref[...] + y_ref[...]
    ret_ref[...] = r
    sum_ref[...] = sum_ref[...] + jnp.sum(r, axis=0, keepdims=True)
    sq_ref[...] = sq_ref[...] + jnp.sum(r * r, axis=0, keepdims=True)


def _bn_apply_kernel(ret_ref, a_ref, b_ref, o_ref):
    o_ref[...] = ret_ref[...] * a_ref[...] + b_ref[...]


def residual_batchnorm(x, y, gamma, beta, row_tile=8):
    """out = BatchNorm1d(x + y) with training-mode batch statistics per channel."""
    B, L, D = x.shape
    n = B * L
    assert LANES % D == 0, "lane-dense BN path assumes d_model divides 128"
    reps = LANES // D
    rows = (n * D) // LANES
    xs = x.reshape(rows, LANES)
    ys = y.reshape(rows, LANES)
    tr = _row_tile(rows, row_tile)

    ret, lane_sum, lane_sq = pl.pallas_call(
        _add_stats_kernel,
        out_shape=(
            jax.ShapeDtypeStruct((rows, LANES), jnp.float32),
            jax.ShapeDtypeStruct((1, LANES), jnp.float32),
            jax.ShapeDtypeStruct((1, LANES), jnp.float32),
        ),
        grid=(rows // tr,),
        in_specs=[
            pl.BlockSpec((tr, LANES), lambda i: (i, 0)),
            pl.BlockSpec((tr, LANES), lambda i: (i, 0)),
        ],
        out_specs=(
            pl.BlockSpec((tr, LANES), lambda i: (i, 0)),
            pl.BlockSpec((1, LANES), lambda i: (0, 0)),   # resident accumulators
            pl.BlockSpec((1, LANES), lambda i: (0, 0)),
        ),
        compiler_params=pltpu.CompilerParams(dimension_semantics=("arbitrary",)),
    )(xs, ys)

    # finalize per-channel statistics (tiny (1,128) -> (D,) fold, plain XLA glue)
    ch_sum = lane_sum.reshape(reps, D).sum(axis=0)
    ch_sq = lane_sq.reshape(reps, D).sum(axis=0)
    mean = ch_sum / n
    var = ch_sq / n - mean * mean            # single-pass E[r^2] - mean^2, f32 accumulators
    inv = lax.rsqrt(var + EPS)
    scale = jnp.tile(inv * gamma, reps).reshape(1, LANES)
    shift = jnp.tile(beta - mean * inv * gamma, reps).reshape(1, LANES)

    out = pl.pallas_call(
        _bn_apply_kernel,
        out_shape=jax.ShapeDtypeStruct((rows, LANES), jnp.float32),
        grid=(rows // tr,),
        in_specs=[
            pl.BlockSpec((tr, LANES), lambda i: (i, 0)),
            pl.BlockSpec((1, LANES), lambda i: (0, 0)),
            pl.BlockSpec((1, LANES), lambda i: (0, 0)),
        ],
        out_specs=pl.BlockSpec((tr, LANES), lambda i: (i, 0)),
        compiler_params=pltpu.CompilerParams(dimension_semantics=("parallel",)),
    )(ret, scale, shift)
    return out.reshape(B, L, D)


# ---------------------------------------------------------------------------
# Mamba block (standard mamba_ssm forward; the Mamba class is an external dep)
# ---------------------------------------------------------------------------
def _dwconv_silu_kernel(x_ref, w_ref, b_ref, o_ref):
    x = x_ref[0]                                   # (L, Din) f32
    lseq, din = x.shape
    kw = w_ref.shape[0]
    acc = x * w_ref[kw - 1:kw, :]                  # tap aligned with t
    for d in range(1, kw):                         # causal halo built in-register, no HBM pad
        shifted = jnp.concatenate(
            [jnp.zeros((d, din), jnp.float32), x[:lseq - d, :]], axis=0)
        acc = acc + shifted * w_ref[kw - 1 - d:kw - d, :]
    acc = acc + b_ref[...]
    o_ref[0] = _silu(acc)


def _ssm_scan_kernel(u_ref, dt_ref, b_ref, c_ref, z_ref, at_ref, d_ref, o_ref,
                     da_s, dbu_s, h_s):
    u = u_ref[0]                                   # (L, Din) f32
    dt = _softplus(dt_ref[0])                      # dt_proj bias already added upstream
    Bm = b_ref[0]                                  # (L, S)
    Cm = c_ref[0]
    At = at_ref[...]                               # (S, Din) == A.T, A = -exp(A_log)
    S, Din = At.shape
    lseq = u.shape[0]
    # vectorised per-step coefficients (f32 VPU/EUP work), kept in VMEM scratch
    da_s[...] = jnp.exp(dt[:, None, :] * At[None, :, :])       # (L, S, Din)
    dbu_s[...] = (dt * u)[:, None, :] * Bm[:, :, None]

    def step(t, h):                                # sequential selective scan over time
        h = da_s[t] * h + dbu_s[t]
        h_s[t] = h
        return h

    lax.fori_loop(0, lseq, step, jnp.zeros((S, Din), jnp.float32))
    y = jnp.sum(h_s[...] * Cm[:, :, None], axis=1)              # (L, Din)
    y = y + u * d_ref[...]
    o_ref[0] = y * _silu(z_ref[0])                              # gated by SiLU(z)


def mamba_forward(x, p):
    B, L, D = x.shape
    kw, Din = p['conv_w'].shape
    S = p['A_T'].shape[0]
    Rdt = p['dt_w'].shape[0]

    x2 = x.reshape(B * L, D)
    xz = linear(x2, p['in_w'], p['in_b0'])                      # (N, 2*Din), bias-free
    xm = xz[:, :Din].reshape(B, L, Din)
    zm = xz[:, Din:].reshape(B, L, Din)

    u = pl.pallas_call(
        _dwconv_silu_kernel,
        out_shape=jax.ShapeDtypeStruct((B, L, Din), jnp.float32),
        grid=(B,),
        in_specs=[
            pl.BlockSpec((1, L, Din), lambda b: (b, 0, 0)),
            pl.BlockSpec((kw, Din), lambda b: (0, 0)),
            pl.BlockSpec((1, Din), lambda b: (0, 0)),
        ],
        out_specs=pl.BlockSpec((1, L, Din), lambda b: (b, 0, 0)),
        compiler_params=pltpu.CompilerParams(dimension_semantics=("parallel",)),
    )(xm, p['conv_w'], p['conv_b'])

    xdbl = linear(u.reshape(B * L, Din), p['xproj_w'], p['xproj_b0'])   # (N, Rdt+2S)
    dt = linear(xdbl[:, :Rdt], p['dt_w'], p['dt_b']).reshape(B, L, Din)
    Bc = xdbl[:, Rdt:Rdt + S].reshape(B, L, S)
    Cc = xdbl[:, Rdt + S:].reshape(B, L, S)

    y = pl.pallas_call(
        _ssm_scan_kernel,
        out_shape=jax.ShapeDtypeStruct((B, L, Din), jnp.float32),
        grid=(B,),
        in_specs=[
            pl.BlockSpec((1, L, Din), lambda b: (b, 0, 0)),   # u (post conv+SiLU)
            pl.BlockSpec((1, L, Din), lambda b: (b, 0, 0)),   # dt (pre-softplus)
            pl.BlockSpec((1, L, S), lambda b: (b, 0, 0)),     # B
            pl.BlockSpec((1, L, S), lambda b: (b, 0, 0)),     # C
            pl.BlockSpec((1, L, Din), lambda b: (b, 0, 0)),   # z gate
            pl.BlockSpec((S, Din), lambda b: (0, 0)),         # A^T
            pl.BlockSpec((1, Din), lambda b: (0, 0)),         # D
        ],
        out_specs=pl.BlockSpec((1, L, Din), lambda b: (b, 0, 0)),
        scratch_shapes=[pltpu.VMEM((L, S, Din), jnp.float32)] * 3,
        compiler_params=pltpu.CompilerParams(dimension_semantics=("parallel",)),
    )(u, dt, Bc, Cc, zm, p['A_T'], p['D2'])

    return linear(y.reshape(B * L, Din), p['out_w'], p['out_b0']).reshape(B, L, D)


# ---------------------------------------------------------------------------
# Encoder_AM forward
# ---------------------------------------------------------------------------
def encoder_am_forward(x, p, *, n_heads):
    B, L, D = x.shape
    # --- TSTEncoderLayer: self-attention -> add & BN -> FFN -> add & BN (pre_norm=False) ---
    a = mha(x, p, n_heads=n_heads)
    x = residual_batchnorm(x, a, p['bn1_g'], p['bn1_b'])
    f = ffn(x.reshape(B * L, D), p['ff_w1'], p['ff_b1'], p['ff_w2']).reshape(B, L, D)
    x = residual_batchnorm(x, f, p['bn2_g'], p['bn2_b'])
    # --- Encoder_mamba: Mamba -> add & BN ---
    m = mamba_forward(x, p)
    x = residual_batchnorm(x, m, p['bn3_g'], p['bn3_b'])
    return x


# ---------------------------------------------------------------------------
# parameters + pure-JAX reference (mirrors the bf16-MXU / f32-accumulate policy)
# ---------------------------------------------------------------------------
def make_params(key, d_model, n_heads, d_ff, d_state=4, d_conv=4, expand=2):
    D = d_model
    Din = expand * D
    S = d_state
    Rdt = -(-D // 16)                              # mamba default dt_rank = ceil(d_model/16)
    dk = D // n_heads
    scale = float(dk) ** -0.5
    keys = iter(jax.random.split(key, 40))

    def nrm(shape, std):
        return jax.random.normal(next(keys), shape, jnp.float32) * std

    bf = jnp.bfloat16
    p = dict(
        # multi-head self-attention; softmax scale folded into W_Q / b_Q (exact)
        wq=(nrm((D, D), D ** -0.5) * scale).astype(bf),
        bq=nrm((1, D), 0.1) * scale,
        wk=nrm((D, D), D ** -0.5).astype(bf), bk=nrm((1, D), 0.1),
        wv=nrm((D, D), D ** -0.5).astype(bf), bv=nrm((1, D), 0.1),
        wo=nrm((D, D), D ** -0.5).astype(bf),
        bn1_g=1.0 + nrm((D,), 0.1), bn1_b=nrm((D,), 0.1),
        # position-wise FFN
        ff_w1=nrm((D, d_ff), D ** -0.5).astype(bf), ff_b1=nrm((1, d_ff), 0.1),
        ff_w2=nrm((d_ff, D), d_ff ** -0.5).astype(bf),
        bn2_g=1.0 + nrm((D,), 0.1), bn2_b=nrm((D,), 0.1),
        # Mamba block
        in_w=nrm((D, 2 * Din), D ** -0.5).astype(bf),
        conv_w=nrm((d_conv, Din), 0.5), conv_b=nrm((1, Din), 0.1),
        xproj_w=nrm((Din, Rdt + 2 * S), Din ** -0.5).astype(bf),
        dt_w=nrm((Rdt, Din), Rdt ** -0.5).astype(bf), dt_b=nrm((1, Din), 0.5),
        A_T=-jnp.exp(nrm((S, Din), 0.3)),          # A = -exp(A_log), stored transposed (S, Din)
        D2=1.0 + nrm((1, Din), 0.1),
        out_w=nrm((Din, D), Din ** -0.5).astype(bf),
        bn3_g=1.0 + nrm((D,), 0.1), bn3_b=nrm((D,), 0.1),
        # zero biases for the bias-free Mamba projections (one linear kernel serves all)
        in_b0=jnp.zeros((1, 2 * Din), jnp.float32),
        xproj_b0=jnp.zeros((1, Rdt + 2 * S), jnp.float32),
        out_b0=jnp.zeros((1, D), jnp.float32),
    )
    # per-channel constant biases the batch-stat BatchNorm cancels exactly; the Pallas path
    # folds them away, the reference keeps them to verify that fold.
    ref_only = dict(bo=nrm((1, D), 0.1), ff_b2=nrm((1, D), 0.1))
    return p, ref_only


def encoder_am_ref(x, p, rp, *, n_heads):
    B, L, D = x.shape
    dk = D // n_heads

    def mm(a, w):
        return jnp.dot(a.astype(jnp.bfloat16), w, preferred_element_type=jnp.float32)

    def bn(r, g, b):
        mean = jnp.mean(r, axis=(0, 1), keepdims=True)
        var = jnp.mean((r - mean) ** 2, axis=(0, 1), keepdims=True)
        return (r - mean) * lax.rsqrt(var + EPS) * g + b

    # multi-head self-attention (+ residual + BN)
    x2 = x.reshape(B * L, D)
    q = (mm(x2, p['wq']) + p['bq']).reshape(B, L, n_heads, dk)
    k = (mm(x2, p['wk']) + p['bk']).reshape(B, L, n_heads, dk)
    v = (mm(x2, p['wv']) + p['bv']).reshape(B, L, n_heads, dk)
    s = jnp.einsum('blhd,bmhd->bhlm', q.astype(jnp.bfloat16), k.astype(jnp.bfloat16),
                   preferred_element_type=jnp.float32)
    attw = _softmax_last(s)
    ctx = jnp.einsum('bhlm,bmhd->blhd', attw.astype(jnp.bfloat16), v.astype(jnp.bfloat16),
                     preferred_element_type=jnp.float32).reshape(B * L, D)
    a = (mm(ctx, p['wo']) + rp['bo']).reshape(B, L, D)
    x = bn(x + a, p['bn1_g'], p['bn1_b'])

    # FFN (+ residual + BN)
    x2 = x.reshape(B * L, D)
    h = jax.nn.gelu(mm(x2, p['ff_w1']) + p['ff_b1'], approximate=True)
    f = (mm(h, p['ff_w2']) + rp['ff_b2']).reshape(B, L, D)
    x = bn(x + f, p['bn2_g'], p['bn2_b'])

    # Mamba (+ residual + BN)
    kw, Din = p['conv_w'].shape
    S = p['A_T'].shape[0]
    Rdt = p['dt_w'].shape[0]
    x2 = x.reshape(B * L, D)
    xz = mm(x2, p['in_w'])
    xm = xz[:, :Din].reshape(B, L, Din)
    zm = xz[:, Din:].reshape(B, L, Din)
    xm_pad = jnp.pad(xm, ((0, 0), (kw - 1, 0), (0, 0)))
    u = sum(xm_pad[:, t:t + L, :] * p['conv_w'][t][None, None, :] for t in range(kw))
    u = _silu(u + p['conv_b'])
    xdbl = mm(u.reshape(B * L, Din), p['xproj_w'])
    dt = _softplus(mm(xdbl[:, :Rdt], p['dt_w']) + p['dt_b']).reshape(B, L, Din)
    Bc = xdbl[:, Rdt:Rdt + S].reshape(B, L, S)
    Cc = xdbl[:, Rdt + S:].reshape(B, L, S)
    A = jnp.transpose(p['A_T'])                       # (Din, S)
    dA = jnp.exp(dt[..., None] * A[None, None])       # (B, L, Din, S)
    dBu = (dt * u)[..., None] * Bc[:, :, None, :]

    def step(hcar, inp):
        dA_t, dBu_t, C_t = inp
        hcar = dA_t * hcar + dBu_t
        return hcar, jnp.einsum('bds,bs->bd', hcar, C_t)

    _, ys = lax.scan(step, jnp.zeros((B, Din, S), jnp.float32),
                     (jnp.swapaxes(dA, 0, 1), jnp.swapaxes(dBu, 0, 1), jnp.swapaxes(Cc, 0, 1)))
    y = jnp.swapaxes(ys, 0, 1) + u * p['D2']
    y = y * _silu(zm)
    m = mm(y.reshape(B * L, Din), p['out_w']).reshape(B, L, D)
    x = bn(x + m, p['bn3_g'], p['bn3_b'])
    return x


if __name__ == "__main__":
    B, L, D, H, F = 4, 16, 32, 4, 64          # batch, q_len, d_model, n_heads, d_ff
    key = jax.random.PRNGKey(0)
    params, ref_only = make_params(key, D, H, F)
    x = jax.random.normal(jax.random.fold_in(key, 1234), (B, L, D), jnp.float32)

    fwd = jax.jit(functools.partial(encoder_am_forward, n_heads=H))
    out = fwd(x, params)
    jax.block_until_ready(out)

    ref = encoder_am_ref(x, params, ref_only, n_heads=H)
    np.testing.assert_allclose(np.asarray(out), np.asarray(ref), rtol=5e-3, atol=5e-3)
    assert out.shape == (B, L, D) and np.isfinite(np.asarray(out)).all()
    print("KERNEL_OK")
</pallas_src>

<mosaic_0001>
module attributes {stable_mosaic.version = 11 : i64} {
  func.func @_add_stats_kernel(%arg0: i32, %arg1: memref<8x128xf32, #tpu.memory_space<vmem>>, %arg2: memref<8x128xf32, #tpu.memory_space<vmem>>, %arg3: memref<8x128xf32, #tpu.memory_space<vmem>>, %arg4: memref<1x128xf32, #tpu.memory_space<vmem>>, %arg5: memref<1x128xf32, #tpu.memory_space<vmem>>) attributes {dimension_semantics = [#tpu.dimension_semantics<arbitrary>], iteration_bounds = array<i64: 2>, scalar_prefetch = 0 : i64, scratch_operands = 0 : i64, tpu.core_type = #tpu.core_type<tc>, window_params = [{transform_indices = @transform_0, window_bounds = array<i64: 8, 128>}, {transform_indices = @transform_1, window_bounds = array<i64: 8, 128>}, {transform_indices = @transform_2, window_bounds = array<i64: 8, 128>}, {pipeline_mode = #tpu.pipeline_mode<synchronous>, transform_indices = @transform_3, window_bounds = array<i64: 1, 128>}, {pipeline_mode = #tpu.pipeline_mode<synchronous>, transform_indices = @transform_4, window_bounds = array<i64: 1, 128>}]} {
    %c0_i32 = arith.constant 0 : i32
    %0 = arith.cmpi eq, %arg0, %c0_i32 : i32
    %1 = arith.extui %0 : i1 to i32
    %c0_i32_0 = arith.constant 0 : i32
    %2 = arith.cmpi ne, %1, %c0_i32_0 : i32
    scf.if %2 {
      %cst_15 = arith.constant 0.000000e+00 : f32
      %18 = vector.broadcast %cst_15 : f32 to vector<1x128xf32>
      %c0_16 = arith.constant 0 : index
      %c0_17 = arith.constant 0 : index
      %19 = vector.load %arg4[%c0_16, %c0_17] : memref<1x128xf32, #tpu.memory_space<vmem>>, vector<1x128xf32>
      tpu.vector_store %arg4[%c0_16, %c0_17], %18 {strides = array<i32>} : memref<1x128xf32, #tpu.memory_space<vmem>>, vector<1x128xf32>,
      %cst_18 = arith.constant 0.000000e+00 : f32
      %20 = vector.broadcast %cst_18 : f32 to vector<1x128xf32>
      %c0_19 = arith.constant 0 : index
      %c0_20 = arith.constant 0 : index
      %21 = vector.load %arg5[%c0_19, %c0_20] : memref<1x128xf32, #tpu.memory_space<vmem>>, vector<1x128xf32>
      tpu.vector_store %arg5[%c0_19, %c0_20], %20 {strides = array<i32>} : memref<1x128xf32, #tpu.memory_space<vmem>>, vector<1x128xf32>,
    } else {
    }
    %c0 = arith.constant 0 : index
    %c0_1 = arith.constant 0 : index
    %3 = vector.load %arg1[%c0, %c0_1] : memref<8x128xf32, #tpu.memory_space<vmem>>, vector<8x128xf32>
    %c0_2 = arith.constant 0 : index
    %c0_3 = arith.constant 0 : index
    %4 = vector.load %arg2[%c0_2, %c0_3] : memref<8x128xf32, #tpu.memory_space<vmem>>, vector<8x128xf32>
    %5 = arith.addf %3, %4 : vector<8x128xf32>
    %c0_4 = arith.constant 0 : index
    %c0_5 = arith.constant 0 : index
    %6 = vector.load %arg3[%c0_4, %c0_5] : memref<8x128xf32, #tpu.memory_space<vmem>>, vector<8x128xf32>
    tpu.vector_store %arg3[%c0_4, %c0_5], %5 {strides = array<i32>} : memref<8x128xf32, #tpu.memory_space<vmem>>, vector<8x128xf32>,
    %c0_6 = arith.constant 0 : index
    %c0_7 = arith.constant 0 : index
    %7 = vector.load %arg4[%c0_6, %c0_7] : memref<1x128xf32, #tpu.memory_space<vmem>>, vector<1x128xf32>
    %cst = arith.constant dense<0.000000e+00> : vector<128xf32>
    %8 = vector.multi_reduction <add>, %5, %cst [0] : vector<8x128xf32> to vector<128xf32>
    %9 = vector.shape_cast %8 : vector<128xf32> to vector<1x128xf32>
    %10 = arith.addf %7, %9 : vector<1x128xf32>
    %c0_8 = arith.constant 0 : index
    %c0_9 = arith.constant 0 : index
    %11 = vector.load %arg4[%c0_8, %c0_9] : memref<1x128xf32, #tpu.memory_space<vmem>>, vector<1x128xf32>
    tpu.vector_store %arg4[%c0_8, %c0_9], %10 {strides = array<i32>} : memref<1x128xf32, #tpu.memory_space<vmem>>, vector<1x128xf32>,
    %c0_10 = arith.constant 0 : index
    %c0_11 = arith.constant 0 : index
    %12 = vector.load %arg5[%c0_10, %c0_11] : memref<1x128xf32, #tpu.memory_space<vmem>>, vector<1x128xf32>
    %13 = arith.mulf %5, %5 : vector<8x128xf32>
    %cst_12 = arith.constant dense<0.000000e+00> : vector<128xf32>
    %14 = vector.multi_reduction <add>, %13, %cst_12 [0] : vector<8x128xf32> to vector<128xf32>
    %15 = vector.shape_cast %14 : vector<128xf32> to vector<1x128xf32>
    %16 = arith.addf %12, %15 : vector<1x128xf32>
    %c0_13 = arith.constant 0 : index
    %c0_14 = arith.constant 0 : index
    %17 = vector.load %arg5[%c0_13, %c0_14] : memref<1x128xf32, #tpu.memory_space<vmem>>, vector<1x128xf32>
    tpu.vector_store %arg5[%c0_13, %c0_14], %16 {strides = array<i32>} : memref<1x128xf32, #tpu.memory_space<vmem>>, vector<1x128xf32>,
    return
  }
  func.func @transform_0(%arg0: i32) -> (i32, i32) {
    %c0_i32 = arith.constant 0 : i32
    %c0_i32_0 = arith.constant 0 : i32
    return %arg0, %c0_i32 : i32, i32
  }
  func.func @transform_1(%arg0: i32) -> (i32, i32) {
    %c0_i32 = arith.constant 0 : i32
    %c0_i32_0 = arith.constant 0 : i32
    return %arg0, %c0_i32 : i32, i32
  }
  func.func @transform_2(%arg0: i32) -> (i32, i32) {
    %c0_i32 = arith.constant 0 : i32
    %c0_i32_0 = arith.constant 0 : i32
    return %arg0, %c0_i32 : i32, i32
  }
  func.func @transform_3(%arg0: i32) -> (i32, i32) {
    %c0_i32 = arith.constant 0 : i32
    %c0_i32_0 = arith.constant 0 : i32
    %c0_i32_1 = arith.constant 0 : i32
    return %c0_i32, %c0_i32_0 : i32, i32
  }
  func.func @transform_4(%arg0: i32) -> (i32, i32) {
    %c0_i32 = arith.constant 0 : i32
    %c0_i32_0 = arith.constant 0 : i32
    %c0_i32_1 = arith.constant 0 : i32
    return %c0_i32, %c0_i32_0 : i32, i32
  }
}

module attributes {stable_mosaic.version = 11 : i64} {
  func.func @_mha_kernel(%arg0: i32, %arg1: memref<1x16x32xf32, #tpu.memory_space<vmem>>, %arg2: memref<32x32xbf16, #tpu.memory_space<vmem>>, %arg3: memref<1x32xf32, #tpu.memory_space<vmem>>, %arg4: memref<32x32xbf16, #tpu.memory_space<vmem>>, %arg5: memref<1x32xf32, #tpu.memory_space<vmem>>, %arg6: memref<32x32xbf16, #tpu.memory_space<vmem>>, %arg7: memref<1x32xf32, #tpu.memory_space<vmem>>, %arg8: memref<32x32xbf16, #tpu.memory_space<vmem>>, %arg9: memref<1x16x32xf32, #tpu.memory_space<vmem>>) attributes {dimension_semantics = [#tpu.dimension_semantics<parallel>], iteration_bounds = array<i64: 4>, scalar_prefetch = 0 : i64, scratch_operands = 0 : i64, tpu.core_type = #tpu.core_type<tc>, window_params = [{transform_indices = @transform_0, window_bounds = array<i64: 1, 16, 32>}, {pipeline_mode = #tpu.pipeline_mode<synchronous>, transform_indices = @transform_1, window_bounds = array<i64: 32, 32>}, {pipeline_mode = #tpu.pipeline_mode<synchronous>, transform_indices = @transform_2, window_bounds = array<i64: 1, 32>}, {pipeline_mode = #tpu.pipeline_mode<synchronous>, transform_indices = @transform_3, window_bounds = array<i64: 32, 32>}, {pipeline_mode = #tpu.pipeline_mode<synchronous>, transform_indices = @transform_4, window_bounds = array<i64: 1, 32>}, {pipeline_mode = #tpu.pipeline_mode<synchronous>, transform_indices = @transform_5, window_bounds = array<i64: 32, 32>}, {pipeline_mode = #tpu.pipeline_mode<synchronous>, transform_indices = @transform_6, window_bounds = array<i64: 1, 32>}, {pipeline_mode = #tpu.pipeline_mode<synchronous>, transform_indices = @transform_7, window_bounds = array<i64: 32, 32>}, {transform_indices = @transform_8, window_bounds = array<i64: 1, 16, 32>}]} {
    %c0 = arith.constant 0 : index
    %c0_0 = arith.constant 0 : index
    %c0_1 = arith.constant 0 : index
    %0 = vector.load %arg1[%c0, %c0_0, %c0_1] : memref<1x16x32xf32, #tpu.memory_space<vmem>>, vector<1x16x32xf32>
    %1 = vector.shape_cast %0 : vector<1x16x32xf32> to vector<16x32xf32>
    %2 = arith.truncf %1 : vector<16x32xf32> to vector<16x32xbf16>
    %c0_2 = arith.constant 0 : index
    %c0_3 = arith.constant 0 : index
    %3 = vector.load %arg2[%c0_2, %c0_3] : memref<32x32xbf16, #tpu.memory_space<vmem>>, vector<32x32xbf16>
    %cst = arith.constant dense<0.000000e+00> : vector<16x32xf32>
    %4 = tpu.matmul %2, %3, %cst {dimension_numbers = #tpu.dot_dimension_numbers<[1], [0], [0], [1], [0, 0, 1, 1], [], []>} : vector<16x32xbf16>, vector<32x32xbf16>, vector<16x32xf32> -> vector<16x32xf32>
    %c0_4 = arith.constant 0 : index
    %c0_5 = arith.constant 0 : index
    %5 = vector.load %arg3[%c0_4, %c0_5] : memref<1x32xf32, #tpu.memory_space<vmem>>, vector<1x32xf32>
    %6 = vector.broadcast %5 : vector<1x32xf32> to vector<16x32xf32>
    %7 = arith.addf %4, %6 : vector<16x32xf32>
    %c0_6 = arith.constant 0 : index
    %c0_7 = arith.constant 0 : index
    %8 = vector.load %arg4[%c0_6, %c0_7] : memref<32x32xbf16, #tpu.memory_space<vmem>>, vector<32x32xbf16>
    %cst_8 = arith.constant dense<0.000000e+00> : vector<16x32xf32>
    %9 = tpu.matmul %2, %8, %cst_8 {dimension_numbers = #tpu.dot_dimension_numbers<[1], [0], [0], [1], [0, 0, 1, 1], [], []>} : vector<16x32xbf16>, vector<32x32xbf16>, vector<16x32xf32> -> vector<16x32xf32>
    %c0_9 = arith.constant 0 : index
    %c0_10 = arith.constant 0 : index
    %10 = vector.load %arg5[%c0_9, %c0_10] : memref<1x32xf32, #tpu.memory_space<vmem>>, vector<1x32xf32>
    %11 = vector.broadcast %10 : vector<1x32xf32> to vector<16x32xf32>
    %12 = arith.addf %9, %11 : vector<16x32xf32>
    %c0_11 = arith.constant 0 : index
    %c0_12 = arith.constant 0 : index
    %13 = vector.load %arg6[%c0_11, %c0_12] : memref<32x32xbf16, #tpu.memory_space<vmem>>, vector<32x32xbf16>
    %cst_13 = arith.constant dense<0.000000e+00> : vector<16x32xf32>
    %14 = tpu.matmul %2, %13, %cst_13 {dimension_numbers = #tpu.dot_dimension_numbers<[1], [0], [0], [1], [0, 0, 1, 1], [], []>} : vector<16x32xbf16>, vector<32x32xbf16>, vector<16x32xf32> -> vector<16x32xf32>
    %c0_14 = arith.constant 0 : index
    %c0_15 = arith.constant 0 : index
    %15 = vector.load %arg7[%c0_14, %c0_15] : memref<1x32xf32, #tpu.memory_space<vmem>>, vector<1x32xf32>
    %16 = vector.broadcast %15 : vector<1x32xf32> to vector<16x32xf32>
    %17 = arith.addf %14, %16 : vector<16x32xf32>
    %18 = vector.extract_strided_slice %7 {offsets = [0, 0], sizes = [16, 8], strides = [1, 1]} : vector<16x32xf32> to vector<16x8xf32>
    %19 = arith.truncf %18 : vector<16x8xf32> to vector<16x8xbf16>
    %20 = vector.extract_strided_slice %12 {offsets = [0, 0], sizes = [16, 8], strides = [1, 1]} : vector<16x32xf32> to vector<16x8xf32>
    %21 = arith.truncf %20 : vector<16x8xf32> to vector<16x8xbf16>
    %22 = vector.extract_strided_slice %17 {offsets = [0, 0], sizes = [16, 8], strides = [1, 1]} : vector<16x32xf32> to vector<16x8xf32>
    %23 = arith.truncf %22 : vector<16x8xf32> to vector<16x8xbf16>
    "tpu.trace_start"() <{level = 10 : i32, message = "qd,kd->qk"}> : () -> ()
    %cst_16 = arith.constant dense<0.000000e+00> : vector<16x16xf32>
    %24 = tpu.matmul %19, %21, %cst_16 {dimension_numbers = #tpu.dot_dimension_numbers<[1], [1], [0], [0], [0, 0, 1, 0], [], []>} : vector<16x8xbf16>, vector<16x8xbf16>, vector<16x16xf32> -> vector<16x16xf32>
    "tpu.trace_stop"() : () -> ()
    %cst_17 = arith.constant dense<0xFF800000> : vector<16xf32>
    %25 = vector.multi_reduction <maximumf>, %24, %cst_17 [1] : vector<16x16xf32> to vector<16xf32>
    %26 = vector.shape_cast %25 : vector<16xf32> to vector<16x1xf32>
    %27 = vector.broadcast %26 : vector<16x1xf32> to vector<16x16xf32>
    %28 = arith.subf %24, %27 : vector<16x16xf32>
    %29 = math.exp %28 : vector<16x16xf32>
    %cst_18 = arith.constant dense<0.000000e+00> : vector<16xf32>
    %30 = vector.multi_reduction <add>, %29, %cst_18 [1] : vector<16x16xf32> to vector<16xf32>
    %31 = vector.shape_cast %30 : vector<16xf32> to vector<16x1xf32>
    %32 = vector.broadcast %31 : vector<16x1xf32> to vector<16x16xf32>
    %33 = arith.divf %29, %32 : vector<16x16xf32>
    %34 = arith.truncf %33 : vector<16x16xf32> to vector<16x16xbf16>
    "tpu.trace_start"() <{level = 10 : i32, message = "qk,kd->qd"}> : () -> ()
    %cst_19 = arith.constant dense<0.000000e+00> : vector<16x8xf32>
    %35 = tpu.matmul %34, %23, %cst_19 {dimension_numbers = #tpu.dot_dimension_numbers<[1], [0], [0], [1], [0, 0, 1, 1], [], []>} : vector<16x16xbf16>, vector<16x8xbf16>, vector<16x8xf32> -> vector<16x8xf32>
    "tpu.trace_stop"() : () -> ()
    %36 = vector.extract_strided_slice %7 {offsets = [0, 8], sizes = [16, 8], strides = [1, 1]} : vector<16x32xf32> to vector<16x8xf32>
    %37 = arith.truncf %36 : vector<16x8xf32> to vector<16x8xbf16>
    %38 = vector.extract_strided_slice %12 {offsets = [0, 8], sizes = [16, 8], strides = [1, 1]} : vector<16x32xf32> to vector<16x8xf32>
    %39 = arith.truncf %38 : vector<16x8xf32> to vector<16x8xbf16>
    %40 = vector.extract_strided_slice %17 {offsets = [0, 8], sizes = [16, 8], strides = [1, 1]} : vector<16x32xf32> to vector<16x8xf32>
    %41 = arith.truncf %40 : vector<16x8xf32> to vector<16x8xbf16>
    "tpu.trace_start"() <{level = 10 : i32, message = "qd,kd->qk"}> : () -> ()
    %cst_20 = arith.constant dense<0.000000e+00> : vector<16x16xf32>
    %42 = tpu.matmul %37, %39, %cst_20 {dimension_numbers = #tpu.dot_dimension_numbers<[1], [1], [0], [0], [0, 0, 1, 0], [], []>} : vector<16x8xbf16>, vector<16x8xbf16>, vector<16x16xf32> -> vector<16x16xf32>
    "tpu.trace_stop"() : () -> ()
    %cst_21 = arith.constant dense<0xFF800000> : vector<16xf32>
    %43 = vector.multi_reduction <maximumf>, %42, %cst_21 [1] : vector<16x16xf32> to vector<16xf32>
    %44 = vector.shape_cast %43 : vector<16xf32> to vector<16x1xf32>
    %45 = vector.broadcast %44 : vector<16x1xf32> to vector<16x16xf32>
    %46 = arith.subf %42, %45 : vector<16x16xf32>
    %47 = math.exp %46 : vector<16x16xf32>
    %cst_22 = arith.constant dense<0.000000e+00> : vector<16xf32>
    %48 = vector.multi_reduction <add>, %47, %cst_22 [1] : vector<16x16xf32> to vector<16xf32>
    %49 = vector.shape_cast %48 : vector<16xf32> to vector<16x1xf32>
    %50 = vector.broadcast %49 : vector<16x1xf32> to vector<16x16xf32>
    %51 = arith.divf %47, %50 : vector<16x16xf32>
    %52 = arith.truncf %51 : vector<16x16xf32> to vector<16x16xbf16>
    "tpu.trace_start"() <{level = 10 : i32, message = "qk,kd->qd"}> : () -> ()
    %cst_23 = arith.constant dense<0.000000e+00> : vector<16x8xf32>
    %53 = tpu.matmul %52, %41, %cst_23 {dimension_numbers = #tpu.dot_dimension_numbers<[1], [0], [0], [1], [0, 0, 1, 1], [], []>} : vector<16x16xbf16>, vector<16x8xbf16>, vector<16x8xf32> -> vector<16x8xf32>
    "tpu.trace_stop"() : () -> ()
    %54 = vector.extract_strided_slice %7 {offsets = [0, 16], sizes = [16, 8], strides = [1, 1]} : vector<16x32xf32> to vector<16x8xf32>
    %55 = arith.truncf %54 : vector<16x8xf32> to vector<16x8xbf16>
    %56 = vector.extract_strided_slice %12 {offsets = [0, 16], sizes = [16, 8], strides = [1, 1]} : vector<16x32xf32> to vector<16x8xf32>
    %57 = arith.truncf %56 : vector<16x8xf32> to vector<16x8xbf16>
    %58 = vector.extract_strided_slice %17 {offsets = [0, 16], sizes = [16, 8], strides = [1, 1]} : vector<16x32xf32> to vector<16x8xf32>
    %59 = arith.truncf %58 : vector<16x8xf32> to vector<16x8xbf16>
    "tpu.trace_start"() <{level = 10 : i32, message = "qd,kd->qk"}> : () -> ()
    %cst_24 = arith.constant dense<0.000000e+00> : vector<16x16xf32>
    %60 = tpu.matmul %55, %57, %cst_24 {dimension_numbers = #tpu.dot_dimension_numbers<[1], [1], [0], [0], [0, 0, 1, 0], [], []>} : vector<16x8xbf16>, vector<16x8xbf16>, vector<16x16xf32> -> vector<16x16xf32>
    "tpu.trace_stop"() : () -> ()
    %cst_25 = arith.constant dense<0xFF800000> : vector<16xf32>
    %61 = vector.multi_reduction <maximumf>, %60, %cst_25 [1] : vector<16x16xf32> to vector<16xf32>
    %62 = vector.shape_cast %61 : vector<16xf32> to vector<16x1xf32>
    %63 = vector.broadcast %62 : vector<16x1xf32> to vector<16x16xf32>
    %64 = arith.subf %60, %63 : vector<16x16xf32>
    %65 = math.exp %64 : vector<16x16xf32>
    %cst_26 = arith.constant dense<0.000000e+00> : vector<16xf32>
    %66 = vector.multi_reduction <add>, %65, %cst_26 [1] : vector<16x16xf32> to vector<16xf32>
    %67 = vector.shape_cast %66 : vector<16xf32> to vector<16x1xf32>
    %68 = vector.broadcast %67 : vector<16x1xf32> to vector<16x16xf32>
    %69 = arith.divf %65, %68 : vector<16x16xf32>
    %70 = arith.truncf %69 : vector<16x16xf32> to vector<16x16xbf16>
    "tpu.trace_start"() <{level = 10 : i32, message = "qk,kd->qd"}> : () -> ()
    %cst_27 = arith.constant dense<0.000000e+00> : vector<16x8xf32>
    %71 = tpu.matmul %70, %59, %cst_27 {dimension_numbers = #tpu.dot_dimension_numbers<[1], [0], [0], [1], [0, 0, 1, 1], [], []>} : vector<16x16xbf16>, vector<16x8xbf16>, vector<16x8xf32> -> vector<16x8xf32>
    "tpu.trace_stop"() : () -> ()
    %72 = vector.extract_strided_slice %7 {offsets = [0, 24], sizes = [16, 8], strides = [1, 1]} : vector<16x32xf32> to vector<16x8xf32>
    %73 = arith.truncf %72 : vector<16x8xf32> to vector<16x8xbf16>
    %74 = vector.extract_strided_slice %12 {offsets = [0, 24], sizes = [16, 8], strides = [1, 1]} : vector<16x32xf32> to vector<16x8xf32>
    %75 = arith.truncf %74 : vector<16x8xf32> to vector<16x8xbf16>
    %76 = vector.extract_strided_slice %17 {offsets = [0, 24], sizes = [16, 8], strides = [1, 1]} : vector<16x32xf32> to vector<16x8xf32>
    %77 = arith.truncf %76 : vector<16x8xf32> to vector<16x8xbf16>
    "tpu.trace_start"() <{level = 10 : i32, message = "qd,kd->qk"}> : () -> ()
    %cst_28 = arith.constant dense<0.000000e+00> : vector<16x16xf32>
    %78 = tpu.matmul %73, %75, %cst_28 {dimension_numbers = #tpu.dot_dimension_numbers<[1], [1], [0], [0], [0, 0, 1, 0], [], []>} : vector<16x8xbf16>, vector<16x8xbf16>, vector<16x16xf32> -> vector<16x16xf32>
    "tpu.trace_stop"() : () -> ()
    %cst_29 = arith.constant dense<0xFF800000> : vector<16xf32>
    %79 = vector.multi_reduction <maximumf>, %78, %cst_29 [1] : vector<16x16xf32> to vector<16xf32>
    %80 = vector.shape_cast %79 : vector<16xf32> to vector<16x1xf32>
    %81 = vector.broadcast %80 : vector<16x1xf32> to vector<16x16xf32>
    %82 = arith.subf %78, %81 : vector<16x16xf32>
    %83 = math.exp %82 : vector<16x16xf32>
    %cst_30 = arith.constant dense<0.000000e+00> : vector<16xf32>
    %84 = vector.multi_reduction <add>, %83, %cst_30 [1] : vector<16x16xf32> to vector<16xf32>
    %85 = vector.shape_cast %84 : vector<16xf32> to vector<16x1xf32>
    %86 = vector.broadcast %85 : vector<16x1xf32> to vector<16x16xf32>
    %87 = arith.divf %83, %86 : vector<16x16xf32>
    %88 = arith.truncf %87 : vector<16x16xf32> to vector<16x16xbf16>
    "tpu.trace_start"() <{level = 10 : i32, message = "qk,kd->qd"}> : () -> ()
    %cst_31 = arith.constant dense<0.000000e+00> : vector<16x8xf32>
    %89 = tpu.matmul %88, %77, %cst_31 {dimension_numbers = #tpu.dot_dimension_numbers<[1], [0], [0], [1], [0, 0, 1, 1], [], []>} : vector<16x16xbf16>, vector<16x8xbf16>, vector<16x8xf32> -> vector<16x8xf32>
    "tpu.trace_stop"() : () -> ()
    %90 = tpu.concatenate %35, %53, %71, %89 in 1 : vector<16x8xf32>, vector<16x8xf32>, vector<16x8xf32>, vector<16x8xf32> -> vector<16x32xf32>
    %91 = arith.truncf %90 : vector<16x32xf32> to vector<16x32xbf16>
    %c0_32 = arith.constant 0 : index
    %c0_33 = arith.constant 0 : index
    %92 = vector.load %arg8[%c0_32, %c0_33] : memref<32x32xbf16, #tpu.memory_space<vmem>>, vector<32x32xbf16>
    %cst_34 = arith.constant dense<0.000000e+00> : vector<16x32xf32>
    %93 = tpu.matmul %91, %92, %cst_34 {dimension_numbers = #tpu.dot_dimension_numbers<[1], [0], [0], [1], [0, 0, 1, 1], [], []>} : vector<16x32xbf16>, vector<32x32xbf16>, vector<16x32xf32> -> vector<16x32xf32>
    %c0_35 = arith.constant 0 : index
    %c0_36 = arith.constant 0 : index
    %c0_37 = arith.constant 0 : index
    %94 = vector.load %arg9[%c0_35, %c0_36, %c0_37] : memref<1x16x32xf32, #tpu.memory_space<vmem>>, vector<1x16x32xf32>
    %95 = vector.shape_cast %94 : vector<1x16x32xf32> to vector<16x32xf32>
    %96 = vector.shape_cast %93 : vector<16x32xf32> to vector<1x16x32xf32>
    tpu.vector_store %arg9[%c0_35, %c0_36, %c0_37], %96 {strides = array<i32>} : memref<1x16x32xf32, #tpu.memory_space<vmem>>, vector<1x16x32xf32>,
    return
  }
  func.func @transform_0(%arg0: i32) -> (i32, i32, i32) {
    %c0_i32 = arith.constant 0 : i32
    %c0_i32_0 = arith.constant 0 : i32
    %c0_i32_1 = arith.constant 0 : i32
    return %arg0, %c0_i32, %c0_i32_0 : i32, i32, i32
  }
  func.func @transform_1(%arg0: i32) -> (i32, i32) {
    %c0_i32 = arith.constant 0 : i32
    %c0_i32_0 = arith.constant 0 : i32
    %c0_i32_1 = arith.constant 0 : i32
    return %c0_i32, %c0_i32_0 : i32, i32
  }
  func.func @transform_2(%arg0: i32) -> (i32, i32) {
    %c0_i32 = arith.constant 0 : i32
    %c0_i32_0 = arith.constant 0 : i32
    %c0_i32_1 = arith.constant 0 : i32
    return %c0_i32, %c0_i32_0 : i32, i32
  }
  func.func @transform_3(%arg0: i32) -> (i32, i32) {
    %c0_i32 = arith.constant 0 : i32
    %c0_i32_0 = arith.constant 0 : i32
    %c0_i32_1 = arith.constant 0 : i32
    return %c0_i32, %c0_i32_0 : i32, i32
  }
  func.func @transform_4(%arg0: i32) -> (i32, i32) {
    %c0_i32 = arith.constant 0 : i32
    %c0_i32_0 = arith.constant 0 : i32
    %c0_i32_1 = arith.constant 0 : i32
    return %c0_i32, %c0_i32_0 : i32, i32
  }
  func.func @transform_5(%arg0: i32) -> (i32, i32) {
    %c0_i32 = arith.constant 0 : i32
    %c0_i32_0 = arith.constant 0 : i32
    %c0_i32_1 = arith.constant 0 : i32
    return %c0_i32, %c0_i32_0 : i32, i32
  }
  func.func @transform_6(%arg0: i32) -> (i32, i32) {
    %c0_i32 = arith.constant 0 : i32
    %c0_i32_0 = arith.constant 0 : i32
    %c0_i32_1 = arith.constant 0 : i32
    return %c0_i32, %c0_i32_0 : i32, i32
  }
  func.func @transform_7(%arg0: i32) -> (i32, i32) {
    %c0_i32 = arith.constant 0 : i32
    %c0_i32_0 = arith.constant 0 : i32
    %c0_i32_1 = arith.constant 0 : i32
    return %c0_i32, %c0_i32_0 : i32, i32
  }
  func.func @transform_8(%arg0: i32) -> (i32, i32, i32) {
    %c0_i32 = arith.constant 0 : i32
    %c0_i32_0 = arith.constant 0 : i32
    %c0_i32_1 = arith.constant 0 : i32
    return %arg0, %c0_i32, %c0_i32_0 : i32, i32, i32
  }
}

module attributes {stable_mosaic.version = 11 : i64} {
  func.func @_ffn_kernel(%arg0: i32, %arg1: memref<32x32xf32, #tpu.memory_space<vmem>>, %arg2: memref<32x64xbf16, #tpu.memory_space<vmem>>, %arg3: memref<1x64xf32, #tpu.memory_space<vmem>>, %arg4: memref<64x32xbf16, #tpu.memory_space<vmem>>, %arg5: memref<32x32xf32, #tpu.memory_space<vmem>>) attributes {dimension_semantics = [#tpu.dimension_semantics<parallel>], iteration_bounds = array<i64: 2>, scalar_prefetch = 0 : i64, scratch_operands = 0 : i64, tpu.core_type = #tpu.core_type<tc>, window_params = [{transform_indices = @transform_0, window_bounds = array<i64: 32, 32>}, {pipeline_mode = #tpu.pipeline_mode<synchronous>, transform_indices = @transform_1, window_bounds = array<i64: 32, 64>}, {pipeline_mode = #tpu.pipeline_mode<synchronous>, transform_indices = @transform_2, window_bounds = array<i64: 1, 64>}, {pipeline_mode = #tpu.pipeline_mode<synchronous>, transform_indices = @transform_3, window_bounds = array<i64: 64, 32>}, {transform_indices = @transform_4, window_bounds = array<i64: 32, 32>}]} {
    %c0 = arith.constant 0 : index
    %c0_0 = arith.constant 0 : index
    %0 = vector.load %arg1[%c0, %c0_0] : memref<32x32xf32, #tpu.memory_space<vmem>>, vector<32x32xf32>
    %1 = arith.truncf %0 : vector<32x32xf32> to vector<32x32xbf16>
    %c0_1 = arith.constant 0 : index
    %c0_2 = arith.constant 0 : index
    %2 = vector.load %arg2[%c0_1, %c0_2] : memref<32x64xbf16, #tpu.memory_space<vmem>>, vector<32x64xbf16>
    %cst = arith.constant dense<0.000000e+00> : vector<32x64xf32>
    %3 = tpu.matmul %1, %2, %cst {dimension_numbers = #tpu.dot_dimension_numbers<[1], [0], [0], [1], [0, 0, 1, 1], [], []>} : vector<32x32xbf16>, vector<32x64xbf16>, vector<32x64xf32> -> vector<32x64xf32>
    %c0_3 = arith.constant 0 : index
    %c0_4 = arith.constant 0 : index
    %4 = vector.load %arg3[%c0_3, %c0_4] : memref<1x64xf32, #tpu.memory_space<vmem>>, vector<1x64xf32>
    %5 = vector.broadcast %4 : vector<1x64xf32> to vector<32x64xf32>
    %6 = arith.addf %3, %5 : vector<32x64xf32>
    %7 = arith.mulf %6, %6 : vector<32x64xf32>
    %8 = arith.mulf %6, %7 : vector<32x64xf32>
    %cst_5 = arith.constant 4.471500e-02 : f32
    %9 = vector.broadcast %cst_5 : f32 to vector<32x64xf32>
    %10 = arith.mulf %9, %8 : vector<32x64xf32>
    %11 = arith.addf %6, %10 : vector<32x64xf32>
    %cst_6 = arith.constant 0.797884583 : f32
    %12 = vector.broadcast %cst_6 : f32 to vector<32x64xf32>
    %13 = arith.mulf %12, %11 : vector<32x64xf32>
    %14 = math.tanh %13 : vector<32x64xf32>
    %cst_7 = arith.constant 1.000000e+00 : f32
    %15 = vector.broadcast %cst_7 : f32 to vector<32x64xf32>
    %16 = arith.addf %15, %14 : vector<32x64xf32>
    %cst_8 = arith.constant 5.000000e-01 : f32
    %17 = vector.broadcast %cst_8 : f32 to vector<32x64xf32>
    %18 = arith.mulf %17, %16 : vector<32x64xf32>
    %19 = arith.mulf %6, %18 : vector<32x64xf32>
    %20 = arith.truncf %19 : vector<32x64xf32> to vector<32x64xbf16>
    %c0_9 = arith.constant 0 : index
    %c0_10 = arith.constant 0 : index
    %21 = vector.load %arg4[%c0_9, %c0_10] : memref<64x32xbf16, #tpu.memory_space<vmem>>, vector<64x32xbf16>
    %cst_11 = arith.constant dense<0.000000e+00> : vector<32x32xf32>
    %22 = tpu.matmul %20, %21, %cst_11 {dimension_numbers = #tpu.dot_dimension_numbers<[1], [0], [0], [1], [0, 0, 1, 1], [], []>} : vector<32x64xbf16>, vector<64x32xbf16>, vector<32x32xf32> -> vector<32x32xf32>
    %c0_12 = arith.constant 0 : index
    %c0_13 = arith.constant 0 : index
    %23 = vector.load %arg5[%c0_12, %c0_13] : memref<32x32xf32, #tpu.memory_space<vmem>>, vector<32x32xf32>
    tpu.vector_store %arg5[%c0_12, %c0_13], %22 {strides = array<i32>} : memref<32x32xf32, #tpu.memory_space<vmem>>, vector<32x32xf32>,
    return
  }
  func.func @transform_0(%arg0: i32) -> (i32, i32) {
    %c0_i32 = arith.constant 0 : i32
    %c0_i32_0 = arith.constant 0 : i32
    return %arg0, %c0_i32 : i32, i32
  }
  func.func @transform_1(%arg0: i32) -> (i32, i32) {
    %c0_i32 = arith.constant 0 : i32
    %c0_i32_0 = arith.constant 0 : i32
    %c0_i32_1 = arith.constant 0 : i32
    return %c0_i32, %c0_i32_0 : i32, i32
  }
  func.func @transform_2(%arg0: i32) -> (i32, i32) {
    %c0_i32 = arith.constant 0 : i32
    %c0_i32_0 = arith.constant 0 : i32
    %c0_i32_1 = arith.constant 0 : i32
    return %c0_i32, %c0_i32_0 : i32, i32
  }
  func.func @transform_3(%arg0: i32) -> (i32, i32) {
    %c0_i32 = arith.constant 0 : i32
    %c0_i32_0 = arith.constant 0 : i32
    %c0_i32_1 = arith.constant 0 : i32
    return %c0_i32, %c0_i32_0 : i32, i32
  }
  func.func @transform_4(%arg0: i32) -> (i32, i32) {
    %c0_i32 = arith.constant 0 : i32
    %c0_i32_0 = arith.constant 0 : i32
    return %arg0, %c0_i32 : i32, i32
  }
}

module attributes {stable_mosaic.version = 11 : i64} {
  func.func @_bn_apply_kernel(%arg0: i32, %arg1: memref<8x128xf32, #tpu.memory_space<vmem>>, %arg2: memref<1x128xf32, #tpu.memory_space<vmem>>, %arg3: memref<1x128xf32, #tpu.memory_space<vmem>>, %arg4: memref<8x128xf32, #tpu.memory_space<vmem>>) attributes {dimension_semantics = [#tpu.dimension_semantics<parallel>], iteration_bounds = array<i64: 2>, scalar_prefetch = 0 : i64, scratch_operands = 0 : i64, tpu.core_type = #tpu.core_type<tc>, window_params = [{transform_indices = @transform_0, window_bounds = array<i64: 8, 128>}, {pipeline_mode = #tpu.pipeline_mode<synchronous>, transform_indices = @transform_1, window_bounds = array<i64: 1, 128>}, {pipeline_mode = #tpu.pipeline_mode<synchronous>, transform_indices = @transform_2, window_bounds = array<i64: 1, 128>}, {transform_indices = @transform_3, window_bounds = array<i64: 8, 128>}]} {
    %c0 = arith.constant 0 : index
    %c0_0 = arith.constant 0 : index
    %0 = vector.load %arg1[%c0, %c0_0] : memref<8x128xf32, #tpu.memory_space<vmem>>, vector<8x128xf32>
    %c0_1 = arith.constant 0 : index
    %c0_2 = arith.constant 0 : index
    %1 = vector.load %arg2[%c0_1, %c0_2] : memref<1x128xf32, #tpu.memory_space<vmem>>, vector<1x128xf32>
    %2 = vector.broadcast %1 : vector<1x128xf32> to vector<8x128xf32>
    %3 = arith.mulf %0, %2 : vector<8x128xf32>
    %c0_3 = arith.constant 0 : index
    %c0_4 = arith.constant 0 : index
    %4 = vector.load %arg3[%c0_3, %c0_4] : memref<1x128xf32, #tpu.memory_space<vmem>>, vector<1x128xf32>
    %5 = vector.broadcast %4 : vector<1x128xf32> to vector<8x128xf32>
    %6 = arith.addf %3, %5 : vector<8x128xf32>
    %c0_5 = arith.constant 0 : index
    %c0_6 = arith.constant 0 : index
    %7 = vector.load %arg4[%c0_5, %c0_6] : memref<8x128xf32, #tpu.memory_space<vmem>>, vector<8x128xf32>
    tpu.vector_store %arg4[%c0_5, %c0_6], %6 {strides = array<i32>} : memref<8x128xf32, #tpu.memory_space<vmem>>, vector<8x128xf32>,
    return
  }
  func.func @transform_0(%arg0: i32) -> (i32, i32) {
    %c0_i32 = arith.constant 0 : i32
    %c0_i32_0 = arith.constant 0 : i32
    return %arg0, %c0_i32 : i32, i32
  }
  func.func @transform_1(%arg0: i32) -> (i32, i32) {
    %c0_i32 = arith.constant 0 : i32
    %c0_i32_0 = arith.constant 0 : i32
    %c0_i32_1 = arith.constant 0 : i32
    return %c0_i32, %c0_i32_0 : i32, i32
  }
  func.func @transform_2(%arg0: i32) -> (i32, i32) {
    %c0_i32 = arith.constant 0 : i32
    %c0_i32_0 = arith.constant 0 : i32
    %c0_i32_1 = arith.constant 0 : i32
    return %c0_i32, %c0_i32_0 : i32, i32
  }
  func.func @transform_3(%arg0: i32) -> (i32, i32) {
    %c0_i32 = arith.constant 0 : i32
    %c0_i32_0 = arith.constant 0 : i32
    return %arg0, %c0_i32 : i32, i32
  }
}

module attributes {stable_mosaic.version = 11 : i64} {
  func.func @_dwconv_silu_kernel(%arg0: i32, %arg1: memref<1x16x64xf32, #tpu.memory_space<vmem>>, %arg2: memref<4x64xf32, #tpu.memory_space<vmem>>, %arg3: memref<1x64xf32, #tpu.memory_space<vmem>>, %arg4: memref<1x16x64xf32, #tpu.memory_space<vmem>>) attributes {dimension_semantics = [#tpu.dimension_semantics<parallel>], iteration_bounds = array<i64: 4>, scalar_prefetch = 0 : i64, scratch_operands = 0 : i64, tpu.core_type = #tpu.core_type<tc>, window_params = [{transform_indices = @transform_0, window_bounds = array<i64: 1, 16, 64>}, {pipeline_mode = #tpu.pipeline_mode<synchronous>, transform_indices = @transform_1, window_bounds = array<i64: 4, 64>}, {pipeline_mode = #tpu.pipeline_mode<synchronous>, transform_indices = @transform_2, window_bounds = array<i64: 1, 64>}, {transform_indices = @transform_3, window_bounds = array<i64: 1, 16, 64>}]} {
    %c0 = arith.constant 0 : index
    %c0_0 = arith.constant 0 : index
    %c0_1 = arith.constant 0 : index
    %0 = vector.load %arg1[%c0, %c0_0, %c0_1] : memref<1x16x64xf32, #tpu.memory_space<vmem>>, vector<1x16x64xf32>
    %1 = vector.shape_cast %0 : vector<1x16x64xf32> to vector<16x64xf32>
    %c3 = arith.constant 3 : index
    %c0_2 = arith.constant 0 : index
    %2 = vector.load %arg2[%c3, %c0_2] : memref<4x64xf32, #tpu.memory_space<vmem>>, vector<1x64xf32>
    %3 = vector.broadcast %2 : vector<1x64xf32> to vector<16x64xf32>
    %4 = arith.mulf %1, %3 : vector<16x64xf32>
    %cst = arith.constant 0.000000e+00 : f32
    %5 = vector.broadcast %cst : f32 to vector<1x64xf32>
    %6 = vector.extract_strided_slice %1 {offsets = [0, 0], sizes = [15, 64], strides = [1, 1]} : vector<16x64xf32> to vector<15x64xf32>
    %7 = tpu.concatenate %5, %6 in 0 : vector<1x64xf32>, vector<15x64xf32> -> vector<16x64xf32>
    %c2 = arith.constant 2 : index
    %c0_3 = arith.constant 0 : index
    %8 = vector.load %arg2[%c2, %c0_3] : memref<4x64xf32, #tpu.memory_space<vmem>>, vector<1x64xf32>
    %9 = vector.broadcast %8 : vector<1x64xf32> to vector<16x64xf32>
    %10 = arith.mulf %7, %9 : vector<16x64xf32>
    %11 = arith.addf %4, %10 : vector<16x64xf32>
    %cst_4 = arith.constant 0.000000e+00 : f32
    %12 = vector.broadcast %cst_4 : f32 to vector<2x64xf32>
    %13 = vector.extract_strided_slice %1 {offsets = [0, 0], sizes = [14, 64], strides = [1, 1]} : vector<16x64xf32> to vector<14x64xf32>
    %14 = tpu.concatenate %12, %13 in 0 : vector<2x64xf32>, vector<14x64xf32> -> vector<16x64xf32>
    %c1 = arith.constant 1 : index
    %c0_5 = arith.constant 0 : index
    %15 = vector.load %arg2[%c1, %c0_5] : memref<4x64xf32, #tpu.memory_space<vmem>>, vector<1x64xf32>
    %16 = vector.broadcast %15 : vector<1x64xf32> to vector<16x64xf32>
    %17 = arith.mulf %14, %16 : vector<16x64xf32>
    %18 = arith.addf %11, %17 : vector<16x64xf32>
    %cst_6 = arith.constant 0.000000e+00 : f32
    %19 = vector.broadcast %cst_6 : f32 to vector<3x64xf32>
    %20 = vector.extract_strided_slice %1 {offsets = [0, 0], sizes = [13, 64], strides = [1, 1]} : vector<16x64xf32> to vector<13x64xf32>
    %21 = tpu.concatenate %19, %20 in 0 : vector<3x64xf32>, vector<13x64xf32> -> vector<16x64xf32>
    %c0_7 = arith.constant 0 : index
    %c0_8 = arith.constant 0 : index
    %22 = vector.load %arg2[%c0_7, %c0_8] : memref<4x64xf32, #tpu.memory_space<vmem>>, vector<1x64xf32>
    %23 = vector.broadcast %22 : vector<1x64xf32> to vector<16x64xf32>
    %24 = arith.mulf %21, %23 : vector<16x64xf32>
    %25 = arith.addf %18, %24 : vector<16x64xf32>
    %c0_9 = arith.constant 0 : index
    %c0_10 = arith.constant 0 : index
    %26 = vector.load %arg3[%c0_9, %c0_10] : memref<1x64xf32, #tpu.memory_space<vmem>>, vector<1x64xf32>
    %27 = vector.broadcast %26 : vector<1x64xf32> to vector<16x64xf32>
    %28 = arith.addf %25, %27 : vector<16x64xf32>
    %cst_11 = arith.constant 0.000000e+00 : f32
    %29 = vector.broadcast %cst_11 : f32 to vector<16x64xf32>
    %30 = arith.subf %29, %28 : vector<16x64xf32>
    %31 = math.exp %30 : vector<16x64xf32>
    %cst_12 = arith.constant 1.000000e+00 : f32
    %32 = vector.broadcast %cst_12 : f32 to vector<16x64xf32>
    %33 = arith.addf %32, %31 : vector<16x64xf32>
    %34 = arith.divf %28, %33 : vector<16x64xf32>
    %c0_13 = arith.constant 0 : index
    %c0_14 = arith.constant 0 : index
    %c0_15 = arith.constant 0 : index
    %35 = vector.load %arg4[%c0_13, %c0_14, %c0_15] : memref<1x16x64xf32, #tpu.memory_space<vmem>>, vector<1x16x64xf32>
    %36 = vector.shape_cast %35 : vector<1x16x64xf32> to vector<16x64xf32>
    %37 = vector.shape_cast %34 : vector<16x64xf32> to vector<1x16x64xf32>
    tpu.vector_store %arg4[%c0_13, %c0_14, %c0_15], %37 {strides = array<i32>} : memref<1x16x64xf32, #tpu.memory_space<vmem>>, vector<1x16x64xf32>,
    return
  }
  func.func @transform_0(%arg0: i32) -> (i32, i32, i32) {
    %c0_i32 = arith.constant 0 : i32
    %c0_i32_0 = arith.constant 0 : i32
    %c0_i32_1 = arith.constant 0 : i32
    return %arg0, %c0_i32, %c0_i32_0 : i32, i32, i32
  }
  func.func @transform_1(%arg0: i32) -> (i32, i32) {
    %c0_i32 = arith.constant 0 : i32
    %c0_i32_0 = arith.constant 0 : i32
    %c0_i32_1 = arith.constant 0 : i32
    return %c0_i32, %c0_i32_0 : i32, i32
  }
  func.func @transform_2(%arg0: i32) -> (i32, i32) {
    %c0_i32 = arith.constant 0 : i32
    %c0_i32_0 = arith.constant 0 : i32
    %c0_i32_1 = arith.constant 0 : i32
    return %c0_i32, %c0_i32_0 : i32, i32
  }
  func.func @transform_3(%arg0: i32) -> (i32, i32, i32) {
    %c0_i32 = arith.constant 0 : i32
    %c0_i32_0 = arith.constant 0 : i32
    %c0_i32_1 = arith.constant 0 : i32
    return %arg0, %c0_i32, %c0_i32_0 : i32, i32, i32
  }
}

module attributes {stable_mosaic.version = 11 : i64} {
  func.func @_linear_kernel(%arg0: i32, %arg1: memref<32x64xf32, #tpu.memory_space<vmem>>, %arg2: memref<64x10xbf16, #tpu.memory_space<vmem>>, %arg3: memref<1x10xf32, #tpu.memory_space<vmem>>, %arg4: memref<32x10xf32, #tpu.memory_space<vmem>>) attributes {dimension_semantics = [#tpu.dimension_semantics<parallel>], iteration_bounds = array<i64: 2>, scalar_prefetch = 0 : i64, scratch_operands = 0 : i64, tpu.core_type = #tpu.core_type<tc>, window_params = [{transform_indices = @transform_0, window_bounds = array<i64: 32, 64>}, {pipeline_mode = #tpu.pipeline_mode<synchronous>, transform_indices = @transform_1, window_bounds = array<i64: 64, 10>}, {pipeline_mode = #tpu.pipeline_mode<synchronous>, transform_indices = @transform_2, window_bounds = array<i64: 1, 10>}, {transform_indices = @transform_3, window_bounds = array<i64: 32, 10>}]} {
    %c0 = arith.constant 0 : index
    %c0_0 = arith.constant 0 : index
    %0 = vector.load %arg1[%c0, %c0_0] : memref<32x64xf32, #tpu.memory_space<vmem>>, vector<32x64xf32>
    %1 = arith.truncf %0 : vector<32x64xf32> to vector<32x64xbf16>
    %c0_1 = arith.constant 0 : index
    %c0_2 = arith.constant 0 : index
    %2 = vector.load %arg2[%c0_1, %c0_2] : memref<64x10xbf16, #tpu.memory_space<vmem>>, vector<64x10xbf16>
    %cst = arith.constant dense<0.000000e+00> : vector<32x10xf32>
    %3 = tpu.matmul %1, %2, %cst {dimension_numbers = #tpu.dot_dimension_numbers<[1], [0], [0], [1], [0, 0, 1, 1], [], []>} : vector<32x64xbf16>, vector<64x10xbf16>, vector<32x10xf32> -> vector<32x10xf32>
    %c0_3 = arith.constant 0 : index
    %c0_4 = arith.constant 0 : index
    %4 = vector.load %arg3[%c0_3, %c0_4] : memref<1x10xf32, #tpu.memory_space<vmem>>, vector<1x10xf32>
    %5 = vector.broadcast %4 : vector<1x10xf32> to vector<32x10xf32>
    %6 = arith.addf %3, %5 : vector<32x10xf32>
    %c0_5 = arith.constant 0 : index
    %c0_6 = arith.constant 0 : index
    %7 = vector.load %arg4[%c0_5, %c0_6] : memref<32x10xf32, #tpu.memory_space<vmem>>, vector<32x10xf32>
    tpu.vector_store %arg4[%c0_5, %c0_6], %6 {strides = array<i32>} : memref<32x10xf32, #tpu.memory_space<vmem>>, vector<32x10xf32>,
    return
  }
  func.func @transform_0(%arg0: i32) -> (i32, i32) {
    %c0_i32 = arith.constant 0 : i32
    %c0_i32_0 = arith.constant 0 : i32
    return %arg0, %c0_i32 : i32, i32
  }
  func.func @transform_1(%arg0: i32) -> (i32, i32) {
    %c0_i32 = arith.constant 0 : i32
    %c0_i32_0 = arith.constant 0 : i32
    %c0_i32_1 = arith.constant 0 : i32
    return %c0_i32, %c0_i32_0 : i32, i32
  }
  func.func @transform_2(%arg0: i32) -> (i32, i32) {
    %c0_i32 = arith.constant 0 : i32
    %c0_i32_0 = arith.constant 0 : i32
    %c0_i32_1 = arith.constant 0 : i32
    return %c0_i32, %c0_i32_0 : i32, i32
  }
  func.func @transform_3(%arg0: i32) -> (i32, i32) {
    %c0_i32 = arith.constant 0 : i32
    %c0_i32_0 = arith.constant 0 : i32
    return %arg0, %c0_i32 : i32, i32
  }
}

module attributes {stable_mosaic.version = 11 : i64} {
  func.func @_linear_kernel(%arg0: i32, %arg1: memref<32x32xf32, #tpu.memory_space<vmem>>, %arg2: memref<32x128xbf16, #tpu.memory_space<vmem>>, %arg3: memref<1x128xf32, #tpu.memory_space<vmem>>, %arg4: memref<32x128xf32, #tpu.memory_space<vmem>>) attributes {dimension_semantics = [#tpu.dimension_semantics<parallel>], iteration_bounds = array<i64: 2>, scalar_prefetch = 0 : i64, scratch_operands = 0 : i64, tpu.core_type = #tpu.core_type<tc>, window_params = [{transform_indices = @transform_0, window_bounds = array<i64: 32, 32>}, {pipeline_mode = #tpu.pipeline_mode<synchronous>, transform_indices = @transform_1, window_bounds = array<i64: 32, 128>}, {pipeline_mode = #tpu.pipeline_mode<synchronous>, transform_indices = @transform_2, window_bounds = array<i64: 1, 128>}, {transform_indices = @transform_3, window_bounds = array<i64: 32, 128>}]} {
    %c0 = arith.constant 0 : index
    %c0_0 = arith.constant 0 : index
    %0 = vector.load %arg1[%c0, %c0_0] : memref<32x32xf32, #tpu.memory_space<vmem>>, vector<32x32xf32>
    %1 = arith.truncf %0 : vector<32x32xf32> to vector<32x32xbf16>
    %c0_1 = arith.constant 0 : index
    %c0_2 = arith.constant 0 : index
    %2 = vector.load %arg2[%c0_1, %c0_2] : memref<32x128xbf16, #tpu.memory_space<vmem>>, vector<32x128xbf16>
    %cst = arith.constant dense<0.000000e+00> : vector<32x128xf32>
    %3 = tpu.matmul %1, %2, %cst {dimension_numbers = #tpu.dot_dimension_numbers<[1], [0], [0], [1], [0, 0, 1, 1], [], []>} : vector<32x32xbf16>, vector<32x128xbf16>, vector<32x128xf32> -> vector<32x128xf32>
    %c0_3 = arith.constant 0 : index
    %c0_4 = arith.constant 0 : index
    %4 = vector.load %arg3[%c0_3, %c0_4] : memref<1x128xf32, #tpu.memory_space<vmem>>, vector<1x128xf32>
    %5 = vector.broadcast %4 : vector<1x128xf32> to vector<32x128xf32>
    %6 = arith.addf %3, %5 : vector<32x128xf32>
    %c0_5 = arith.constant 0 : index
    %c0_6 = arith.constant 0 : index
    %7 = vector.load %arg4[%c0_5, %c0_6] : memref<32x128xf32, #tpu.memory_space<vmem>>, vector<32x128xf32>
    tpu.vector_store %arg4[%c0_5, %c0_6], %6 {strides = array<i32>} : memref<32x128xf32, #tpu.memory_space<vmem>>, vector<32x128xf32>,
    return
  }
  func.func @transform_0(%arg0: i32) -> (i32, i32) {
    %c0_i32 = arith.constant 0 : i32
    %c0_i32_0 = arith.constant 0 : i32
    return %arg0, %c0_i32 : i32, i32
  }
  func.func @transform_1(%arg0: i32) -> (i32, i32) {
    %c0_i32 = arith.constant 0 : i32
    %c0_i32_0 = arith.constant 0 : i32
    %c0_i32_1 = arith.constant 0 : i32
    return %c0_i32, %c0_i32_0 : i32, i32
  }
  func.func @transform_2(%arg0: i32) -> (i32, i32) {
    %c0_i32 = arith.constant 0 : i32
    %c0_i32_0 = arith.constant 0 : i32
    %c0_i32_1 = arith.constant 0 : i32
    return %c0_i32, %c0_i32_0 : i32, i32
  }
  func.func @transform_3(%arg0: i32) -> (i32, i32) {
    %c0_i32 = arith.constant 0 : i32
    %c0_i32_0 = arith.constant 0 : i32
    return %arg0, %c0_i32 : i32, i32
  }
}

module attributes {stable_mosaic.version = 11 : i64} {
  func.func @_linear_kernel(%arg0: i32, %arg1: memref<32x2xf32, #tpu.memory_space<vmem>>, %arg2: memref<2x64xbf16, #tpu.memory_space<vmem>>, %arg3: memref<1x64xf32, #tpu.memory_space<vmem>>, %arg4: memref<32x64xf32, #tpu.memory_space<vmem>>) attributes {dimension_semantics = [#tpu.dimension_semantics<parallel>], iteration_bounds = array<i64: 2>, scalar_prefetch = 0 : i64, scratch_operands = 0 : i64, tpu.core_type = #tpu.core_type<tc>, window_params = [{transform_indices = @transform_0, window_bounds = array<i64: 32, 2>}, {pipeline_mode = #tpu.pipeline_mode<synchronous>, transform_indices = @transform_1, window_bounds = array<i64: 2, 64>}, {pipeline_mode = #tpu.pipeline_mode<synchronous>, transform_indices = @transform_2, window_bounds = array<i64: 1, 64>}, {transform_indices = @transform_3, window_bounds = array<i64: 32, 64>}]} {
    %c0 = arith.constant 0 : index
    %c0_0 = arith.constant 0 : index
    %0 = vector.load %arg1[%c0, %c0_0] : memref<32x2xf32, #tpu.memory_space<vmem>>, vector<32x2xf32>
    %1 = arith.truncf %0 : vector<32x2xf32> to vector<32x2xbf16>
    %c0_1 = arith.constant 0 : index
    %c0_2 = arith.constant 0 : index
    %2 = vector.load %arg2[%c0_1, %c0_2] : memref<2x64xbf16, #tpu.memory_space<vmem>>, vector<2x64xbf16>
    %cst = arith.constant dense<0.000000e+00> : vector<32x64xf32>
    %3 = tpu.matmul %1, %2, %cst {dimension_numbers = #tpu.dot_dimension_numbers<[1], [0], [0], [1], [0, 0, 1, 1], [], []>} : vector<32x2xbf16>, vector<2x64xbf16>, vector<32x64xf32> -> vector<32x64xf32>
    %c0_3 = arith.constant 0 : index
    %c0_4 = arith.constant 0 : index
    %4 = vector.load %arg3[%c0_3, %c0_4] : memref<1x64xf32, #tpu.memory_space<vmem>>, vector<1x64xf32>
    %5 = vector.broadcast %4 : vector<1x64xf32> to vector<32x64xf32>
    %6 = arith.addf %3, %5 : vector<32x64xf32>
    %c0_5 = arith.constant 0 : index
    %c0_6 = arith.constant 0 : index
    %7 = vector.load %arg4[%c0_5, %c0_6] : memref<32x64xf32, #tpu.memory_space<vmem>>, vector<32x64xf32>
    tpu.vector_store %arg4[%c0_5, %c0_6], %6 {strides = array<i32>} : memref<32x64xf32, #tpu.memory_space<vmem>>, vector<32x64xf32>,
    return
  }
  func.func @transform_0(%arg0: i32) -> (i32, i32) {
    %c0_i32 = arith.constant 0 : i32
    %c0_i32_0 = arith.constant 0 : i32
    return %arg0, %c0_i32 : i32, i32
  }
  func.func @transform_1(%arg0: i32) -> (i32, i32) {
    %c0_i32 = arith.constant 0 : i32
    %c0_i32_0 = arith.constant 0 : i32
    %c0_i32_1 = arith.constant 0 : i32
    return %c0_i32, %c0_i32_0 : i32, i32
  }
  func.func @transform_2(%arg0: i32) -> (i32, i32) {
    %c0_i32 = arith.constant 0 : i32
    %c0_i32_0 = arith.constant 0 : i32
    %c0_i32_1 = arith.constant 0 : i32
    return %c0_i32, %c0_i32_0 : i32, i32
  }
  func.func @transform_3(%arg0: i32) -> (i32, i32) {
    %c0_i32 = arith.constant 0 : i32
    %c0_i32_0 = arith.constant 0 : i32
    return %arg0, %c0_i32 : i32, i32
  }
}

module attributes {stable_mosaic.version = 11 : i64} {
  func.func @_linear_kernel(%arg0: i32, %arg1: memref<32x64xf32, #tpu.memory_space<vmem>>, %arg2: memref<64x32xbf16, #tpu.memory_space<vmem>>, %arg3: memref<1x32xf32, #tpu.memory_space<vmem>>, %arg4: memref<32x32xf32, #tpu.memory_space<vmem>>) attributes {dimension_semantics = [#tpu.dimension_semantics<parallel>], iteration_bounds = array<i64: 2>, scalar_prefetch = 0 : i64, scratch_operands = 0 : i64, tpu.core_type = #tpu.core_type<tc>, window_params = [{transform_indices = @transform_0, window_bounds = array<i64: 32, 64>}, {pipeline_mode = #tpu.pipeline_mode<synchronous>, transform_indices = @transform_1, window_bounds = array<i64: 64, 32>}, {pipeline_mode = #tpu.pipeline_mode<synchronous>, transform_indices = @transform_2, window_bounds = array<i64: 1, 32>}, {transform_indices = @transform_3, window_bounds = array<i64: 32, 32>}]} {
    %c0 = arith.constant 0 : index
    %c0_0 = arith.constant 0 : index
    %0 = vector.load %arg1[%c0, %c0_0] : memref<32x64xf32, #tpu.memory_space<vmem>>, vector<32x64xf32>
    %1 = arith.truncf %0 : vector<32x64xf32> to vector<32x64xbf16>
    %c0_1 = arith.constant 0 : index
    %c0_2 = arith.constant 0 : index
    %2 = vector.load %arg2[%c0_1, %c0_2] : memref<64x32xbf16, #tpu.memory_space<vmem>>, vector<64x32xbf16>
    %cst = arith.constant dense<0.000000e+00> : vector<32x32xf32>
    %3 = tpu.matmul %1, %2, %cst {dimension_numbers = #tpu.dot_dimension_numbers<[1], [0], [0], [1], [0, 0, 1, 1], [], []>} : vector<32x64xbf16>, vector<64x32xbf16>, vector<32x32xf32> -> vector<32x32xf32>
    %c0_3 = arith.constant 0 : index
    %c0_4 = arith.constant 0 : index
    %4 = vector.load %arg3[%c0_3, %c0_4] : memref<1x32xf32, #tpu.memory_space<vmem>>, vector<1x32xf32>
    %5 = vector.broadcast %4 : vector<1x32xf32> to vector<32x32xf32>
    %6 = arith.addf %3, %5 : vector<32x32xf32>
    %c0_5 = arith.constant 0 : index
    %c0_6 = arith.constant 0 : index
    %7 = vector.load %arg4[%c0_5, %c0_6] : memref<32x32xf32, #tpu.memory_space<vmem>>, vector<32x32xf32>
    tpu.vector_store %arg4[%c0_5, %c0_6], %6 {strides = array<i32>} : memref<32x32xf32, #tpu.memory_space<vmem>>, vector<32x32xf32>,
    return
  }
  func.func @transform_0(%arg0: i32) -> (i32, i32) {
    %c0_i32 = arith.constant 0 : i32
    %c0_i32_0 = arith.constant 0 : i32
    return %arg0, %c0_i32 : i32, i32
  }
  func.func @transform_1(%arg0: i32) -> (i32, i32) {
    %c0_i32 = arith.constant 0 : i32
    %c0_i32_0 = arith.constant 0 : i32
    %c0_i32_1 = arith.constant 0 : i32
    return %c0_i32, %c0_i32_0 : i32, i32
  }
  func.func @transform_2(%arg0: i32) -> (i32, i32) {
    %c0_i32 = arith.constant 0 : i32
    %c0_i32_0 = arith.constant 0 : i32
    %c0_i32_1 = arith.constant 0 : i32
    return %c0_i32, %c0_i32_0 : i32, i32
  }
  func.func @transform_3(%arg0: i32) -> (i32, i32) {
    %c0_i32 = arith.constant 0 : i32
    %c0_i32_0 = arith.constant 0 : i32
    return %arg0, %c0_i32 : i32, i32
  }
}

module attributes {stable_mosaic.version = 11 : i64} {
  func.func @_ssm_scan_kernel(%arg0: i32, %arg1: memref<1x16x64xf32, #tpu.memory_space<vmem>>, %arg2: memref<1x16x64xf32, #tpu.memory_space<vmem>>, %arg3: memref<1x16x4xf32, #tpu.memory_space<vmem>>, %arg4: memref<1x16x4xf32, #tpu.memory_space<vmem>>, %arg5: memref<1x16x64xf32, #tpu.memory_space<vmem>>, %arg6: memref<4x64xf32, #tpu.memory_space<vmem>>, %arg7: memref<1x64xf32, #tpu.memory_space<vmem>>, %arg8: memref<1x16x64xf32, #tpu.memory_space<vmem>>, %arg9: memref<16x4x64xf32, #tpu.memory_space<vmem>>, %arg10: memref<16x4x64xf32, #tpu.memory_space<vmem>>, %arg11: memref<16x4x64xf32, #tpu.memory_space<vmem>>) attributes {dimension_semantics = [#tpu.dimension_semantics<parallel>], iteration_bounds = array<i64: 4>, scalar_prefetch = 0 : i64, scratch_operands = 3 : i64, tpu.core_type = #tpu.core_type<tc>, window_params = [{transform_indices = @transform_0, window_bounds = array<i64: 1, 16, 64>}, {transform_indices = @transform_1, window_bounds = array<i64: 1, 16, 64>}, {transform_indices = @transform_2, window_bounds = array<i64: 1, 16, 4>}, {transform_indices = @transform_3, window_bounds = array<i64: 1, 16, 4>}, {transform_indices = @transform_4, window_bounds = array<i64: 1, 16, 64>}, {pipeline_mode = #tpu.pipeline_mode<synchronous>, transform_indices = @transform_5, window_bounds = array<i64: 4, 64>}, {pipeline_mode = #tpu.pipeline_mode<synchronous>, transform_indices = @transform_6, window_bounds = array<i64: 1, 64>}, {transform_indices = @transform_7, window_bounds = array<i64: 1, 16, 64>}]} {
    %c0 = arith.constant 0 : index
    %c0_0 = arith.constant 0 : index
    %c0_1 = arith.constant 0 : index
    %0 = vector.load %arg1[%c0, %c0_0, %c0_1] : memref<1x16x64xf32, #tpu.memory_space<vmem>>, vector<1x16x64xf32>
    %1 = vector.shape_cast %0 : vector<1x16x64xf32> to vector<16x64xf32>
    %c0_2 = arith.constant 0 : index
    %c0_3 = arith.constant 0 : index
    %c0_4 = arith.constant 0 : index
    %2 = vector.load %arg2[%c0_2, %c0_3, %c0_4] : memref<1x16x64xf32, #tpu.memory_space<vmem>>, vector<1x16x64xf32>
    %3 = vector.shape_cast %2 : vector<1x16x64xf32> to vector<16x64xf32>
    %cst = arith.constant 0.000000e+00 : f32
    %4 = vector.broadcast %cst : f32 to vector<16x64xf32>
    %5 = arith.maximumf %3, %4 : vector<16x64xf32>
    %6 = math.absf %3 : vector<16x64xf32>
    %cst_5 = arith.constant 0.000000e+00 : f32
    %7 = vector.broadcast %cst_5 : f32 to vector<16x64xf32>
    %8 = arith.subf %7, %6 : vector<16x64xf32>
    %9 = math.exp %8 : vector<16x64xf32>
    %cst_6 = arith.constant 1.000000e+00 : f32
    %10 = vector.broadcast %cst_6 : f32 to vector<16x64xf32>
    %11 = arith.addf %10, %9 : vector<16x64xf32>
    %12 = math.log %11 : vector<16x64xf32>
    %13 = arith.addf %5, %12 : vector<16x64xf32>
    %c0_7 = arith.constant 0 : index
    %c0_8 = arith.constant 0 : index
    %c0_9 = arith.constant 0 : index
    %14 = vector.load %arg3[%c0_7, %c0_8, %c0_9] : memref<1x16x4xf32, #tpu.memory_space<vmem>>, vector<1x16x4xf32>
    %15 = vector.shape_cast %14 : vector<1x16x4xf32> to vector<16x4xf32>
    %c0_10 = arith.constant 0 : index
    %c0_11 = arith.constant 0 : index
    %c0_12 = arith.constant 0 : index
    %16 = vector.load %arg4[%c0_10, %c0_11, %c0_12] : memref<1x16x4xf32, #tpu.memory_space<vmem>>, vector<1x16x4xf32>
    %17 = vector.shape_cast %16 : vector<1x16x4xf32> to vector<16x4xf32>
    %c0_13 = arith.constant 0 : index
    %c0_14 = arith.constant 0 : index
    %18 = vector.load %arg6[%c0_13, %c0_14] : memref<4x64xf32, #tpu.memory_space<vmem>>, vector<4x64xf32>
    %19 = vector.shape_cast %13 : vector<16x64xf32> to vector<16x1x64xf32>
    %20 = vector.shape_cast %18 : vector<4x64xf32> to vector<1x4x64xf32>
    %21 = vector.broadcast %19 : vector<16x1x64xf32> to vector<16x4x64xf32>
    %22 = vector.broadcast %20 : vector<1x4x64xf32> to vector<16x4x64xf32>
    %23 = arith.mulf %21, %22 : vector<16x4x64xf32>
    %24 = math.exp %23 : vector<16x4x64xf32>
    %c0_15 = arith.constant 0 : index
    %c0_16 = arith.constant 0 : index
    %c0_17 = arith.constant 0 : index
    %25 = vector.load %arg9[%c0_15, %c0_16, %c0_17] : memref<16x4x64xf32, #tpu.memory_space<vmem>>, vector<16x4x64xf32>
    tpu.vector_store %arg9[%c0_15, %c0_16, %c0_17], %24 {strides = array<i32>} : memref<16x4x64xf32, #tpu.memory_space<vmem>>, vector<16x4x64xf32>,
    %26 = arith.mulf %13, %1 : vector<16x64xf32>
    %27 = vector.shape_cast %26 : vector<16x64xf32> to vector<16x1x64xf32>
    %28 = vector.shape_cast %15 : vector<16x4xf32> to vector<16x4x1xf32>
    %29 = vector.broadcast %27 : vector<16x1x64xf32> to vector<16x4x64xf32>
    %30 = vector.broadcast %28 : vector<16x4x1xf32> to vector<16x4x64xf32>
    %31 = arith.mulf %29, %30 : vector<16x4x64xf32>
    %c0_18 = arith.constant 0 : index
    %c0_19 = arith.constant 0 : index
    %c0_20 = arith.constant 0 : index
    %32 = vector.load %arg10[%c0_18, %c0_19, %c0_20] : memref<16x4x64xf32, #tpu.memory_space<vmem>>, vector<16x4x64xf32>
    tpu.vector_store %arg10[%c0_18, %c0_19, %c0_20], %31 {strides = array<i32>} : memref<16x4x64xf32, #tpu.memory_space<vmem>>, vector<16x4x64xf32>,
    %cst_21 = arith.constant 0.000000e+00 : f32
    %33 = vector.broadcast %cst_21 : f32 to vector<4x64xf32>
    %c0_i32 = arith.constant 0 : i32
    %c16_i32 = arith.constant 16 : i32
    %34 = arith.addi %c0_i32, %c16_i32 : i32
    %c1_i32 = arith.constant 1 : i32
    %35 = scf.for %arg12 = %c0_i32 to %34 step %c1_i32 iter_args(%arg13 = %33) -> (vector<4x64xf32>)  : i32 {
      %57 = arith.index_cast %arg12 : i32 to index
      %c0_37 = arith.constant 0 : index
      %c0_38 = arith.constant 0 : index
      %58 = vector.load %arg9[%57, %c0_37, %c0_38] : memref<16x4x64xf32, #tpu.memory_space<vmem>>, vector<1x4x64xf32>
      %59 = vector.shape_cast %58 : vector<1x4x64xf32> to vector<4x64xf32>
      %60 = arith.mulf %59, %arg13 : vector<4x64xf32>
      %61 = arith.index_cast %arg12 : i32 to index
      %c0_39 = arith.constant 0 : index
      %c0_40 = arith.constant 0 : index
      %62 = vector.load %arg10[%61, %c0_39, %c0_40] : memref<16x4x64xf32, #tpu.memory_space<vmem>>, vector<1x4x64xf32>
      %63 = vector.shape_cast %62 : vector<1x4x64xf32> to vector<4x64xf32>
      %64 = arith.addf %60, %63 : vector<4x64xf32>
      %65 = arith.index_cast %arg12 : i32 to index
      %c0_41 = arith.constant 0 : index
      %c0_42 = arith.constant 0 : index
      %66 = vector.load %arg11[%65, %c0_41, %c0_42] : memref<16x4x64xf32, #tpu.memory_space<vmem>>, vector<1x4x64xf32>
      %67 = vector.shape_cast %66 : vector<1x4x64xf32> to vector<4x64xf32>
      %68 = vector.shape_cast %64 : vector<4x64xf32> to vector<1x4x64xf32>
      tpu.vector_store %arg11[%65, %c0_41, %c0_42], %68 {strides = array<i32>} : memref<16x4x64xf32, #tpu.memory_space<vmem>>, vector<1x4x64xf32>,
      scf.yield %64 : vector<4x64xf32>
    }
    %c16_i32_22 = arith.constant 16 : i32
    %c0_23 = arith.constant 0 : index
    %c0_24 = arith.constant 0 : index
    %c0_25 = arith.constant 0 : index
    %36 = vector.load %arg11[%c0_23, %c0_24, %c0_25] : memref<16x4x64xf32, #tpu.memory_space<vmem>>, vector<16x4x64xf32>
    %37 = vector.shape_cast %17 : vector<16x4xf32> to vector<16x4x1xf32>
    %38 = vector.broadcast %37 : vector<16x4x1xf32> to vector<16x4x64xf32>
    %39 = arith.mulf %36, %38 : vector<16x4x64xf32>
    %cst_26 = arith.constant dense<0.000000e+00> : vector<16x64xf32>
    %40 = vector.multi_reduction <add>, %39, %cst_26 [1] : vector<16x4x64xf32> to vector<16x64xf32>
    %c0_27 = arith.constant 0 : index
    %c0_28 = arith.constant 0 : index
    %41 = vector.load %arg7[%c0_27, %c0_28] : memref<1x64xf32, #tpu.memory_space<vmem>>, vector<1x64xf32>
    %42 = vector.broadcast %41 : vector<1x64xf32> to vector<16x64xf32>
    %43 = arith.mulf %1, %42 : vector<16x64xf32>
    %44 = arith.addf %40, %43 : vector<16x64xf32>
    %c0_29 = arith.constant 0 : index
    %c0_30 = arith.constant 0 : index
    %c0_31 = arith.constant 0 : index
    %45 = vector.load %arg5[%c0_29, %c0_30, %c0_31] : memref<1x16x64xf32, #tpu.memory_space<vmem>>, vector<1x16x64xf32>
    %46 = vector.shape_cast %45 : vector<1x16x64xf32> to vector<16x64xf32>
    %cst_32 = arith.constant 0.000000e+00 : f32
    %47 = vector.broadcast %cst_32 : f32 to vector<16x64xf32>
    %48 = arith.subf %47, %46 : vector<16x64xf32>
    %49 = math.exp %48 : vector<16x64xf32>
    %cst_33 = arith.constant 1.000000e+00 : f32
    %50 = vector.broadcast %cst_33 : f32 to vector<16x64xf32>
    %51 = arith.addf %50, %49 : vector<16x64xf32>
    %52 = arith.divf %46, %51 : vector<16x64xf32>
    %53 = arith.mulf %44, %52 : vector<16x64xf32>
    %c0_34 = arith.constant 0 : index
    %c0_35 = arith.constant 0 : index
    %c0_36 = arith.constant 0 : index
    %54 = vector.load %arg8[%c0_34, %c0_35, %c0_36] : memref<1x16x64xf32, #tpu.memory_space<vmem>>, vector<1x16x64xf32>
    %55 = vector.shape_cast %54 : vector<1x16x64xf32> to vector<16x64xf32>
    %56 = vector.shape_cast %53 : vector<16x64xf32> to vector<1x16x64xf32>
    tpu.vector_store %arg8[%c0_34, %c0_35, %c0_36], %56 {strides = array<i32>} : memref<1x16x64xf32, #tpu.memory_space<vmem>>, vector<1x16x64xf32>,
    return
  }
  func.func @transform_0(%arg0: i32) -> (i32, i32, i32) {
    %c0_i32 = arith.constant 0 : i32
    %c0_i32_0 = arith.constant 0 : i32
    %c0_i32_1 = arith.constant 0 : i32
    return %arg0, %c0_i32, %c0_i32_0 : i32, i32, i32
  }
  func.func @transform_1(%arg0: i32) -> (i32, i32, i32) {
    %c0_i32 = arith.constant 0 : i32
    %c0_i32_0 = arith.constant 0 : i32
    %c0_i32_1 = arith.constant 0 : i32
    return %arg0, %c0_i32, %c0_i32_0 : i32, i32, i32
  }
  func.func @transform_2(%arg0: i32) -> (i32, i32, i32) {
    %c0_i32 = arith.constant 0 : i32
    %c0_i32_0 = arith.constant 0 : i32
    %c0_i32_1 = arith.constant 0 : i32
    return %arg0, %c0_i32, %c0_i32_0 : i32, i32, i32
  }
  func.func @transform_3(%arg0: i32) -> (i32, i32, i32) {
    %c0_i32 = arith.constant 0 : i32
    %c0_i32_0 = arith.constant 0 : i32
    %c0_i32_1 = arith.constant 0 : i32
    return %arg0, %c0_i32, %c0_i32_0 : i32, i32, i32
  }
  func.func @transform_4(%arg0: i32) -> (i32, i32, i32) {
    %c0_i32 = arith.constant 0 : i32
    %c0_i32_0 = arith.constant 0 : i32
    %c0_i32_1 = arith.constant 0 : i32
    return %arg0, %c0_i32, %c0_i32_0 : i32, i32, i32
  }
  func.func @transform_5(%arg0: i32) -> (i32, i32) {
    %c0_i32 = arith.constant 0 : i32
    %c0_i32_0 = arith.constant 0 : i32
    %c0_i32_1 = arith.constant 0 : i32
    return %c0_i32, %c0_i32_0 : i32, i32
  }
  func.func @transform_6(%arg0: i32) -> (i32, i32) {
    %c0_i32 = arith.constant 0 : i32
    %c0_i32_0 = arith.constant 0 : i32
    %c0_i32_1 = arith.constant 0 : i32
    return %c0_i32, %c0_i32_0 : i32, i32
  }
  func.func @transform_7(%arg0: i32) -> (i32, i32, i32) {
    %c0_i32 = arith.constant 0 : i32
    %c0_i32_0 = arith.constant 0 : i32
    %c0_i32_1 = arith.constant 0 : i32
    return %arg0, %c0_i32, %c0_i32_0 : i32, i32, i32
  }
}

</mosaic_0001>

<bundles_post_ra>
// kernel: tile.33
= control target key start
LH: loop header
LB: loop body
LE: loop exit
PB: predicated region body
PF: predicated region fallthrough
CT: control target
= control target key end

     0   :  { %s22_s0 = inlined_call_operand.vmem [shape: f32[32], index: 0, kind: input, shape index: {}]   ;;  %s23_s1 = inlined_call_operand.vmem [shape: f32[4,32], index: 1, kind: output, shape index: {}]  }
   0x1   :  { %v4_v0 = vld [vmem:[%s22_s0] ss:$0 sm:$0xff] }
   0x2   :  { %5 = vst [vmem:[%s23_s1] sm:$0xf] %v4_v0 }

// kernel: tile.34
= control target key start
LH: loop header
LB: loop body
LE: loop exit
PB: predicated region body
PF: predicated region fallthrough
CT: control target
= control target key end

     0   :  { %vm7_vm0 = vcmask 261120   ;;  %s37_s8 = smov 32   ;;  %s38_s9 = smov 64   ;;  %vm13_vm1 = vcmask 1048320   ;;  %vm19_vm2 = vcmask 785920   ;;  %vm25_vm3 = vcmask 523520   ;;  %s55_s0 = inlined_call_operand.vmem [shape: f32[4,32], index: 0, kind: input, shape index: {}]   ;;  %s56_s1 = inlined_call_operand.vmem [shape: f32[1,128], index: 1, kind: output, shape index: {}]  }
   0x1   :  { %v4_v0 = vld [vmem:[%s55_s0] sm:$0xf]  ;;  %s36_s0 = smov 96  }
   0x2   :  { %5 = vst [vmem:[#allocation1] sm:$0xf] %v4_v0 }
   0x9   :  { %v10_v1 = vld [vmem:[#allocation1 + $0x3] sm:$0x1]   ;;  %v22_v2 = vld [vmem:[#allocation1 + $0x1] sm:$0x1]   ;;  %v6_v3 = vld [vmem:[#allocation1] sm:$0x1]  }
   0xa   :  { %11 = vrot.lane.b32.xlu0 %v10_v1, %s36_s0  ;;  %23 = vrot.lane.b32.xlu1 %v22_v2, %s37_s8  ;;  %v16_v4 = vld [vmem:[#allocation1 + $0x2] sm:$0x1]   ;;  %8 = vst.msk [vmem:[#allocation0] sm:$0x1] %vm7_vm0, %v6_v3  }
   0xe   :  { %17 = vrot.lane.b32.xlu0 %v16_v4, %s38_s9 }
  0x7c   :  { %v12_v5 = vpop.permute.xlu0 %11   ;;  %v24_v6 = vpop.permute.xlu1 %23  }
  0x7d   :  { %14 = vst.msk [vmem:[#allocation0] sm:$0x1] %vm13_vm1, %v12_v5  }
  0x80   :  { %v18_v7 = vpop.permute.xlu0 %17  }
  0x81   :  { %20 = vst.msk [vmem:[#allocation0] sm:$0x1] %vm19_vm2, %v18_v7  }
  0x82   :  { %26 = vst.msk [vmem:[#allocation0] sm:$0x1] %vm25_vm3, %v24_v6  }
  0x89   :  { %v30_v8 = vld [vmem:[#allocation0] sm:$0x1] }
  0x8a   :  { %32 = vst [vmem:[%s56_s1] sm:$0x1] %v30_v8 }

// kernel: encoder_am_forward.15
= control target key start
LH: loop header
LB: loop body
LE: loop exit
PB: predicated region body
PF: predicated region fallthrough
CT: control target
= control target key end

     0   :  { %s365_s15 = smov 0   ;;  %s403_s0 = inlined_call_operand.vmem [shape: f32[16,128], index: 0, kind: input, shape index: {}]   ;;  %s404_s1 = inlined_call_operand.vmem [shape: f32[16,128], index: 1, kind: input, shape index: {}]   ;;  %s405_s2 = inlined_call_operand.vmem [shape: f32[16,128], index: 2, kind: output, shape index: {0}]   ;;  %s406_s3 = inlined_call_operand.vmem [shape: f32[1,128], index: 3, kind: output, shape index: {1}]   ;;  %s407_s4 = inlined_call_operand.vmem [shape: f32[1,128], index: 4, kind: output, shape index: {2}]  }
   0x1 LB: > { %s311_s16 = sadd.s32 4294967295, %s337_s15   ;;  %p315_p0 = scmp.ge.s32.totalorder %s337_s15, 1  ;;  %s337_s15 = sphi %s365_s15, %s15_s15  }
   0x2   : > { %p165_p1 = scmp.lt.s32.totalorder %s337_s15, 3 }
   0x4   : > { %p166_p2 = pnand %p315_p0, %p165_p1 }
   0x5   : > { %p193_p3 = scmp.lt.s32.totalorder (!%p166_p2), %s311_s16, 1  ;;  %p319_p4 = scmp.ne.s32.totalorder (!%p166_p2), %s311_s16, 0 }
   0x6   : > { %169 = sbr.rel (%p166_p2) target bundleno = 42 (0x2a), region = 28 }
   0xd   : > { %s194_s17 = scalar_select %p193_p3, %s311_s16, 1 }
   0xe   : > { %208 = sbr.rel (%p319_p4) target bundleno = 21 (0x15), region = 32  ;;  %v339_v0 = vmov (!%p319_p4), 0.0  }
   0xf   : > { %s316_s18 = sshll.u32 %s194_s17, 3  ;;  %209 = vst [vmem:[%s406_s3] sm:$0x1] (!%p319_p4), %v339_v0  ;;  %210 = vst [vmem:[%s407_s4] sm:$0x1] (!%p319_p4), %v339_v0 }
  0x10   : > { %s196_s21 = scalar_lea.vmem %s403_s0, %s316_s18  ;;  %s200_s24 = scalar_lea.vmem %s404_s1, %s316_s18 }
  0x11   : > { %s204_s27 = scalar_lea.vmem %s405_s2, %s316_s18 }
  0x15 PF: > { %v211_v1 = vld [vmem:[%s196_s21] sm:$0xff] }
  0x16   : > { %v212_v2 = vld [vmem:[%s200_s24] sm:$0xff] }
  0x17   : > { %v213_v3 = vadd.f32 %v212_v2, %v211_v1  ;;  %v215_v14 = vld [vmem:[%s406_s3] sm:$0x1] }
  0x18   : > { %v224_v17 = vld [vmem:[%s407_s4] sm:$0x1] }
  0x19   : > { %214 = vst [vmem:[%s204_s27] sm:$0xff] %v213_v3  ;;  %v216_v4 = vrot.slane %v213_v3, 4  ;;  %v225_v5 = vmul.f32 %v213_v3, %v213_v3 }
  0x1b   : > { %v217_v6 = vadd.f32 %v216_v4, %v213_v3  ;;  %v226_v7 = vrot.slane %v225_v5, 4 }
  0x1d   : > { %v218_v8 = vrot.slane %v217_v6, 2  ;;  %v227_v9 = vadd.f32 %v226_v7, %v225_v5 }
  0x1f   : > { %v219_v10 = vadd.f32 %v218_v8, %v217_v6  ;;  %v228_v11 = vrot.slane %v227_v9, 2 }
  0x21   : > { %v220_v12 = vrot.slane %v219_v10, 1  ;;  %v229_v13 = vadd.f32 %v228_v11, %v227_v9 }
  0x23   : > { %v221_v15 = vadd.f32 %v220_v12, %v219_v10  ;;  %v230_v16 = vrot.slane %v229_v13, 1 }
  0x25   : > { %v222_v18 = vadd.f32 %v221_v15, %v215_v14  ;;  %v231_v19 = vadd.f32 %v230_v16, %v229_v13 }
  0x27   : > { %223 = vst [vmem:[%s406_s3] sm:$0x1] %v222_v18  ;;  %v232_v20 = vadd.f32 %v231_v19, %v224_v17 }
  0x29   : > { %233 = vst [vmem:[%s407_s4] sm:$0x1] %v232_v20 }
  0x2a PF: > { %s15_s15 = sadd.s32 1, %s337_s15  }
  0x2b   : > { %p12_p5 = scmp.ge.s32.totalorder %s15_s15, 4  }
  0x2d   :  { %14 = sbr.rel (!%p12_p5) target bundleno = 1 (0x1), region = 81 }

// kernel: encoder_am_forward.17
= control target key start
LH: loop header
LB: loop body
LE: loop exit
PB: predicated region body
PF: predicated region fallthrough
CT: control target
= control target key end

     0   :  { %s580_s15 = smov 0   ;;  %s631_s0 = inlined_call_operand.vmem [shape: f32[64,32], index: 0, kind: input, shape index: {}]   ;;  %s632_s1 = inlined_call_operand.vmem [shape: bf16[32,64], index: 1, kind: input, shape index: {}]   ;;  %s633_s2 = inlined_call_operand.vmem [shape: f32[1,64], index: 2, kind: input, shape index: {}]   ;;  %s634_s3 = inlined_call_operand.vmem [shape: bf16[64,32], index: 3, kind: input, shape index: {}]   ;;  %s635_s4 = inlined_call_operand.vmem [shape: f32[64,32], index: 4, kind: output, shape index: {}]  }
   0x1 LB: > { %s473_s16 = sadd.s32 4294967295, %s553_s15   ;;  %p477_p0 = scmp.ge.s32.totalorder %s553_s15, 1  ;;  %s553_s15 = sphi %s580_s15, %s14_s15  }
   0x2   : > { %p163_p1 = scmp.lt.s32.totalorder %s553_s15, 3 }
   0x4   : > { %p164_p2 = pnand %p477_p0, %p163_p1 }
   0x5   : > { %v533_v0 = vld [vmem:[%s632_s1] sm:$0xff] (!%p164_p2)   ;;  %s478_s19 = sshll.u32 (!%p164_p2), %s473_s16, 2  ;;  %v534_v1 = vld [vmem:[%s632_s1 + $0x8] sm:$0xff] (!%p164_p2)   ;;  %vm231_vm0 = vcmask (!%p164_p2), 261120   ;;  %v537_v10 = vld [vmem:[%s634_s3 + $0x10] sm:$0xff] (!%p164_p2)   ;;  %vm357_vm1 = vcmask (!%p164_p2), 523264  }
   0x6   : > { %167 = sbr.rel (%p164_p2) target bundleno = 483 (0x1e3), region = 36  ;;  %p190_p3 = scmp.lt.s32.totalorder (!%p164_p2), %s478_s19, 7  ;;  %505 = vmatprep.subr.bf16.mxu0 (!%p164_p2), %v533_v0  ;;  %v535_v8 = vld [vmem:[%s634_s3] sm:$0xff] (!%p164_p2)   ;;  %v536_v9 = vld [vmem:[%s634_s3 + $0x8] sm:$0xff] (!%p164_p2)   ;;  %v538_v11 = vld [vmem:[%s634_s3 + $0x18] sm:$0xff] (!%p164_p2)  }
   0x7   : > { %506 = vmatpush3.bf16.msra.mxu0 (!%p164_p2), %v533_v0  ;;  %513 = vmatprep.subr.bf16.mxu1 (!%p164_p2), %v535_v8  ;;  %v482_v12 = vld [vmem:[%s633_s2] ss:$0 sm:$0xff] (!%p164_p2) }
   0x8   : > { %507 = vmatprep.subr.bf16.mxu0 (!%p164_p2), %v534_v1  ;;  %514 = vmatpush3.bf16.msra.mxu1 (!%p164_p2), %v535_v8 }
   0x9   : > { %515 = vmatprep.subr.bf16.mxu1 (!%p164_p2), %v536_v9 }
   0xb   : > { %508 = vmatpush3.bf16.msra.mxu0 (!%p164_p2), %v534_v1 }
   0xc   : > { %516 = vmatpush3.bf16.msra.mxu1 (!%p164_p2), %v536_v9 }
   0xd   : > { %s637_s19 = smov (!%p190_p3, %s478_s19), 7  ;;  %517 = vmatprep.subr.bf16.mxu1 %v537_v10 }
   0xe   : > { %s479_s22 = sshll.u32 %s637_s19, 3 }
   0xf   : > { %s193_s25 = scalar_lea.vmem %s631_s0, %s479_s22  ;;  %s199_s12 = scalar_lea.vmem %s635_s4, %s479_s22 }
  0x10   : > { %v202_v2 = vld [vmem:[%s193_s25] sm:$0xff]  ;;  %v203_v3 = vld [vmem:[%s193_s25 + $0x8] sm:$0xff]  ;;  %v204_v4 = vld [vmem:[%s193_s25 + $0x10] sm:$0xff]  ;;  %518 = vmatpush3.bf16.msra.mxu1 %v537_v10 }
  0x11   : > { %v206_v5 = vpack.c.bf16 %v203_v3, %v202_v2  ;;  %v205_v6 = vld [vmem:[%s193_s25 + $0x18] sm:$0xff]  ;;  %519 = vmatprep.subr.bf16.mxu1 %v538_v11 }
  0x12   : > { %v207_v7 = vpack.c.bf16 %v205_v6, %v204_v4 }
  0x13   : > { %509 = vmatprep.mubr.msk.bf16.mxu0 %vm231_vm0, %v206_v5 }
  0x14   : > { %510 = vmatmul.mubr.msk.bf16.vlgmr.msra.gmra.mrb[0].mxu0 %vm231_vm0, %v207_v7  ;;  %520 = vmatpush3.bf16.msra.mxu1 %v538_v11 }
  0xe7   : > { %v511_v13 = vpop.f32.mrb[0].mxu0 }
  0xe8   : > { %v281_v14 = vadd.f32 %v511_v13, %v482_v12  ;;  %v272_v15 = vpop.f32.mrb[1].mxu0 }
  0xe9   : > { %v273_v16 = vadd.f32 %v482_v12, %v272_v15  ;;  %v512_v17 = vpop.f32.mrb[2].mxu0 }
  0xea   : > { %v289_v18 = vmul.f32 %v281_v14, %v281_v14  ;;  %v284_v19 = vadd.f32 %v512_v17, %v482_v12  ;;  %v275_v20 = vpop.f32.mrb[3].mxu0 }
  0xeb   : > { %v287_v21 = vmul.f32 %v273_v16, %v273_v16  ;;  %v276_v22 = vadd.f32 %v482_v12, %v275_v20 }
  0xec   : > { %v293_v23 = vmul.f32 %v289_v18, %v281_v14  ;;  %v290_v24 = vmul.f32 %v284_v19, %v284_v19 }
  0xed   : > { %v291_v25 = vmul.f32 %v287_v21, %v273_v16  ;;  %v288_v26 = vmul.f32 %v276_v22, %v276_v22 }
  0xee   : > { %v297_v27 = vmul.f32 0.044715, %v293_v23  ;;  %v294_v28 = vmul.f32 %v290_v24, %v284_v19 }
  0xef   : > { %v295_v29 = vmul.f32 0.044715, %v291_v25  ;;  %v292_v30 = vmul.f32 %v288_v26, %v276_v22 }
  0xf0   : > { %v301_v31 = vadd.f32 %v297_v27, %v281_v14  ;;  %v298_v32 = vmul.f32 0.044715, %v294_v28 }
  0xf1   : > { %v299_v33 = vadd.f32 %v295_v29, %v273_v16  ;;  %v296_v34 = vmul.f32 0.044715, %v292_v30 }
  0xf2   : > { %v305_v35 = vmul.f32 0.7978846, %v301_v31  ;;  %v302_v36 = vadd.f32 %v298_v32, %v284_v19 }
  0xf3   : > { %v303_v37 = vmul.f32 0.7978846, %v299_v33  ;;  %v300_v38 = vadd.f32 %v296_v34, %v276_v22 }
  0xf4   : > { %539 = vtanh.f32 %v305_v35  ;;  %v306_v39 = vmul.f32 0.7978846, %v302_v36 }
  0xf5   : > { %v304_v40 = vmul.f32 0.7978846, %v300_v38  ;;  %541 = vtanh.f32 %v303_v37 }
  0xf6   : > { %543 = vtanh.f32 %v306_v39 }
  0xf7   : > { %545 = vtanh.f32 %v304_v40 }
  0xfe   : > { %v540_v41 = vpop.eup %539 }
  0xff   : > { %v542_v42 = vpop.eup %541  ;;  %v313_v43 = vadd.f32 1.0, %v540_v41 }
 0x100   : > { %v544_v44 = vpop.eup %543  ;;  %v311_v45 = vadd.f32 1.0, %v542_v42 }
 0x101   : > { %v546_v46 = vpop.eup %545  ;;  %v317_v47 = vmul.f32 0.5, %v313_v43  ;;  %v314_v48 = vadd.f32 1.0, %v544_v44 }
 0x102   : > { %v312_v49 = vadd.f32 1.0, %v546_v46  ;;  %v315_v50 = vmul.f32 0.5, %v311_v45 }
 0x103   : > { %v318_v51 = vmul.f32 0.5, %v314_v48  ;;  %v321_v53 = vmul.f32 %v317_v47, %v281_v14 }
 0x104   : > { %v316_v52 = vmul.f32 0.5, %v312_v49  ;;  %v319_v55 = vmul.f32 %v315_v50, %v273_v16 }
 0x105   : > { %v322_v54 = vmul.f32 %v318_v51, %v284_v19 }
 0x106   : > { %v320_v56 = vmul.f32 %v316_v52, %v276_v22 }
 0x107   : > { %v324_v57 = vpack.c.bf16 %v322_v54, %v321_v53 }
 0x108   : > { %v323_v58 = vpack.c.bf16 %v320_v56, %v319_v55 }
 0x10a   : > { %521 = vmatprep.mubr.msk.bf16.mxu1 %vm357_vm1, %v323_v58 }
 0x10b   : > { %522 = vmatmul.mubr.msk.bf16.vlgmr.msra.gmra.mrb[0].mxu1 %vm357_vm1, %v324_v57 }
 0x1de   : > { %v523_v59 = vpop.f32.mrb[0].mxu1 }
 0x1df   : > { %v398_v60 = vpop.f32.mrb[1].mxu1  ;;  %415 = vst.msk [vmem:[%s199_s12 + $0x10] sm:$0xff] %vm231_vm0, %v523_v59 }
 0x1e0   : > { %413 = vst.msk [vmem:[%s199_s12] sm:$0xff] %vm231_vm0, %v398_v60  ;;  %v524_v61 = vpop.f32.mrb[2].mxu1 }
 0x1e1   : > { %v401_v62 = vpop.f32.mrb[3].mxu1  ;;  %416 = vst.msk [vmem:[%s199_s12 + $0x18] sm:$0xff] %vm231_vm0, %v524_v61 }
 0x1e2   : > { %414 = vst.msk [vmem:[%s199_s12 + $0x8] sm:$0xff] %vm231_vm0, %v401_v62 }
 0x1e3 PF: > { %s14_s15 = sadd.s32 1, %s553_s15  }
 0x1e4   : > { %p11_p4 = scmp.ge.s32.totalorder %s14_s15, 4  }
 0x1e6   :  { %13 = sbr.rel (!%p11_p4) target bundleno = 1 (0x1), region = 66 }

// kernel: encoder_am_forward.16
= control target key start
LH: loop header
LB: loop body
LE: loop exit
PB: predicated region body
PF: predicated region fallthrough
CT: control target
= control target key end

     0   :  { %s260_s12 = smov 0   ;;  %s296_s0 = inlined_call_operand.vmem [shape: f32[16,128], index: 0, kind: input, shape index: {}]   ;;  %s297_s1 = inlined_call_operand.vmem [shape: f32[1,128], index: 1, kind: input, shape index: {}]   ;;  %s298_s2 = inlined_call_operand.vmem [shape: f32[1,128], index: 2, kind: input, shape index: {}]   ;;  %s299_s3 = inlined_call_operand.vmem [shape: f32[16,128], index: 3, kind: output, shape index: {}]  }
   0x1 LB: > { %s237_s13 = sadd.s32 4294967295, %s262_s12   ;;  %p241_p0 = scmp.ge.s32.totalorder %s262_s12, 1  ;;  %s262_s12 = sphi %s260_s12, %s13_s12  }
   0x2   : > { %p136_p1 = scmp.lt.s32.totalorder %s262_s12, 3 }
   0x4   : > { %p137_p2 = pnand %p241_p0, %p136_p1 }
   0x5   : > { %p158_p3 = scmp.lt.s32.totalorder (!%p137_p2), %s237_s13, 1  ;;  %v244_v0 = vld [vmem:[%s297_s1] ss:$0 sm:$0xff] (!%p137_p2) }
   0x6   : > { %140 = sbr.rel (%p137_p2) target bundleno = 22 (0x16), region = 32  ;;  %v245_v2 = vld [vmem:[%s298_s2] ss:$0 sm:$0xff] (!%p137_p2) }
   0xd   : > { %s301_s13 = smov (!%p158_p3, %s237_s13), 1 }
   0xe   : > { %s242_s14 = sshll.u32 %s301_s13, 3 }
   0xf   : > { %s161_s19 = scalar_lea.vmem %s296_s0, %s242_s14  ;;  %s165_s24 = scalar_lea.vmem %s299_s3, %s242_s14 }
  0x10   : > { %v166_v1 = vld [vmem:[%s161_s19] sm:$0xff] }
  0x11   : > { %v174_v3 = vmul.f32 %v244_v0, %v166_v1 }
  0x13   : > { %v182_v4 = vadd.f32 %v245_v2, %v174_v3 }
  0x15   : > { %183 = vst [vmem:[%s165_s24] sm:$0xff] %v182_v4 }
  0x16 PF: > { %s13_s12 = sadd.s32 1, %s262_s12  }
  0x17   : > { %p10_p4 = scmp.ge.s32.totalorder %s13_s12, 4  }
  0x19   :  { %12 = sbr.rel (!%p10_p4) target bundleno = 1 (0x1), region = 62 }

// kernel: encoder_am_forward.14
= control target key start
LH: loop header
LB: loop body
LE: loop exit
PB: predicated region body
PF: predicated region fallthrough
CT: control target
= control target key end

     0   :  { %13 = vsyncpa [#allocation3], 0  ;;  %s1869_s0 = inlined_call_operand.vmem [shape: f32[4,16,32], index: 0, kind: input, shape index: {}]   ;;  %s1870_s1 = inlined_call_operand.vmem [shape: bf16[32,32], index: 1, kind: input, shape index: {}]   ;;  %s1871_s2 = inlined_call_operand.vmem [shape: f32[1,32], index: 2, kind: input, shape index: {}]   ;;  %s1872_s3 = inlined_call_operand.hbm [shape: bf16[32,32], index: 3, kind: input, shape index: {}]   ;;  %s1873_s4 = inlined_call_operand.vmem [shape: f32[1,32], index: 4, kind: input, shape index: {}]   ;;  %s1874_s5 = inlined_call_operand.hbm [shape: bf16[32,32], index: 5, kind: input, shape index: {}]   ;;  %s1875_s6 = inlined_call_operand.vmem [shape: f32[1,32], index: 6, kind: input, shape index: {}]   ;;  %s1876_s7 = inlined_call_operand.hbm [shape: bf16[32,32], index: 7, kind: input, shape index: {}]   ;;  %s1877_s8 = inlined_call_operand.vmem [shape: f32[4,16,32], index: 8, kind: output, shape index: {}]  }
   0x1   :  { %14 = vsyncpa [#allocation5], 0  ;;  %s1627_s27 = smov 0  }
   0x2 LB: > { %s1633_s28 = sadd.s32 4294967295, %s1567_s27   ;;  %p1217_p0 = scmp.ge.s32.totalorder %s1567_s27, 1  ;;  %s1567_s27 = sphi %s1627_s27, %s20_s27  }
   0x3   : > { %p224_p1 = scmp.lt.s32.totalorder %s1567_s27, 5  ;;  %p1878_p2 = scmp.eq.s32.totalorder %s1633_s28, 0 }
   0x4   : > { %s1569_s30 = smov [#allocation4]   ;;  %s1570_s10 = smov [#allocation2]  }
   0x5   : > { %p1638_p3 = pnand %p1217_p0, %p224_p1  ;;  %s258_s9 = sshll.u32 %s1569_s30, 4  ;;  %s259_s9 = int_to_ptr.vmem [resolvable:$true] %s258_s9 }
   0x6   : > { %s242_s11 = sshll.u32 %s1570_s10, 4  ;;  %s1571_s13 = smov [#allocation6]   ;;  %s1650_s11 = int_to_ptr.vmem [resolvable:$true] %s242_s11 }
   0x7   : > { %s1880_s29 = scalar_select %p1638_p3, 1, 0 }
   0x8   : > { %p1377_p4 = pneg %p1638_p3  ;;  %s274_s14 = sshll.u32 %s1571_s13, 4  ;;  %s1652_s14 = int_to_ptr.vmem [resolvable:$true] %s274_s14 }
   0x9   : > { %s1469_s17 = scalar_lea.hbm %s1874_s5, 256 }
   0xa   : > { %p1646_p5 = pnand %p1878_p2, %p1377_p4  ;;  %p1470_p6 = scmp.ne.s32.totalorder %s1874_s5, %s1469_s17 }
   0xb   : > { %p1476_p10 = scmp.lt.u32.totalorder %s1469_s17, %s1874_s5 }
   0xc   : > { %p1662_p7 = pneg %p1646_p5 }
   0xe   : > { %p1472_p8 = pnand %p1662_p7, %p1470_p6 }
  0x10   : > { %p1473_p9 = pneg %p1472_p8 }
  0x12   : > { %p1478_p11 = pnand %p1476_p10, %p1473_p9 }
  0x14   : > { %1481 = shalt.err (!%p1478_p11)
}
  0x15   : > { %s1482_s23 = scalar_lea.vmem %s259_s9, 256  ;;  %p1490_p1 = scmp.lt.s32.totalorder %s259_s9, %s259_s9 }
  0x16   : > { %p1483_p12 = scmp.ne.s32.totalorder %s259_s9, %s1482_s23  ;;  %p1491_p4 = scmp.lt.s32.totalorder %s1482_s23, %s1482_s23 }
  0x18   : > { %p1485_p13 = pnand %p1483_p12, %p1662_p7  ;;  %p1492_p2 = por %p1491_p4, %p1490_p1 }
  0x1a   : > { %p1486_p0 = pneg %p1485_p13 }
  0x1c   : > { %p1493_p3 = pnand %p1492_p2, %p1486_p0 }
  0x1e   : > { %1496 = shalt.err (!%p1493_p3)
}
  0x1f   : > { %s1572_s24 = smov 64   ;;  %s1573_s25 = smov 4  }
  0x20   : > { %1383 = dma.hbm_to_vmem [thread:$0]  (!%p1646_p5), %s1874_s5, 256, %s259_s9, [#allocation5], %s1572_s24, %s1572_s24, %s1573_s25  }
  0x21   : > { %s1497_s15 = scalar_lea.hbm %s1872_s3, 256 }
  0x22   : > { %p1498_p2 = scmp.ne.s32.totalorder %s1872_s3, %s1497_s15  ;;  %p1504_p8 = scmp.lt.u32.totalorder %s1497_s15, %s1872_s3 }
  0x24   : > { %p1500_p3 = pnand %p1498_p2, %p1662_p7 }
  0x26   : > { %p1501_p6 = pneg %p1500_p3 }
  0x28   : > { %p1506_p9 = pnand %p1504_p8, %p1501_p6 }
  0x2a   : > { %1509 = shalt.err (!%p1506_p9)
}
  0x2b   : > { %s1510_s9 = scalar_lea.vmem %s1650_s11, 256  ;;  %p1518_p13 = scmp.lt.s32.totalorder %s1650_s11, %s1650_s11 }
  0x2c   : > { %p1511_p10 = scmp.ne.s32.totalorder %s1650_s11, %s1510_s9  ;;  %p1519_p0 = scmp.lt.s32.totalorder %s1510_s9, %s1510_s9 }
  0x2e   : > { %p1513_p11 = pnand %p1511_p10, %p1662_p7  ;;  %p1520_p1 = por %p1519_p0, %p1518_p13 }
  0x30   : > { %p1514_p12 = pneg %p1513_p11 }
  0x32   : > { %p1521_p4 = pnand %p1520_p1, %p1514_p12 }
  0x34   : > { %1524 = shalt.err (!%p1521_p4)
}
  0x35   : > { %1380 = dma.hbm_to_vmem [thread:$0]  (!%p1646_p5), %s1872_s3, 256, %s1650_s11, [#allocation3], %s1572_s24, %s1572_s24, %s1573_s25  }
  0x36   : > { %s1525_s30 = scalar_lea.hbm %s1876_s7, 256 }
  0x37   : > { %p1526_p2 = scmp.ne.s32.totalorder %s1876_s7, %s1525_s30  ;;  %p1532_p8 = scmp.lt.u32.totalorder %s1525_s30, %s1876_s7 }
  0x39   : > { %p1528_p3 = pnand %p1526_p2, %p1662_p7 }
  0x3b   : > { %p1529_p6 = pneg %p1528_p3 }
  0x3d   : > { %p1534_p9 = pnand %p1532_p8, %p1529_p6 }
  0x3f   : > { %1537 = shalt.err (!%p1534_p9)
}
  0x40   : > { %s1538_s11 = scalar_lea.vmem %s1652_s14, 256  ;;  %p1546_p13 = scmp.lt.s32.totalorder %s1652_s14, %s1652_s14 }
  0x41   : > { %p1539_p10 = scmp.ne.s32.totalorder %s1652_s14, %s1538_s11  ;;  %p1547_p0 = scmp.lt.s32.totalorder %s1538_s11, %s1538_s11 }
  0x43   : > { %p1541_p11 = pnand %p1539_p10, %p1662_p7  ;;  %p1548_p1 = por %p1547_p0, %p1546_p13 }
  0x45   : > { %p1542_p12 = pneg %p1541_p11 }
  0x47   : > { %p1549_p4 = pnand %p1548_p1, %p1542_p12 }
  0x49   : > { %1552 = shalt.err (!%p1549_p4)
}
  0x4a   : > { %1386 = dma.hbm_to_vmem [thread:$0]  (!%p1646_p5), %s1876_s7, 256, %s1652_s14, [#allocation5], %s1572_s24, %s1572_s24, %s1573_s25  }
  0x4b   : > { %p1883_p2 = scmp.ne.s32.totalorder %s1880_s29, 0 }
  0x4c   : > { %p1884_p7 = scmp.eq.s32.totalorder (!%p1883_p2), %s1633_s28, 0 }
  0x4d   : > { %298 = sbr.rel (%p1883_p2) target bundleno = 1539 (0x603), region = 52 }
  0x54   : > { %1558 = dma.done.wait (%p1884_p7), [#allocation3], 256   ;;  %p1885_p3 = pmov %p1884_p7 }
  0x56   : > { %1560 = vsyncadd (%p1885_p3), [#allocation3], 4294967040  ;;  %p1886_p6 = pmov %p1885_p3 }
  0x57   : > { %p1887_p8 = pmov %p1885_p3 }
  0x58   : > { %1562 = dma.done.wait (%p1886_p6), [#allocation5], 512  }
  0x59   : > { %1564 = vsyncadd (%p1887_p8), [#allocation5], 4294966784  ;;  %p340_p9 = scmp.lt.s32.totalorder %s1633_s28, 3  ;;  %v1574_v0 = vmov 0.0   ;;  %vm1575_vm0 = vmmov 0   ;;  %v1429_v1 = vld [vmem:[#allocation2] sm:$0xff]  }
  0x5a   : > { %1293 = vmatprep.subr.bf16.mxu1 %v1574_v0  ;;  %1285 = vmatprep.subr.bf16.mxu0 %v1574_v0  ;;  %v1430_v2 = vld [vmem:[%s1870_s1] sm:$0xff]   ;;  %v1431_v3 = vld [vmem:[#allocation2 + $0x8] sm:$0xff]   ;;  %vm377_vm1 = vcmask 261120   ;;  %vm553_vm2 = vcmask 64512   ;;  %s1576_s30 = smov 112   ;;  %s1577_s10 = smov 120  }
  0x5b   : > { %1297 = vmatprep.mubr.msk.bf16.mxu1 %vm1575_vm0, %v1574_v0  ;;  %s1889_s28 = smov (!%p340_p9, %s1633_s28), 3  ;;  %1289 = vmatprep.mubr.msk.bf16.mxu0 %vm1575_vm0, %v1574_v0  ;;  %v1432_v6 = vld [vmem:[%s1870_s1 + $0x8] sm:$0xff]   ;;  %v1230_v8 = vld [vmem:[%s1871_s2] ss:$0 sm:$0xff]  ;;  %s1578_s13 = smov 104   ;;  %v1433_v25 = vld [vmem:[#allocation4] sm:$0xff]  }
  0x5c   : > { %s1255_s29 = sshll.u32 %s1889_s28, 4  ;;  %1294 = vmatpush3.bf16.msra.mxu1 %v1429_v1  ;;  %1286 = vmatpush3.bf16.msra.mxu0 %v1430_v2  ;;  %v1234_v9 = vld [vmem:[%s1873_s4] ss:$0 sm:$0xff]  ;;  %v1434_v26 = vld [vmem:[#allocation4 + $0x8] sm:$0xff]   ;;  %vm601_vm3 = vcmask 130048   ;;  %s1579_s11 = smov 8  }
  0x5d   : > { %s344_s20 = scalar_lea.vmem %s1869_s0, %s1255_s29  ;;  %1295 = vmatprep.subr.bf16.mxu1 %v1574_v0  ;;  %1287 = vmatprep.subr.bf16.mxu0 %v1574_v0  ;;  %v1238_v42 = vld [vmem:[%s1875_s6] ss:$0 sm:$0xff]  ;;  %s1580_s17 = smov 16   ;;  %vm1063_vm4 = vcmask 195584  }
  0x5e   : > { %v351_v4 = vld [vmem:[%s344_s20] sm:$0xff]  ;;  %v352_v5 = vld [vmem:[%s344_s20 + $0x8] sm:$0xff]  ;;  %s1581_s18 = smov 24   ;;  %s349_s20 = scalar_lea.vmem %s1877_s8, %s1255_s29 }
  0x5f   : > { %v353_v7 = vpack.c.bf16 %v352_v5, %v351_v4 }
  0x60   : > { %1296 = vmatpush3.bf16.msra.mxu1 %v1431_v3  ;;  %1288 = vmatpush3.bf16.msra.mxu0 %v1432_v6 }
  0x61   : > { %1309 = vmatprep.subr.bf16.mxu1 %v1574_v0  ;;  %1301 = vmatprep.subr.bf16.mxu0 %v1574_v0 }
  0x63   : > { %1298 = vmatmul.mubr.msk.bf16.vlgmr.msra.gmra.mrb[0].mxu1 %vm377_vm1, %v353_v7  ;;  %1290 = vmatmul.mubr.msk.bf16.vlgmr.msra.gmra.mrb[0].mxu0 %vm377_vm1, %v353_v7 }
  0x64   : > { %1311 = vmatprep.mubr.msk.bf16.mxu1 %vm1575_vm0, %v1574_v0  ;;  %1305 = vmatprep.mubr.msk.bf16.mxu0 %vm1575_vm0, %v1574_v0 }
  0x65   : > { %1302 = vmatpush3.bf16.msra.mxu0 %v1433_v25 }
  0x66   : > { %1303 = vmatprep.subr.bf16.mxu0 %v1574_v0 }
  0x69   : > { %1304 = vmatpush3.bf16.msra.mxu0 %v1434_v26 }
  0x6a   : > { %1315 = vmatprep.subr.bf16.mxu0 %v1574_v0 }
  0x6c   : > { %1306 = vmatmul.mubr.msk.bf16.vlgmr.msra.gmra.mrb[4].mxu0 %vm377_vm1, %v353_v7 }
  0x6d   : > { %1317 = vmatprep.mubr.msk.bf16.mxu0 %vm1575_vm0, %v1574_v0 }
 0x136   : > { %v479_v10 = vpop.f32.mrb[0].mxu1  ;;  %v415_v12 = vpop.f32.mrb[0].mxu0 }
 0x137   : > { %v1299_v11 = vpop.f32.mrb[1].mxu1  ;;  %v416_v14 = vadd.f32 %v1230_v8, %v415_v12  ;;  %v1291_v15 = vpop.f32.mrb[1].mxu0  ;;  %v480_v16 = vadd.f32 %v1234_v9, %v479_v10 }
 0x138   : > { %v482_v13 = vpop.f32.mrb[2].mxu1  ;;  %v418_v19 = vpop.f32.mrb[2].mxu0 }
 0x139   : > { %v483_v17 = vadd.f32 %v1234_v9, %v482_v13  ;;  %v1300_v18 = vpop.f32.mrb[3].mxu1  ;;  %v419_v20 = vadd.f32 %v1230_v8, %v418_v19  ;;  %v1292_v21 = vpop.f32.mrb[3].mxu0 }
 0x13b   : > { %v551_v22 = vpack.c.bf16 %v483_v17, %v480_v16  ;;  %v550_v23 = vpack.c.bf16 %v419_v20, %v416_v14 }
 0x13d   : > { %795 = vrot.lane.b32.xlu1 %v551_v22, %s1576_s30  ;;  %673 = vrot.lane.b32.xlu0 %v551_v22, %s1577_s10  ;;  %v558_v24 = vsel %vm553_vm2, %v551_v22, 0 }
 0x13e   : > { %1310 = vmatpush3.bf16.xpose.msra.mxu1 %v558_v24 }
 0x13f   : > { %1321 = vmatprep.subr.bf16.mxu1 %v1574_v0  ;;  %v543_v43 = vpop.f32.mrb[4].mxu0 }
 0x140   : > { %v544_v44 = vadd.f32 %v1238_v42, %v543_v43  ;;  %v1307_v45 = vpop.f32.mrb[5].mxu0 }
 0x141   : > { %793 = vrot.lane.b32.xlu1 %v550_v23, %s1576_s30  ;;  %670 = vrot.lane.b32.xlu0 %v550_v23, %s1577_s10  ;;  %v546_v46 = vpop.f32.mrb[6].mxu0 }
 0x142   : > { %v547_v47 = vadd.f32 %v1238_v42, %v546_v46  ;;  %v1308_v48 = vpop.f32.mrb[7].mxu0 }
 0x144   : > { %v1817_v49 = vpack.c.bf16 %v547_v47, %v544_v44 }
 0x145   : > { %914 = vrot.lane.b32.xlu1 %v550_v23, %s1578_s13  ;;  %916 = vrot.lane.b32.xlu0 %v551_v22, %s1578_s13 }
 0x146   : > { %1312 = vmatmul.mubr.msk.bf16.vlgmr.msra.gmra.mrb[4].mxu1 %vm553_vm2, %v550_v23  ;;  %1316 = vmatpush3.bf16.msra.mxu0 %v1817_v49 }
 0x147   : > { %1323 = vmatprep.mubr.msk.bf16.mxu1 %vm1575_vm0, %v1574_v0  ;;  %1327 = vmatprep.subr.bf16.mxu0 %v1574_v0 }
 0x1af   : > { %v674_v27 = vpop.permute.xlu0 %673  ;;  %v796_v29 = vpop.permute.xlu1 %795 }
 0x1b0   : > { %v679_v28 = vsel %vm553_vm2, %v674_v27, 0  ;;  %v801_v31 = vsel %vm553_vm2, %v796_v29, 0 }
 0x1b1   : > { %1322 = vmatpush3.bf16.xpose.msra.mxu1 %v679_v28 }
 0x1b2   : > { %1333 = vmatprep.subr.bf16.mxu1 %v1574_v0 }
 0x1b3   : > { %v671_v30 = vpop.permute.xlu0 %670  ;;  %v794_v33 = vpop.permute.xlu1 %793 }
 0x1b7   : > { %v917_v32 = vpop.permute.xlu0 %916  ;;  %v915_v35 = vpop.permute.xlu1 %914 }
 0x1b8   : > { %1324 = vmatmul.mubr.msk.bf16.vlgmr.msra.gmra.mrb[8].mxu1 %vm553_vm2, %v671_v30  ;;  %v922_v34 = vsel %vm553_vm2, %v917_v32, 0 }
 0x1b9   : > { %1334 = vmatpush3.bf16.xpose.msra.mxu1 %v801_v31  ;;  %1335 = vmatprep.mubr.msk.bf16.mxu1 %vm1575_vm0, %v1574_v0 }
 0x1ba   : > { %1345 = vmatprep.subr.bf16.mxu1 %v1574_v0 }
 0x1c0   : > { %1336 = vmatmul.mubr.msk.bf16.vlgmr.msra.gmra.mrb[12].mxu1 %vm553_vm2, %v794_v33 }
 0x1c1   : > { %1346 = vmatpush3.bf16.xpose.msra.mxu1 %v922_v34  ;;  %1347 = vmatprep.mubr.msk.bf16.mxu1 %vm1575_vm0, %v1574_v0 }
 0x1c2   : > { %1357 = vmatprep.subr.bf16.mxu1 %v1574_v0 }
 0x1c8   : > { %1348 = vmatmul.mubr.msk.bf16.vlgmr.msra.gmra.mrb[16].mxu1 %vm553_vm2, %v915_v35 }
 0x1c9   : > { %1361 = vmatprep.mubr.msk.bf16.mxu1 %vm1575_vm0, %v1574_v0 }
 0x219   : > { %v594_v36 = vpop.f32.mrb[4].mxu1 }
 0x21a   : > { %v1313_v37 = vpop.f32.mrb[5].mxu1  ;;  %v602_v38 = vsel %vm601_vm3, %v594_v36, -inf }
 0x21b   : > { %603 = vmax.xlane.f32.xlu0 %v602_v38  ;;  %v597_v39 = vpop.f32.mrb[6].mxu1 }
 0x21c   : > { %v1314_v40 = vpop.f32.mrb[7].mxu1  ;;  %v605_v41 = vsel %vm601_vm3, %v597_v39, -inf }
 0x21d   : > { %606 = vmax.xlane.f32.xlu1 %v605_v41 }
 0x28b   : > { %v715_v50 = vpop.f32.mrb[8].mxu1 }
 0x28c   : > { %v1325_v51 = vpop.f32.mrb[9].mxu1  ;;  %v722_v52 = vsel %vm601_vm3, %v715_v50, -inf }
 0x28d   : > { %723 = vmax.xlane.f32.xlu0 %v722_v52  ;;  %v718_v53 = vpop.f32.mrb[10].mxu1 }
 0x28e   : > { %v1326_v54 = vpop.f32.mrb[11].mxu1  ;;  %v725_v55 = vsel %vm601_vm3, %v718_v53, -inf }
 0x291   : > { %726 = vmax.xlane.f32.xlu0 %v725_v55 }
 0x293   : > { %v837_v56 = vpop.f32.mrb[12].mxu1 }
 0x294   : > { %v1337_v57 = vpop.f32.mrb[13].mxu1  ;;  %v844_v58 = vsel %vm601_vm3, %v837_v56, -inf }
 0x295   : > { %845 = vmax.xlane.f32.xlu1 %v844_v58  ;;  %v840_v59 = vpop.f32.mrb[14].mxu1 }
 0x296   : > { %v1338_v60 = vpop.f32.mrb[15].mxu1  ;;  %v847_v61 = vsel %vm601_vm3, %v840_v59, -inf }
 0x297   : > { %848 = vmax.xlane.f32.xlu0 %v847_v61 }
 0x29b   : > { %v958_v62 = vpop.f32.mrb[16].mxu1 }
 0x29c   : > { %v1349_v63 = vpop.f32.mrb[17].mxu1  ;;  %v965_v1 = vsel %vm601_vm3, %v958_v62, -inf }
 0x29d   : > { %966 = vmax.xlane.f32.xlu1 %v965_v1  ;;  %v961_v2 = vpop.f32.mrb[18].mxu1 }
 0x29e   : > { %v1350_v3 = vpop.f32.mrb[19].mxu1  ;;  %v968_v4 = vsel %vm601_vm3, %v961_v2, -inf }
 0x29f   : > { %969 = vmax.xlane.f32.xlu0 %v968_v4 }
 0x2a8   : > { %v604_v5 = vpop.xlane.xlu0 %603 }
 0x2a9   : > { %v608_v6 = vsub.f32 %v594_v36, %v604_v5 }
 0x2aa   : > { %v607_v7 = vpop.xlane.xlu1 %606 }
 0x2ab   : > { %v610_v8 = vmul.f32 1.442695, %v608_v6  ;;  %v609_v9 = vsub.f32 %v597_v39, %v607_v7 }
 0x2ad   : > { %1437 = vpow2.f32 %v610_v8  ;;  %v612_v10 = vmul.f32 1.442695, %v609_v9 }
 0x2af   : > { %1439 = vpow2.f32 %v612_v10 }
 0x2b7   : > { %v1438_v11 = vpop.eup %1437 }
 0x2b8   : > { %v614_v12 = vsel %vm601_vm3, %v1438_v11, 0.0 }
 0x2b9   : > { %v1440_v13 = vpop.eup %1439  ;;  %615 = vadd.xlane.f32.xlu1 %v614_v12 }
 0x2ba   : > { %v617_v14 = vsel %vm601_vm3, %v1440_v13, 0.0 }
 0x2bb   : > { %618 = vadd.xlane.f32.xlu0 %v617_v14 }
 0x2ca   : > { %746 = vrot.lane.b32.xlu1 %v1817_v49, %s1577_s10 }
 0x31a   : > { %v724_v15 = vpop.xlane.xlu0 %723 }
 0x31b   : > { %v728_v16 = vsub.f32 %v715_v50, %v724_v15 }
 0x31d   : > { %v730_v17 = vmul.f32 1.442695, %v728_v16 }
 0x31e   : > { %v727_v18 = vpop.xlane.xlu0 %726 }
 0x31f   : > { %1441 = vpow2.f32 %v730_v17  ;;  %v729_v19 = vsub.f32 %v718_v53, %v727_v18 }
 0x321   : > { %v732_v20 = vmul.f32 1.442695, %v729_v19 }
 0x322   : > { %v846_v21 = vpop.xlane.xlu1 %845 }
 0x323   : > { %1443 = vpow2.f32 %v732_v20  ;;  %v850_v22 = vsub.f32 %v837_v56, %v846_v21  ;;  %v1435_v20 = vld [vmem:[#allocation6] sm:$0xff]  }
 0x324   : > { %v849_v23 = vpop.xlane.xlu0 %848  ;;  %1358 = vmatpush3.bf16.msra.mxu1 %v1435_v20 }
 0x325   : > { %v852_v24 = vmul.f32 1.442695, %v850_v22  ;;  %v851_v25 = vsub.f32 %v840_v59, %v849_v23  ;;  %1359 = vmatprep.subr.bf16.mxu1 %v1574_v0 }
 0x327   : > { %1445 = vpow2.f32 %v852_v24  ;;  %v854_v26 = vmul.f32 1.442695, %v851_v25  ;;  %v1436_v25 = vld [vmem:[#allocation6 + $0x8] sm:$0xff]  }
 0x328   : > { %1360 = vmatpush3.bf16.msra.mxu1 %v1436_v25 }
 0x329   : > { %v1442_v27 = vpop.eup %1441  ;;  %1447 = vpow2.f32 %v854_v26 }
 0x32a   : > { %v967_v28 = vpop.xlane.xlu1 %966  ;;  %v734_v29 = vsel %vm601_vm3, %v1442_v27, 0.0 }
 0x32b   : > { %v971_v30 = vsub.f32 %v958_v62, %v967_v28  ;;  %735 = vadd.xlane.f32.xlu1 %v734_v29 }
 0x32c   : > { %v970_v31 = vpop.xlane.xlu0 %969 }
 0x32d   : > { %v1444_v32 = vpop.eup %1443  ;;  %v973_v33 = vmul.f32 1.442695, %v971_v30  ;;  %v972_v34 = vsub.f32 %v961_v2, %v970_v31 }
 0x32e   : > { %v737_v35 = vsel %vm601_vm3, %v1444_v32, 0.0 }
 0x32f   : > { %1449 = vpow2.f32 %v973_v33  ;;  %v975_v36 = vmul.f32 1.442695, %v972_v34  ;;  %738 = vadd.xlane.f32.xlu0 %v737_v35 }
 0x331   : > { %v1446_v37 = vpop.eup %1445  ;;  %1451 = vpow2.f32 %v975_v36 }
 0x332   : > { %v856_v38 = vsel %vm601_vm3, %v1446_v37, 0.0 }
 0x333   : > { %v1448_v39 = vpop.eup %1447  ;;  %857 = vadd.xlane.f32.xlu1 %v856_v38 }
 0x334   : > { %v859_v40 = vsel %vm601_vm3, %v1448_v39, 0.0 }
 0x335   : > { %860 = vadd.xlane.f32.xlu0 %v859_v40 }
 0x339   : > { %v1450_v41 = vpop.eup %1449 }
 0x33a   : > { %v977_v42 = vsel %vm601_vm3, %v1450_v41, 0.0 }
 0x33b   : > { %v1452_v43 = vpop.eup %1451  ;;  %978 = vadd.xlane.f32.xlu1 %v977_v42 }
 0x33c   : > { %v980_v44 = vsel %vm601_vm3, %v1452_v43, 0.0 }
 0x33d   : > { %981 = vadd.xlane.f32.xlu0 %v980_v44 }
 0x346   : > { %v616_v45 = vpop.xlane.xlu1 %615 }
 0x347   : > { %1453 = vrcp.f32 %v616_v45 }
 0x348   : > { %v619_v46 = vpop.xlane.xlu0 %618 }
 0x349   : > { %1455 = vrcp.f32 %v619_v46 }
 0x34a   : > { %v747_v53 = vpop.permute.xlu1 %746 }
 0x34c   : > { %988 = vrot.lane.b32.xlu1 %v1817_v49, %s1578_s13 }
 0x351   : > { %v1454_v47 = vpop.eup %1453 }
 0x352   : > { %v621_v50 = vmul.f32 %v1454_v47, %v1438_v11 }
 0x353   : > { %v1456_v48 = vpop.eup %1455  ;;  %867 = vrot.lane.b32.xlu0 %v1817_v49, %s1576_s30 }
 0x354   : > { %v623_v51 = vmul.f32 %v1456_v48, %v1440_v13 }
 0x356   : > { %v624_v52 = vpack.c.bf16 %v623_v51, %v621_v50 }
 0x358   : > { %1318 = vmatmul.mubr.msk.bf16.vlgmr.msra.gmra.mrb[8].mxu0 %vm601_vm3, %v624_v52 }
 0x359   : > { %1328 = vmatpush3.bf16.msra.mxu0 %v747_v53  ;;  %1329 = vmatprep.mubr.msk.bf16.mxu0 %vm1575_vm0, %v1574_v0 }
 0x35a   : > { %1339 = vmatprep.subr.bf16.mxu0 %v1574_v0 }
 0x3b8   : > { %v736_v54 = vpop.xlane.xlu1 %735 }
 0x3b9   : > { %1457 = vrcp.f32 %v736_v54 }
 0x3bc   : > { %v739_v55 = vpop.xlane.xlu0 %738 }
 0x3bd   : > { %1459 = vrcp.f32 %v739_v55 }
 0x3c0   : > { %v858_v56 = vpop.xlane.xlu1 %857 }
 0x3c1   : > { %1461 = vrcp.f32 %v858_v56 }
 0x3c2   : > { %v861_v57 = vpop.xlane.xlu0 %860 }
 0x3c3   : > { %1463 = vrcp.f32 %v861_v57  ;;  %v1458_v49 = vpop.eup %1457 }
 0x3c4   : > { %v741_v59 = vmul.f32 %v1458_v49, %v1442_v27 }
 0x3c7   : > { %v1460_v58 = vpop.eup %1459 }
 0x3c8   : > { %v743_v60 = vmul.f32 %v1460_v58, %v1444_v32  ;;  %v979_v61 = vpop.xlane.xlu1 %978 }
 0x3c9   : > { %1465 = vrcp.f32 %v979_v61 }
 0x3ca   : > { %v982_v62 = vpop.xlane.xlu0 %981  ;;  %v744_v63 = vpack.c.bf16 %v743_v60, %v741_v59 }
 0x3cb   : > { %1467 = vrcp.f32 %v982_v62  ;;  %v1462_v1 = vpop.eup %1461 }
 0x3cc   : > { %1330 = vmatmul.mubr.msk.bf16.vlgmr.msra.gmra.mrb[12].mxu0 %vm601_vm3, %v744_v63  ;;  %v863_v5 = vmul.f32 %v1462_v1, %v1446_v37  ;;  %v989_v8 = vpop.permute.xlu1 %988 }
 0x3cd   : > { %v1464_v2 = vpop.eup %1463  ;;  %1341 = vmatprep.mubr.msk.bf16.mxu0 %vm1575_vm0, %v1574_v0 }
 0x3ce   : > { %v865_v3 = vmul.f32 %v1464_v2, %v1448_v39  ;;  %v868_v4 = vpop.permute.xlu0 %867 }
 0x3cf   : > { %1340 = vmatpush3.bf16.msra.mxu0 %v868_v4 }
 0x3d0   : > { %1351 = vmatprep.subr.bf16.mxu0 %v1574_v0  ;;  %v866_v6 = vpack.c.bf16 %v865_v3, %v863_v5 }
 0x3d3   : > { %v1466_v7 = vpop.eup %1465 }
 0x3d4   : > { %1342 = vmatmul.mubr.msk.bf16.vlgmr.msra.gmra.mrb[16].mxu0 %vm601_vm3, %v866_v6  ;;  %v984_v11 = vmul.f32 %v1466_v7, %v1450_v41 }
 0x3d5   : > { %v1468_v9 = vpop.eup %1467  ;;  %1352 = vmatpush3.bf16.msra.mxu0 %v989_v8  ;;  %1353 = vmatprep.mubr.msk.bf16.mxu0 %vm1575_vm0, %v1574_v0 }
 0x3d6   : > { %v986_v10 = vmul.f32 %v1468_v9, %v1452_v43 }
 0x3d8   : > { %v987_v12 = vpack.c.bf16 %v986_v10, %v984_v11 }
 0x3dc   : > { %1354 = vmatmul.mubr.msk.bf16.vlgmr.msra.gmra.mrb[20].mxu0 %vm601_vm3, %v987_v12 }
 0x42b   : > { %v662_v13 = vpop.f32.mrb[8].mxu0 }
 0x42c   : > { %v1319_v14 = vpop.f32.mrb[9].mxu0 }
 0x42d   : > { %v665_v15 = vpop.f32.mrb[10].mxu0 }
 0x42e   : > { %v1320_v16 = vpop.f32.mrb[11].mxu0 }
 0x49f   : > { %v786_v17 = vpop.f32.mrb[12].mxu0 }
 0x4a0   : > { %v1331_v18 = vpop.f32.mrb[13].mxu0 }
 0x4a1   : > { %v789_v19 = vpop.f32.mrb[14].mxu0 }
 0x4a2   : > { %v1414_v21 = vpack.i.bf16 %v789_v19, %v786_v17  ;;  %v1332_v22 = vpop.f32.mrb[15].mxu0 }
 0x4a4   : > { %1415 = vrot.lane.b32.xlu1 %v1414_v21, %s1579_s11 }
 0x4a7   : > { %v907_v23 = vpop.f32.mrb[16].mxu0 }
 0x4a8   : > { %v1343_v24 = vpop.f32.mrb[17].mxu0 }
 0x4a9   : > { %v910_v26 = vpop.f32.mrb[18].mxu0 }
 0x4aa   : > { %v1419_v27 = vpack.i.bf16 %v910_v26, %v907_v23  ;;  %v1344_v28 = vpop.f32.mrb[19].mxu0 }
 0x4ac   : > { %1420 = vrot.lane.b32.xlu0 %v1419_v27, %s1580_s17 }
 0x4af   : > { %v1028_v29 = vpop.f32.mrb[20].mxu0 }
 0x4b0   : > { %v1355_v30 = vpop.f32.mrb[21].mxu0 }
 0x4b1   : > { %v1031_v31 = vpop.f32.mrb[22].mxu0 }
 0x4b2   : > { %v1424_v32 = vpack.i.bf16 %v1031_v31, %v1028_v29  ;;  %v1356_v33 = vpop.f32.mrb[23].mxu0 }
 0x4b4   : > { %1425 = vrot.lane.b32.xlu1 %v1424_v32, %s1581_s18 }
 0x516   : > { %v1416_v34 = vpop.permute.xlu1 %1415 }
 0x517   : > { %v1418_v36 = vunpack.i.h.bf16 %v1416_v34  ;;  %v1417_v0 = vunpack.i.l.bf16 %v1416_v34 }
 0x519   : > { %v1060_v40 = vsel %vm553_vm2, %v665_v15, %v1418_v36  ;;  %v1059_v41 = vsel %vm553_vm2, %v662_v13, %v1417_v0 }
 0x51e   : > { %v1421_v35 = vpop.permute.xlu0 %1420 }
 0x51f   : > { %v1423_v37 = vunpack.i.h.bf16 %v1421_v35  ;;  %v1422_v38 = vunpack.i.l.bf16 %v1421_v35 }
 0x521   : > { %v1062_v44 = vsel %vm601_vm3, %v1060_v40, %v1423_v37  ;;  %v1061_v45 = vsel %vm601_vm3, %v1059_v41, %v1422_v38 }
 0x526   : > { %v1426_v39 = vpop.permute.xlu1 %1425 }
 0x527   : > { %v1428_v42 = vunpack.i.h.bf16 %v1426_v39  ;;  %v1427_v43 = vunpack.i.l.bf16 %v1426_v39 }
 0x529   : > { %v1065_v46 = vsel %vm1063_vm4, %v1062_v44, %v1428_v42  ;;  %v1064_v47 = vsel %vm1063_vm4, %v1061_v45, %v1427_v43 }
 0x52a   : > { %v1066_v48 = vpack.c.bf16 %v1065_v46, %v1064_v47 }
 0x52c   : > { %1362 = vmatmul.mubr.msk.bf16.vlgmr.msra.gmra.mrb[20].mxu1 %vm377_vm1, %v1066_v48 }
 0x5ff   : > { %v1120_v50 = vpop.f32.mrb[20].mxu1 }
 0x600   : > { %1127 = vst.msk [vmem:[%s349_s20] sm:$0xff] %vm377_vm1, %v1120_v50  ;;  %v1363_v51 = vpop.f32.mrb[21].mxu1 }
 0x601   : > { %v1123_v52 = vpop.f32.mrb[22].mxu1 }
 0x602   : > { %1128 = vst.msk [vmem:[%s349_s20 + $0x8] sm:$0xff] %vm377_vm1, %v1123_v52  ;;  %v1364_v53 = vpop.f32.mrb[23].mxu1 }
 0x603 PF: > { %s20_s27 = sadd.s32 1, %s1567_s27  }
 0x604   : > { %p17_p5 = scmp.ge.s32.totalorder %s20_s27, 6  }
 0x606   :  { %19 = sbr.rel (!%p17_p5) target bundleno = 2 (0x2), region = 95 }
 0x60d   :  { %1150 = vsyncpa [#allocation3], 1 }
 0x60e   :  { %1152 = vsyncpa [#allocation3 + $0x1], 1 }
 0x60f   :  { %1153 = vsyncpa [#allocation5], 1 }

// kernel: encoder_am_forward.21
= control target key start
LH: loop header
LB: loop body
LE: loop exit
PB: predicated region body
PF: predicated region fallthrough
CT: control target
= control target key end

     0   :  { %s371_s12 = smov 0   ;;  %s414_s0 = inlined_call_operand.vmem [shape: f32[4,16,64], index: 0, kind: input, shape index: {}]   ;;  %s415_s1 = inlined_call_operand.vmem [shape: f32[4,64], index: 1, kind: input, shape index: {}]   ;;  %s416_s2 = inlined_call_operand.vmem [shape: f32[1,64], index: 2, kind: input, shape index: {}]   ;;  %s417_s3 = inlined_call_operand.vmem [shape: f32[4,16,64], index: 3, kind: output, shape index: {}]  }
   0x1 LB: > { %s309_s13 = sadd.s32 4294967295, %s349_s12   ;;  %p313_p0 = scmp.ge.s32.totalorder %s349_s12, 1  ;;  %s349_s12 = sphi %s371_s12, %s13_s12  }
   0x2   : > { %p137_p1 = scmp.lt.s32.totalorder %s349_s12, 5 }
   0x4   : > { %p138_p2 = pnand %p313_p0, %p137_p1 }
   0x5   : > { %p161_p3 = scmp.lt.s32.totalorder (!%p138_p2), %s309_s13, 3  ;;  %v318_v0 = vld [vmem:[%s415_s1 + $0x3] ss:$0 sm:$0xff] (!%p138_p2)  ;;  %vm182_vm0 = vcmask (!%p138_p2), 1040384   ;;  %vm198_vm1 = vcmask (!%p138_p2), 1041408   ;;  %vm214_vm2 = vcmask (!%p138_p2), 1042432  }
   0x6   : > { %141 = sbr.rel (%p138_p2) target bundleno = 62 (0x3e), region = 32  ;;  %v319_v7 = vld [vmem:[%s415_s1 + $0x2] ss:$0 sm:$0xff] (!%p138_p2)  ;;  %v320_v8 = vld [vmem:[%s415_s1 + $0x1] ss:$0 sm:$0xff] (!%p138_p2)  ;;  %vm251_vm3 = vcmask (!%p138_p2), 523264  }
   0x7   : > { %v321_v13 = vld [vmem:[%s415_s1] ss:$0 sm:$0xff] (!%p138_p2) }
   0x8   : > { %v322_v30 = vld [vmem:[%s416_s2] ss:$0 sm:$0xff] (!%p138_p2) }
   0xd   : > { %s419_s13 = smov (!%p161_p3, %s309_s13), 3 }
   0xe   : > { %s325_s14 = sshll.u32 %s419_s13, 4 }
   0xf   : > { %s165_s19 = scalar_lea.vmem %s414_s0, %s325_s14  ;;  %s170_s30 = scalar_lea.vmem %s417_s3, %s325_s14 }
  0x10   : > { %v171_v1 = vld [vmem:[%s165_s19] sm:$0xff]  ;;  %v172_v2 = vld [vmem:[%s165_s19 + $0x8] sm:$0xff] }
  0x11   : > { %v178_v3 = vmul.f32 %v318_v0, %v171_v1  ;;  %v179_v4 = vmul.f32 %v318_v0, %v172_v2  ;;  %v183_v5 = vrot.slane %v171_v1, 7  ;;  %v184_v6 = vrot.slane %v172_v2, 7 }
  0x12   : > { %v199_v9 = vrot.slane %v171_v1, 6  ;;  %v200_v10 = vrot.slane %v172_v2, 6  ;;  %v215_v11 = vrot.slane %v171_v1, 5  ;;  %v216_v12 = vrot.slane %v172_v2, 5 }
  0x13   : > { %v185_v14 = vsel %vm182_vm0, %v183_v5, %v184_v6  ;;  %v188_v15 = vsel %vm182_vm0, 0.0, %v183_v5 }
  0x14   : > { %v194_v16 = vmul.f32 %v319_v7, %v188_v15  ;;  %v195_v17 = vmul.f32 %v319_v7, %v185_v14  ;;  %v204_v18 = vsel %vm198_vm1, 0.0, %v199_v9  ;;  %v220_v19 = vsel %vm214_vm2, 0.0, %v215_v11 }
  0x15   : > { %v210_v20 = vmul.f32 %v320_v8, %v204_v18  ;;  %v226_v21 = vmul.f32 %v321_v13, %v220_v19  ;;  %v201_v22 = vsel %vm198_vm1, %v199_v9, %v200_v10  ;;  %v217_v23 = vsel %vm214_vm2, %v215_v11, %v216_v12 }
  0x16   : > { %v196_v24 = vadd.f32 %v194_v16, %v178_v3  ;;  %v197_v25 = vadd.f32 %v195_v17, %v179_v4  ;;  %v211_v26 = vmul.f32 %v320_v8, %v201_v22  ;;  %v227_v27 = vmul.f32 %v321_v13, %v217_v23 }
  0x18   : > { %v212_v28 = vadd.f32 %v210_v20, %v196_v24  ;;  %v213_v29 = vadd.f32 %v211_v26, %v197_v25 }
  0x1a   : > { %v228_v31 = vadd.f32 %v226_v21, %v212_v28  ;;  %v229_v32 = vadd.f32 %v227_v27, %v213_v29 }
  0x1c   : > { %v237_v33 = vadd.f32 %v322_v30, %v228_v31  ;;  %v238_v34 = vadd.f32 %v322_v30, %v229_v32 }
  0x1e   : > { %v239_v35 = vsub.f32 0.0, %v237_v33  ;;  %v240_v36 = vsub.f32 0.0, %v238_v34 }
  0x20   : > { %v241_v37 = vmul.f32 1.442695, %v239_v35  ;;  %v243_v38 = vmul.f32 1.442695, %v240_v36 }
  0x22   : > { %335 = vpow2.f32 %v241_v37 }
  0x23   : > { %337 = vpow2.f32 %v243_v38 }
  0x2c   : > { %v336_v39 = vpop.eup %335 }
  0x2d   : > { %v338_v40 = vpop.eup %337  ;;  %v245_v41 = vadd.f32 1.0, %v336_v39 }
  0x2e   : > { %v246_v42 = vadd.f32 1.0, %v338_v40 }
  0x2f   : > { %339 = vrcp.f32 %v245_v41 }
  0x30   : > { %341 = vrcp.f32 %v246_v42 }
  0x39   : > { %v340_v43 = vpop.eup %339 }
  0x3a   : > { %v342_v44 = vpop.eup %341  ;;  %v248_v45 = vmul.f32 %v340_v43, %v237_v33 }
  0x3b   : > { %v250_v46 = vmul.f32 %v342_v44, %v238_v34 }
  0x3c   : > { %252 = vst.msk [vmem:[%s170_s30] sm:$0xff] %vm251_vm3, %v248_v45 }
  0x3d   : > { %253 = vst.msk [vmem:[%s170_s30 + $0x8] sm:$0xff] %vm251_vm3, %v250_v46 }
  0x3e PF: > { %s13_s12 = sadd.s32 1, %s349_s12  }
  0x3f   : > { %p10_p4 = scmp.ge.s32.totalorder %s13_s12, 6  }
  0x41   :  { %12 = sbr.rel (!%p10_p4) target bundleno = 1 (0x1), region = 62 }

// kernel: encoder_am_forward.22
= control target key start
LH: loop header
LB: loop body
LE: loop exit
PB: predicated region body
PF: predicated region fallthrough
CT: control target
= control target key end

     0   :  { %s413_s12 = smov 0   ;;  %s445_s0 = inlined_call_operand.vmem [shape: f32[64,64], index: 0, kind: input, shape index: {}]   ;;  %s446_s1 = inlined_call_operand.vmem [shape: bf16[64,10], index: 1, kind: input, shape index: {}]   ;;  %s447_s2 = inlined_call_operand.vmem [shape: f32[1,10], index: 2, kind: input, shape index: {}]   ;;  %s448_s3 = inlined_call_operand.vmem [shape: f32[64,10], index: 3, kind: output, shape index: {}]  }
   0x1 LB: > { %s337_s13 = sadd.s32 4294967295, %s391_s12   ;;  %p341_p0 = scmp.ge.s32.totalorder %s391_s12, 1  ;;  %s391_s12 = sphi %s413_s12, %s13_s12  }
   0x2   : > { %p138_p1 = scmp.lt.s32.totalorder %s391_s12, 3 }
   0x4   : > { %p139_p2 = pnand %p341_p0, %p138_p1 }
   0x5   : > { %v381_v0 = vld [vmem:[%s446_s1] sm:$0xff] (!%p139_p2)   ;;  %s342_s16 = sshll.u32 (!%p139_p2), %s337_s13, 2  ;;  %v382_v1 = vld [vmem:[%s446_s1 + $0x8] sm:$0xff] (!%p139_p2)   ;;  %v383_v2 = vld [vmem:[%s446_s1 + $0x10] sm:$0xff] (!%p139_p2)   ;;  %vm220_vm0 = vcmask (!%p139_p2), 523264   ;;  %vm276_vm1 = vcmask (!%p139_p2), 80896  }
   0x6   : > { %142 = sbr.rel (%p139_p2) target bundleno = 240 (0xf0), region = 32  ;;  %p163_p3 = scmp.lt.s32.totalorder (!%p139_p2), %s342_s16, 7  ;;  %361 = vmatprep.subr.bf16.mxu0 (!%p139_p2), %v381_v0  ;;  %v384_v5 = vld [vmem:[%s446_s1 + $0x18] sm:$0xff] (!%p139_p2)   ;;  %v346_v10 = vld [vmem:[%s447_s2] ss:$0 sm:$0xff] (!%p139_p2) }
   0x7   : > { %362 = vmatpush3.bf16.msra.mxu0 (!%p139_p2), %v381_v0 }
   0x8   : > { %363 = vmatprep.subr.bf16.mxu0 (!%p139_p2), %v382_v1 }
   0xb   : > { %364 = vmatpush3.bf16.msra.mxu0 (!%p139_p2), %v382_v1 }
   0xc   : > { %365 = vmatprep.subr.bf16.mxu0 (!%p139_p2), %v383_v2 }
   0xd   : > { %s450_s16 = smov (!%p163_p3, %s342_s16), 7 }
   0xe   : > { %s343_s21 = sshll.u32 %s450_s16, 3 }
   0xf   : > { %s166_s24 = scalar_lea.vmem %s445_s0, %s343_s21  ;;  %366 = vmatpush3.bf16.msra.mxu0 %v383_v2  ;;  %s172_s4 = scalar_lea.vmem %s448_s3, %s343_s21 }
  0x10   : > { %v175_v3 = vld [vmem:[%s166_s24] sm:$0xff]  ;;  %v176_v4 = vld [vmem:[%s166_s24 + $0x8] sm:$0xff]  ;;  %v177_v7 = vld [vmem:[%s166_s24 + $0x10] sm:$0xff]  ;;  %367 = vmatprep.subr.bf16.mxu0 %v384_v5 }
  0x11   : > { %v179_v6 = vpack.c.bf16 %v176_v4, %v175_v3  ;;  %v178_v8 = vld [vmem:[%s166_s24 + $0x18] sm:$0xff] }
  0x12   : > { %v180_v9 = vpack.c.bf16 %v178_v8, %v177_v7 }
  0x13   : > { %369 = vmatprep.mubr.msk.bf16.mxu0 %vm220_vm0, %v179_v6  ;;  %368 = vmatpush3.bf16.msra.mxu0 %v384_v5 }
  0x16   : > { %370 = vmatmul.mubr.msk.bf16.vlgmr.msra.gmra.mrb[0].mxu0 %vm220_vm0, %v180_v9 }
  0xe9   : > { %v371_v11 = vpop.f32.mrb[0].mxu0 }
  0xea   : > { %v261_v12 = vpop.f32.mrb[1].mxu0  ;;  %v270_v17 = vadd.f32 %v371_v11, %v346_v10 }
  0xeb   : > { %v262_v13 = vadd.f32 %v346_v10, %v261_v12  ;;  %v372_v14 = vpop.f32.mrb[2].mxu0 }
  0xec   : > { %v264_v15 = vpop.f32.mrb[3].mxu0  ;;  %v273_v18 = vadd.f32 %v372_v14, %v346_v10  ;;  %279 = vst.msk [vmem:[%s172_s4 + $0x10] sm:$0xff] %vm276_vm1, %v270_v17 }
  0xed   : > { %277 = vst.msk [vmem:[%s172_s4] sm:$0xff] %vm276_vm1, %v262_v13  ;;  %v265_v16 = vadd.f32 %v346_v10, %v264_v15 }
  0xee   : > { %280 = vst.msk [vmem:[%s172_s4 + $0x18] sm:$0xff] %vm276_vm1, %v273_v18 }
  0xef   : > { %278 = vst.msk [vmem:[%s172_s4 + $0x8] sm:$0xff] %vm276_vm1, %v265_v16 }
  0xf0 PF: > { %s13_s12 = sadd.s32 1, %s391_s12  }
  0xf1   : > { %p10_p4 = scmp.ge.s32.totalorder %s13_s12, 4  }
  0xf3   :  { %12 = sbr.rel (!%p10_p4) target bundleno = 1 (0x1), region = 62 }

// kernel: encoder_am_forward.23
= control target key start
LH: loop header
LB: loop body
LE: loop exit
PB: predicated region body
PF: predicated region fallthrough
CT: control target
= control target key end

     0   :  { %s370_s12 = smov 0   ;;  %s393_s0 = inlined_call_operand.vmem [shape: f32[64,2], index: 0, kind: input, shape index: {}]   ;;  %s394_s1 = inlined_call_operand.vmem [shape: bf16[2,64], index: 1, kind: input, shape index: {}]   ;;  %s395_s2 = inlined_call_operand.vmem [shape: f32[1,64], index: 2, kind: input, shape index: {}]   ;;  %s396_s3 = inlined_call_operand.vmem [shape: f32[64,64], index: 3, kind: output, shape index: {}]  }
   0x1 LB: > { %s310_s13 = sadd.s32 4294967295, %s348_s12   ;;  %p314_p0 = scmp.ge.s32.totalorder %s348_s12, 1  ;;  %s348_s12 = sphi %s370_s12, %s13_s12  }
   0x2   : > { %p138_p1 = scmp.lt.s32.totalorder %s348_s12, 3 }
   0x4   : > { %p139_p2 = pnand %p314_p0, %p138_p1 }
   0x5   : > { %v181_v0 = vld [vmem:[%s394_s1] sm:$0x1] (!%p139_p2)  ;;  %vm196_vm0 = vcmask (!%p139_p2), 1040384   ;;  %s315_s16 = sshll.u32 (!%p139_p2), %s310_s13, 2  ;;  %vm189_vm1 = vcmask (!%p139_p2), 15360   ;;  %vm249_vm2 = vcmask (!%p139_p2), 523264  }
   0x6   : > { %142 = sbr.rel (%p139_p2) target bundleno = 238 (0xee), region = 32  ;;  %333 = vmatprep.subr.msk.bf16.mxu0 (!%p139_p2), %vm196_vm0, %v181_v0  ;;  %v198_v1 = vsel (!%p139_p2), %vm196_vm0, %v181_v0, 0  ;;  %p163_p3 = scmp.lt.s32.totalorder (!%p139_p2), %s315_s16, 7  ;;  %v319_v8 = vld [vmem:[%s395_s2] ss:$0 sm:$0xff] (!%p139_p2) }
   0x7   : > { %328 = vmatpush3.bf16.msra.mxu0 (!%p139_p2), %v198_v1 }
   0xd   : > { %s398_s16 = smov (!%p163_p3, %s315_s16), 7 }
   0xe   : > { %s316_s17 = sshll.u32 %s398_s16, 3 }
   0xf   : > { %s166_s20 = scalar_lea.vmem %s393_s0, %s316_s17  ;;  %s172_s25 = scalar_lea.vmem %s396_s3, %s316_s17 }
  0x10   : > { %v175_v2 = vld [vmem:[%s166_s20] sm:$0xff]  ;;  %v176_v3 = vld [vmem:[%s166_s20 + $0x8] sm:$0xff]  ;;  %v177_v4 = vld [vmem:[%s166_s20 + $0x10] sm:$0xff] }
  0x11   : > { %v179_v5 = vpack.c.bf16 %v176_v3, %v175_v2  ;;  %v178_v6 = vld [vmem:[%s166_s20 + $0x18] sm:$0xff] }
  0x12   : > { %v180_v7 = vpack.c.bf16 %v178_v6, %v177_v4 }
  0x13   : > { %329 = vmatprep.mubr.msk.bf16.mxu0 %vm189_vm1, %v179_v5 }
  0x14   : > { %330 = vmatmul.mubr.msk.bf16.vlgmr.msra.gmra.mrb[0].mxu0 %vm189_vm1, %v180_v7 }
  0xe7   : > { %v331_v9 = vpop.f32.mrb[0].mxu0 }
  0xe8   : > { %v234_v10 = vpop.f32.mrb[1].mxu0  ;;  %v243_v15 = vadd.f32 %v331_v9, %v319_v8 }
  0xe9   : > { %v235_v11 = vadd.f32 %v319_v8, %v234_v10  ;;  %v332_v12 = vpop.f32.mrb[2].mxu0 }
  0xea   : > { %v237_v13 = vpop.f32.mrb[3].mxu0  ;;  %v246_v16 = vadd.f32 %v332_v12, %v319_v8  ;;  %252 = vst.msk [vmem:[%s172_s25 + $0x10] sm:$0xff] %vm249_vm2, %v243_v15 }
  0xeb   : > { %250 = vst.msk [vmem:[%s172_s25] sm:$0xff] %vm249_vm2, %v235_v11  ;;  %v238_v14 = vadd.f32 %v319_v8, %v237_v13 }
  0xec   : > { %253 = vst.msk [vmem:[%s172_s25 + $0x18] sm:$0xff] %vm249_vm2, %v246_v16 }
  0xed   : > { %251 = vst.msk [vmem:[%s172_s25 + $0x8] sm:$0xff] %vm249_vm2, %v238_v14 }
  0xee PF: > { %s13_s12 = sadd.s32 1, %s348_s12  }
  0xef   : > { %p10_p4 = scmp.ge.s32.totalorder %s13_s12, 4  }
  0xf1   :  { %12 = sbr.rel (!%p10_p4) target bundleno = 1 (0x1), region = 62 }

// kernel: encoder_am_forward.20
= control target key start
LH: loop header
LB: loop body
LE: loop exit
PB: predicated region body
PF: predicated region fallthrough
CT: control target
= control target key end

     0   :  { %s386_s12 = smov 0   ;;  %s412_s0 = inlined_call_operand.vmem [shape: f32[64,32], index: 0, kind: input, shape index: {}]   ;;  %s413_s1 = inlined_call_operand.vmem [shape: bf16[32,128], index: 1, kind: input, shape index: {}]   ;;  %s414_s2 = inlined_call_operand.vmem [shape: f32[1,128], index: 2, kind: input, shape index: {}]   ;;  %s415_s3 = inlined_call_operand.vmem [shape: f32[64,128], index: 3, kind: output, shape index: {}]  }
   0x1 LB: > { %s320_s13 = sadd.s32 4294967295, %s364_s12   ;;  %p324_p0 = scmp.ge.s32.totalorder %s364_s12, 1  ;;  %s364_s12 = sphi %s386_s12, %s13_s12  }
   0x2   : > { %p138_p1 = scmp.lt.s32.totalorder %s364_s12, 3 }
   0x4   : > { %p139_p2 = pnand %p324_p0, %p138_p1 }
   0x5   : > { %v356_v0 = vld [vmem:[%s413_s1] sm:$0xff] (!%p139_p2)   ;;  %s325_s16 = sshll.u32 (!%p139_p2), %s320_s13, 2  ;;  %v357_v1 = vld [vmem:[%s413_s1 + $0x8] sm:$0xff] (!%p139_p2)   ;;  %vm204_vm0 = vcmask (!%p139_p2), 261120  }
   0x6   : > { %142 = sbr.rel (%p139_p2) target bundleno = 238 (0xee), region = 32  ;;  %p163_p3 = scmp.lt.s32.totalorder (!%p139_p2), %s325_s16, 7  ;;  %340 = vmatprep.subr.bf16.mxu0 (!%p139_p2), %v356_v0  ;;  %v329_v8 = vld [vmem:[%s414_s2] ss:$0 sm:$0xff] (!%p139_p2) }
   0x7   : > { %341 = vmatpush3.bf16.msra.mxu0 (!%p139_p2), %v356_v0 }
   0x8   : > { %342 = vmatprep.subr.bf16.mxu0 (!%p139_p2), %v357_v1 }
   0xb   : > { %343 = vmatpush3.bf16.msra.mxu0 (!%p139_p2), %v357_v1 }
   0xd   : > { %s417_s16 = smov (!%p163_p3, %s325_s16), 7 }
   0xe   : > { %s326_s19 = sshll.u32 %s417_s16, 3 }
   0xf   : > { %s166_s22 = scalar_lea.vmem %s412_s0, %s326_s19  ;;  %s172_s27 = scalar_lea.vmem %s415_s3, %s326_s19 }
  0x10   : > { %v175_v2 = vld [vmem:[%s166_s22] sm:$0xff]  ;;  %v176_v3 = vld [vmem:[%s166_s22 + $0x8] sm:$0xff]  ;;  %v177_v4 = vld [vmem:[%s166_s22 + $0x10] sm:$0xff] }
  0x11   : > { %v179_v5 = vpack.c.bf16 %v176_v3, %v175_v2  ;;  %v178_v6 = vld [vmem:[%s166_s22 + $0x18] sm:$0xff] }
  0x12   : > { %v180_v7 = vpack.c.bf16 %v178_v6, %v177_v4 }
  0x13   : > { %344 = vmatprep.mubr.msk.bf16.mxu0 %vm204_vm0, %v179_v5 }
  0x14   : > { %345 = vmatmul.mubr.msk.bf16.vlgmr.msra.gmra.mrb[0].mxu0 %vm204_vm0, %v180_v7 }
  0xe7   : > { %v346_v9 = vpop.f32.mrb[0].mxu0 }
  0xe8   : > { %v245_v10 = vpop.f32.mrb[1].mxu0  ;;  %v254_v15 = vadd.f32 %v346_v9, %v329_v8 }
  0xe9   : > { %v246_v11 = vadd.f32 %v329_v8, %v245_v10  ;;  %v347_v12 = vpop.f32.mrb[2].mxu0 }
  0xea   : > { %v248_v13 = vpop.f32.mrb[3].mxu0  ;;  %v257_v16 = vadd.f32 %v347_v12, %v329_v8  ;;  %262 = vst [vmem:[%s172_s27 + $0x10] sm:$0xff] %v254_v15 }
  0xeb   : > { %260 = vst [vmem:[%s172_s27] sm:$0xff] %v246_v11  ;;  %v249_v14 = vadd.f32 %v329_v8, %v248_v13 }
  0xec   : > { %263 = vst [vmem:[%s172_s27 + $0x18] sm:$0xff] %v257_v16 }
  0xed   : > { %261 = vst [vmem:[%s172_s27 + $0x8] sm:$0xff] %v249_v14 }
  0xee PF: > { %s13_s12 = sadd.s32 1, %s364_s12  }
  0xef   : > { %p10_p4 = scmp.ge.s32.totalorder %s13_s12, 4  }
  0xf1   :  { %12 = sbr.rel (!%p10_p4) target bundleno = 1 (0x1), region = 62 }

// kernel: encoder_am_forward.25
= control target key start
LH: loop header
LB: loop body
LE: loop exit
PB: predicated region body
PF: predicated region fallthrough
CT: control target
= control target key end

     0   :  { %s413_s12 = smov 0   ;;  %s445_s0 = inlined_call_operand.vmem [shape: f32[64,64], index: 0, kind: input, shape index: {}]   ;;  %s446_s1 = inlined_call_operand.vmem [shape: bf16[64,32], index: 1, kind: input, shape index: {}]   ;;  %s447_s2 = inlined_call_operand.vmem [shape: f32[1,32], index: 2, kind: input, shape index: {}]   ;;  %s448_s3 = inlined_call_operand.vmem [shape: f32[64,32], index: 3, kind: output, shape index: {}]  }
   0x1 LB: > { %s337_s13 = sadd.s32 4294967295, %s391_s12   ;;  %p341_p0 = scmp.ge.s32.totalorder %s391_s12, 1  ;;  %s391_s12 = sphi %s413_s12, %s13_s12  }
   0x2   : > { %p138_p1 = scmp.lt.s32.totalorder %s391_s12, 3 }
   0x4   : > { %p139_p2 = pnand %p341_p0, %p138_p1 }
   0x5   : > { %v381_v0 = vld [vmem:[%s446_s1] sm:$0xff] (!%p139_p2)   ;;  %s342_s16 = sshll.u32 (!%p139_p2), %s337_s13, 2  ;;  %v382_v1 = vld [vmem:[%s446_s1 + $0x8] sm:$0xff] (!%p139_p2)   ;;  %v383_v2 = vld [vmem:[%s446_s1 + $0x10] sm:$0xff] (!%p139_p2)   ;;  %vm220_vm0 = vcmask (!%p139_p2), 523264   ;;  %vm276_vm1 = vcmask (!%p139_p2), 261120  }
   0x6   : > { %142 = sbr.rel (%p139_p2) target bundleno = 240 (0xf0), region = 32  ;;  %p163_p3 = scmp.lt.s32.totalorder (!%p139_p2), %s342_s16, 7  ;;  %361 = vmatprep.subr.bf16.mxu0 (!%p139_p2), %v381_v0  ;;  %v384_v5 = vld [vmem:[%s446_s1 + $0x18] sm:$0xff] (!%p139_p2)   ;;  %v346_v10 = vld [vmem:[%s447_s2] ss:$0 sm:$0xff] (!%p139_p2) }
   0x7   : > { %362 = vmatpush3.bf16.msra.mxu0 (!%p139_p2), %v381_v0 }
   0x8   : > { %363 = vmatprep.subr.bf16.mxu0 (!%p139_p2), %v382_v1 }
   0xb   : > { %364 = vmatpush3.bf16.msra.mxu0 (!%p139_p2), %v382_v1 }
   0xc   : > { %365 = vmatprep.subr.bf16.mxu0 (!%p139_p2), %v383_v2 }
   0xd   : > { %s450_s16 = smov (!%p163_p3, %s342_s16), 7 }
   0xe   : > { %s343_s21 = sshll.u32 %s450_s16, 3 }
   0xf   : > { %s166_s24 = scalar_lea.vmem %s445_s0, %s343_s21  ;;  %366 = vmatpush3.bf16.msra.mxu0 %v383_v2  ;;  %s172_s4 = scalar_lea.vmem %s448_s3, %s343_s21 }
  0x10   : > { %v175_v3 = vld [vmem:[%s166_s24] sm:$0xff]  ;;  %v176_v4 = vld [vmem:[%s166_s24 + $0x8] sm:$0xff]  ;;  %v177_v7 = vld [vmem:[%s166_s24 + $0x10] sm:$0xff]  ;;  %367 = vmatprep.subr.bf16.mxu0 %v384_v5 }
  0x11   : > { %v179_v6 = vpack.c.bf16 %v176_v4, %v175_v3  ;;  %v178_v8 = vld [vmem:[%s166_s24 + $0x18] sm:$0xff] }
  0x12   : > { %v180_v9 = vpack.c.bf16 %v178_v8, %v177_v7 }
  0x13   : > { %369 = vmatprep.mubr.msk.bf16.mxu0 %vm220_vm0, %v179_v6  ;;  %368 = vmatpush3.bf16.msra.mxu0 %v384_v5 }
  0x16   : > { %370 = vmatmul.mubr.msk.bf16.vlgmr.msra.gmra.mrb[0].mxu0 %vm220_vm0, %v180_v9 }
  0xe9   : > { %v371_v11 = vpop.f32.mrb[0].mxu0 }
  0xea   : > { %v261_v12 = vpop.f32.mrb[1].mxu0  ;;  %v270_v17 = vadd.f32 %v371_v11, %v346_v10 }
  0xeb   : > { %v262_v13 = vadd.f32 %v346_v10, %v261_v12  ;;  %v372_v14 = vpop.f32.mrb[2].mxu0 }
  0xec   : > { %v264_v15 = vpop.f32.mrb[3].mxu0  ;;  %v273_v18 = vadd.f32 %v372_v14, %v346_v10  ;;  %279 = vst.msk [vmem:[%s172_s4 + $0x10] sm:$0xff] %vm276_vm1, %v270_v17 }
  0xed   : > { %277 = vst.msk [vmem:[%s172_s4] sm:$0xff] %vm276_vm1, %v262_v13  ;;  %v265_v16 = vadd.f32 %v346_v10, %v264_v15 }
  0xee   : > { %280 = vst.msk [vmem:[%s172_s4 + $0x18] sm:$0xff] %vm276_vm1, %v273_v18 }
  0xef   : > { %278 = vst.msk [vmem:[%s172_s4 + $0x8] sm:$0xff] %vm276_vm1, %v265_v16 }
  0xf0 PF: > { %s13_s12 = sadd.s32 1, %s391_s12  }
  0xf1   : > { %p10_p4 = scmp.ge.s32.totalorder %s13_s12, 4  }
  0xf3   :  { %12 = sbr.rel (!%p10_p4) target bundleno = 1 (0x1), region = 62 }

// kernel: encoder_am_forward.24
= control target key start
LH: loop header
LB: loop body
LE: loop exit
PB: predicated region body
PF: predicated region fallthrough
CT: control target
= control target key end

     0   :  { %s1686_s24 = smov 0   ;;  %s2124_s0 = inlined_call_operand.vmem [shape: f32[4,16,64], index: 0, kind: input, shape index: {}]   ;;  %s2125_s1 = inlined_call_operand.vmem [shape: f32[4,16,64], index: 1, kind: input, shape index: {}]   ;;  %s2126_s2 = inlined_call_operand.vmem [shape: f32[4,16,4], index: 2, kind: input, shape index: {}]   ;;  %s2127_s3 = inlined_call_operand.vmem [shape: f32[4,16,4], index: 3, kind: input, shape index: {}]   ;;  %s2128_s4 = inlined_call_operand.vmem [shape: f32[4,16,64], index: 4, kind: input, shape index: {}]   ;;  %s2129_s5 = inlined_call_operand.vmem [shape: f32[4,64], index: 5, kind: input, shape index: {}]   ;;  %s2130_s6 = inlined_call_operand.vmem [shape: f32[1,64], index: 6, kind: input, shape index: {}]   ;;  %s2131_s7 = inlined_call_operand.vmem [shape: f32[4,16,64], index: 7, kind: output, shape index: {}]  }
   0x1 LB: > { %s1521_s25 = sadd.s32 4294967295, %s1635_s24   ;;  %p1525_p0 = scmp.ge.s32.totalorder %s1635_s24, 1  ;;  %s1635_s24 = sphi %s1686_s24, %s17_s24  }
   0x2   : > { %p277_p1 = scmp.lt.s32.totalorder %s1635_s24, 5 }
   0x4   : > { %p278_p2 = pnand %p1525_p0, %p277_p1 }
   0x5   : > { %p329_p3 = scmp.lt.s32.totalorder (!%p278_p2), %s1521_s25, 3  ;;  %v392_v0 = vlaneseq (!%p278_p2)  ;;  %v1645_v42 = vmov (!%p278_p2), 1966171168   ;;  %vm614_vm0 = vcmask (!%p278_p2), 519168  }
   0x6   : > { %281 = sbr.rel (%p278_p2) target bundleno = 343 (0x157), region = 48  ;;  %v390_v43 = vunpack.c.l.s4 (!%p278_p2), %v1645_v42 }
   0x7   : > { %v1694_v1 = vshrl.u32 (!%p278_p2), %v392_v0, 7 }
   0x8   : > { %v391_v44 = vunpack.c.0.s8 (!%p278_p2), %v390_v43 }
   0x9   : > { %v1699_v2 = vsub.s32 (!%p278_p2), 0, %v1694_v1  ;;  %v1702_v3 = vsub.s32 (!%p278_p2), 2, %v1694_v1  ;;  %v1715_v4 = vsub.s32 (!%p278_p2), 3, %v1694_v1  ;;  %v1718_v5 = vsub.s32 (!%p278_p2), 1, %v1694_v1 }
   0xa   : > { %v1748_v14 = vsub.s32 (!%p278_p2), 5, %v1694_v1  ;;  %v1751_v15 = vsub.s32 (!%p278_p2), 4, %v1694_v1  ;;  %v1755_v19 = vsub.s32 (!%p278_p2), 7, %v1694_v1  ;;  %v1758_v20 = vsub.s32 (!%p278_p2), 6, %v1694_v1 }
   0xb   : > { %v1781_v52 = vsub.s32 (!%p278_p2), %v391_v44, %v1694_v1 }
   0xd   : > { %s2134_s25 = smov (!%p329_p3, %s1521_s25), 3 }
   0xe   : > { %s1696_s26 = sshll.u32 %s2134_s25, 4  ;;  %s1641_s25 = smov 0  }
   0xf   : > { %s1708_s29 = scalar_lea.vmem %s2126_s2, %s1696_s26  ;;  %s348_s9 = scalar_lea.vmem %s2127_s3, %s1696_s26 }
  0x10   : > { %s1724_s12 = scalar_lea.vmem %s2128_s4, %s1696_s26  ;;  %s1730_s15 = scalar_lea.vmem %s2131_s7, %s1696_s26  ;;  %v381_v6 = vld [vmem:[%s1708_s29] sm:$0xff]  ;;  %v1735_v8 = vld [vmem:[%s348_s9 + $0x8] sm:$0xff] }
  0x11   : > { %v1733_v7 = vld [vmem:[%s348_s9] sm:$0xff]  ;;  %v750_v9 = vrot.slane %v381_v6, %v1702_v3  ;;  %v736_v10 = vrot.slane %v381_v6, %v1699_v2  ;;  %s338_s18 = scalar_lea.vmem %s2125_s1, %s1696_s26  ;;  %v757_v12 = vrot.slane %v381_v6, %v1715_v4  ;;  %v743_v13 = vrot.slane %v381_v6, %v1718_v5  ;;  %v382_v29 = vld [vmem:[%s1708_s29 + $0x8] sm:$0xff]  ;;  %s333_s21 = scalar_lea.vmem %s2124_s0, %s1696_s26 }
  0x12   : > { %v1743_v11 = vld [vmem:[%s338_s18] sm:$0xff]  ;;  %v362_v16 = vld [vmem:[%s338_s18 + $0x8] sm:$0xff]  ;;  %v771_v21 = vrot.slane %v381_v6, %v1748_v14  ;;  %v764_v22 = vrot.slane %v381_v6, %v1751_v15  ;;  %v785_v27 = vrot.slane %v381_v6, %v1755_v19  ;;  %v778_v28 = vrot.slane %v381_v6, %v1758_v20 }
  0x13   : > { %752 = vbcast.lane.b32.xlu1 %v750_v9, 256  ;;  %738 = vbcast.lane.b32.xlu0 %v736_v10, 256  ;;  %v365_v17 = vand.u32 2147483647, %v1743_v11  ;;  %v366_v18 = vand.u32 2147483647, %v362_v16  ;;  %v799_v30 = vrot.slane %v382_v29, %v1718_v5  ;;  %v792_v31 = vrot.slane %v382_v29, %v1699_v2 }
  0x14   : > { %v813_v32 = vrot.slane %v382_v29, %v1715_v4  ;;  %v806_v33 = vrot.slane %v382_v29, %v1702_v3  ;;  %v827_v37 = vrot.slane %v382_v29, %v1748_v14  ;;  %v820_v38 = vrot.slane %v382_v29, %v1751_v15  ;;  %v1778_v50 = vld [vmem:[%s333_s21] sm:$0xff]  ;;  %v1783_v54 = vld [vmem:[%s333_s21 + $0x8] sm:$0xff] }
  0x15   : > { %v367_v23 = vsub.f32 0.0, %v365_v17  ;;  %v368_v24 = vsub.f32 0.0, %v366_v18  ;;  %v841_v40 = vrot.slane %v382_v29, %v1755_v19  ;;  %v834_v41 = vrot.slane %v382_v29, %v1758_v20  ;;  %v1796_v6 = vld [vmem:[%s2129_s5] sm:$0xf] }
  0x16   : > { %v363_v45 = vmax.f32 %v1743_v11, 0.0  ;;  %v364_v47 = vmax.f32 %v362_v16, 0.0 }
  0x17   : > { %759 = vbcast.lane.b32.xlu1 %v757_v12, 256  ;;  %745 = vbcast.lane.b32.xlu0 %v743_v13, 256  ;;  %v369_v25 = vmul.f32 1.442695, %v367_v23  ;;  %v371_v26 = vmul.f32 1.442695, %v368_v24 }
  0x19   : > { %1573 = vpow2.f32 %v369_v25 }
  0x1a   : > { %1575 = vpow2.f32 %v371_v26 }
  0x1b   : > { %773 = vbcast.lane.b32.xlu1 %v771_v21, 256  ;;  %766 = vbcast.lane.b32.xlu0 %v764_v22, 256 }
  0x1f   : > { %787 = vbcast.lane.b32.xlu1 %v785_v27, 256  ;;  %780 = vbcast.lane.b32.xlu0 %v778_v28, 256 }
  0x23   : > { %801 = vbcast.lane.b32.xlu1 %v799_v30, 256  ;;  %794 = vbcast.lane.b32.xlu0 %v792_v31, 256  ;;  %v1574_v34 = vpop.eup %1573 }
  0x24   : > { %v1576_v35 = vpop.eup %1575  ;;  %v373_v36 = vadd.f32 1.0, %v1574_v34 }
  0x25   : > { %v374_v39 = vadd.f32 1.0, %v1576_v35 }
  0x26   : > { %1577 = vlog2.f32 %v373_v36 }
  0x27   : > { %815 = vbcast.lane.b32.xlu1 %v813_v32, 256  ;;  %808 = vbcast.lane.b32.xlu0 %v806_v33, 256  ;;  %1579 = vlog2.f32 %v374_v39 }
  0x2b   : > { %829 = vbcast.lane.b32.xlu1 %v827_v37, 256  ;;  %822 = vbcast.lane.b32.xlu0 %v820_v38, 256 }
  0x2f   : > { %843 = vbcast.lane.b32.xlu1 %v841_v40, 256  ;;  %836 = vbcast.lane.b32.xlu0 %v834_v41, 256 }
  0x30   : > { %v1578_v46 = vpop.eup %1577 }
  0x31   : > { %v1580_v48 = vpop.eup %1579  ;;  %v376_v49 = vmul.f32 0.6931472, %v1578_v46 }
  0x32   : > { %v378_v51 = vmul.f32 0.6931472, %v1580_v48 }
  0x33   : > { %v379_v53 = vadd.f32 %v376_v49, %v363_v45 }
  0x34   : > { %v380_v55 = vadd.f32 %v378_v51, %v364_v47 }
  0x35   : > { %v388_v56 = vcombine.high %v379_v53, %v379_v53  ;;  %v395_v57 = vrot.slane %v379_v53, %v1781_v52  ;;  %v631_v58 = vmul.f32 %v379_v53, %v1778_v50 }
  0x36   : > { %v1788_v59 = vmul.f32 %v380_v55, %v1783_v54  ;;  %v437_v1 = vcombine.high %v380_v55, %v380_v55  ;;  %v444_v18 = vrot.slane %v380_v55, %v1781_v52 }
  0x37   : > { %v402_v60 = vrot.slane %v388_v56, %v1781_v52  ;;  %v403_v61 = vcombine.high %v395_v57, %v395_v57  ;;  %v411_v62 = vrot.slane %v395_v57, %v1781_v52  ;;  %v642_v63 = vrot.slane %v631_v58, %v1781_v52 }
  0x38   : > { %v635_v0 = vcombine.high %v631_v58, %v631_v58  ;;  %v451_v43 = vrot.slane %v437_v1, %v1781_v52  ;;  %v452_v49 = vcombine.high %v444_v18, %v444_v18  ;;  %v460_v58 = vrot.slane %v444_v18, %v1781_v52 }
  0x39   : > { %v404_v9 = vcombine.high %v402_v60, %v402_v60  ;;  %v418_v10 = vrot.slane %v402_v60, %v1781_v52  ;;  %v425_v11 = vrot.slane %v403_v61, %v1781_v52  ;;  %v433_v12 = vcombine.high %v411_v62, %v411_v62 }
  0x3a   : > { %v489_v13 = vrot.slane %v411_v62, %v1699_v2  ;;  %v1802_v16 = vrot.slane %v642_v63, %v1781_v52  ;;  %v649_v17 = vrot.slane %v635_v0, %v1781_v52  ;;  %v650_v28 = vcombine.high %v642_v63, %v642_v63 }
  0x3b   : > { %v432_v21 = vrot.slane %v404_v9, %v1781_v52  ;;  %v434_v22 = vcombine.high %v418_v10, %v418_v10  ;;  %v435_v23 = vcombine.high %v425_v11, %v425_v11  ;;  %v493_v24 = vrot.slane %v425_v11, %v1699_v2 }
  0x3c   : > { %v497_v25 = vrot.slane %v433_v12, %v1699_v2  ;;  %v505_v26 = vrot.slane %v418_v10, %v1699_v2  ;;  %v566_v27 = vmul.f32 %v489_v13, %v1796_v6  ;;  %v1824_v48 = vrot.slane %v650_v28, %v1781_v52 }
  0x3d   : > { %v436_v29 = vcombine.high %v432_v21, %v432_v21  ;;  %v501_v30 = vrot.slane %v435_v23, %v1699_v2  ;;  %v509_v31 = vrot.slane %v432_v21, %v1699_v2  ;;  %v513_v32 = vrot.slane %v434_v22, %v1699_v2 }
  0x3e   : > { %v567_v33 = vmul.f32 %v493_v24, %v1796_v6  ;;  %v568_v34 = vmul.f32 %v497_v25, %v1796_v6  ;;  %v570_v35 = vmul.f32 %v505_v26, %v1796_v6  ;;  %v582_v36 = vmul.f32 1.442695, %v566_v27 }
  0x3f   : > { %v517_v37 = vrot.slane %v436_v29, %v1699_v2  ;;  %v569_v38 = vmul.f32 %v501_v30, %v1796_v6  ;;  %v571_v39 = vmul.f32 %v509_v31, %v1796_v6  ;;  %v572_v40 = vmul.f32 %v513_v32, %v1796_v6 }
  0x40   : > { %1581 = vpow2.f32 %v582_v36  ;;  %v584_v41 = vmul.f32 1.442695, %v567_v33  ;;  %v586_v42 = vmul.f32 1.442695, %v568_v34  ;;  %v590_v46 = vmul.f32 1.442695, %v570_v35 }
  0x41   : > { %v573_v44 = vmul.f32 %v517_v37, %v1796_v6  ;;  %v588_v45 = vmul.f32 1.442695, %v569_v38  ;;  %v592_v47 = vmul.f32 1.442695, %v571_v39  ;;  %v594_v51 = vmul.f32 1.442695, %v572_v40 }
  0x42   : > { %1583 = vpow2.f32 %v584_v41  ;;  %v651_v53 = vcombine.high %v649_v17, %v649_v17  ;;  %v1827_v55 = vrot.slane %v649_v17, %v1781_v52  ;;  %v453_v57 = vcombine.high %v451_v43, %v451_v43 }
  0x43   : > { %1585 = vpow2.f32 %v586_v42  ;;  %v596_v56 = vmul.f32 1.442695, %v573_v44  ;;  %v467_v61 = vrot.slane %v451_v43, %v1781_v52  ;;  %v474_v62 = vrot.slane %v452_v49, %v1781_v52 }
  0x44   : > { %1587 = vpow2.f32 %v588_v45  ;;  %v1831_v60 = vrot.slane %v651_v53, %v1781_v52  ;;  %v481_v63 = vrot.slane %v453_v57, %v1781_v52  ;;  %v482_v0 = vcombine.high %v460_v58, %v460_v58 }
  0x45   : > { %1589 = vpow2.f32 %v590_v46  ;;  %v483_v1 = vcombine.high %v467_v61, %v467_v61  ;;  %v484_v9 = vcombine.high %v474_v62, %v474_v62  ;;  %v521_v10 = vrot.slane %v460_v58, %v1699_v2 }
  0x46   : > { %1591 = vpow2.f32 %v592_v47  ;;  %v525_v11 = vrot.slane %v474_v62, %v1699_v2  ;;  %v485_v13 = vcombine.high %v481_v63, %v481_v63  ;;  %v529_v17 = vrot.slane %v482_v0, %v1699_v2 }
  0x47   : > { %1593 = vpow2.f32 %v594_v51  ;;  %v537_v18 = vrot.slane %v467_v61, %v1699_v2  ;;  %v541_v21 = vrot.slane %v481_v63, %v1699_v2  ;;  %v533_v22 = vrot.slane %v484_v9, %v1699_v2 }
  0x48   : > { %1595 = vpow2.f32 %v596_v56  ;;  %v545_v23 = vrot.slane %v483_v1, %v1699_v2  ;;  %v574_v24 = vmul.f32 %v521_v10, %v1796_v6  ;;  %v575_v25 = vmul.f32 %v525_v11, %v1796_v6 }
  0x49   : > { %v549_v27 = vrot.slane %v485_v13, %v1699_v2  ;;  %v576_v28 = vmul.f32 %v529_v17, %v1796_v6  ;;  %v578_v29 = vmul.f32 %v537_v18, %v1796_v6  ;;  %v579_v30 = vmul.f32 %v541_v21, %v1796_v6 }
  0x4a   : > { %v1582_v12 = vpop.eup %1581  ;;  %v577_v32 = vmul.f32 %v533_v22, %v1796_v6  ;;  %v580_v33 = vmul.f32 %v545_v23, %v1796_v6  ;;  %v598_v34 = vmul.f32 1.442695, %v574_v24  ;;  %v600_v35 = vmul.f32 1.442695, %v575_v25 }
  0x4b   : > { %615 = vst.msk [vmem:[#allocation2] sm:$0xf] %vm614_vm0, %v1582_v12  ;;  %v581_v37 = vmul.f32 %v549_v27, %v1796_v6  ;;  %v602_v38 = vmul.f32 1.442695, %v576_v28  ;;  %v606_v41 = vmul.f32 1.442695, %v578_v29  ;;  %v691_v42 = vrot.slane %v1788_v59, %v1781_v52 }
  0x4c   : > { %v1584_v26 = vpop.eup %1583  ;;  %1597 = vpow2.f32 %v598_v34  ;;  %v604_v40 = vmul.f32 1.442695, %v577_v32  ;;  %v608_v44 = vmul.f32 1.442695, %v579_v30  ;;  %v684_v45 = vcombine.high %v1788_v59, %v1788_v59 }
  0x4d   : > { %v1586_v31 = vpop.eup %1585  ;;  %616 = vst.msk [vmem:[#allocation2 + $0x4] sm:$0xf] %vm614_vm0, %v1584_v26  ;;  %1599 = vpow2.f32 %v600_v35  ;;  %v610_v6 = vmul.f32 1.442695, %v580_v33  ;;  %v699_v47 = vcombine.high %v691_v42, %v691_v42  ;;  %v1863_v49 = vrot.slane %v691_v42, %v1781_v52 }
  0x4e   : > { %v1588_v36 = vpop.eup %1587  ;;  %617 = vst.msk [vmem:[#allocation2 + $0x8] sm:$0xf] %vm614_vm0, %v1586_v31  ;;  %1601 = vpow2.f32 %v602_v38  ;;  %v612_v53 = vmul.f32 1.442695, %v581_v37  ;;  %v698_v56 = vrot.slane %v684_v45, %v1781_v52  ;;  %v680_v12 = vcombine.high %v1802_v16, %v1802_v16 }
  0x4f   : > { %v1590_v39 = vpop.eup %1589  ;;  %618 = vst.msk [vmem:[#allocation2 + $0xc] sm:$0xf] %vm614_vm0, %v1588_v36  ;;  %1603 = vpow2.f32 %v604_v40  ;;  %v1869_v59 = vrot.slane %v699_v47, %v1781_v52  ;;  %v848_v17 = vrot.slane %v1802_v16, %v1699_v2  ;;  %v682_v18 = vcombine.high %v1824_v48, %v1824_v48 }
  0x50   : > { %v1592_v43 = vpop.eup %1591  ;;  %619 = vst.msk [vmem:[#allocation2 + $0x10] sm:$0xf] %vm614_vm0, %v1590_v39  ;;  %1605 = vpow2.f32 %v606_v41  ;;  %v700_v57 = vcombine.high %v698_v56, %v698_v56  ;;  %v1872_v58 = vrot.slane %v698_v56, %v1781_v52  ;;  %v856_v13 = vrot.slane %v680_v12, %v1699_v2 }
  0x51   : > { %v1594_v46 = vpop.eup %1593  ;;  %620 = vst.msk [vmem:[#allocation2 + $0x14] sm:$0xf] %vm614_vm0, %v1592_v43  ;;  %1607 = vpow2.f32 %v608_v44  ;;  %v860_v25 = vrot.slane %v682_v18, %v1699_v2  ;;  %v852_v26 = vrot.slane %v1824_v48, %v1699_v2  ;;  %v864_v16 = vrot.slane %v1827_v55, %v1699_v2 }
  0x52   : > { %v1596_v51 = vpop.eup %1595  ;;  %621 = vst.msk [vmem:[#allocation2 + $0x18] sm:$0xf] %vm614_vm0, %v1594_v46  ;;  %1609 = vpow2.f32 %v610_v6  ;;  %v1875_v61 = vrot.slane %v700_v57, %v1781_v52  ;;  %v681_v29 = vcombine.high %v1827_v55, %v1827_v55  ;;  %v868_v32 = vrot.slane %v1831_v60, %v1699_v2 }
  0x53   : > { %622 = vst.msk [vmem:[#allocation2 + $0x1c] sm:$0xf] %vm614_vm0, %v1596_v51  ;;  %1611 = vpow2.f32 %v612_v53  ;;  %v683_v48 = vcombine.high %v1831_v60, %v1831_v60  ;;  %v880_v60 = vrot.slane %v1863_v49, %v1699_v2  ;;  %v729_v40 = vcombine.high %v1863_v49, %v1863_v49 }
  0x54   : > { %v872_v55 = vrot.slane %v681_v29, %v1699_v2  ;;  %v884_v43 = vrot.slane %v1869_v59, %v1699_v2  ;;  %v731_v44 = vcombine.high %v1869_v59, %v1869_v59  ;;  %v896_v59 = vrot.slane %v1872_v58, %v1699_v2 }
  0x55   : > { %v876_v37 = vrot.slane %v683_v48, %v1699_v2  ;;  %v888_v49 = vrot.slane %v729_v40, %v1699_v2  ;;  %v730_v57 = vcombine.high %v1872_v58, %v1872_v58 }
  0x56   : > { %v1598_v62 = vpop.eup %1597  ;;  %v892_v51 = vrot.slane %v731_v44, %v1699_v2 }
  0x57   : > { %v1600_v63 = vpop.eup %1599  ;;  %623 = vst.msk [vmem:[#allocation2 + $0x20] sm:$0xf] %vm614_vm0, %v1598_v62  ;;  %v904_v58 = vrot.slane %v730_v57, %v1699_v2 }
  0x58   : > { %v1602_v0 = vpop.eup %1601  ;;  %624 = vst.msk [vmem:[#allocation2 + $0x24] sm:$0xf] %vm614_vm0, %v1600_v63 }
  0x59   : > { %v1604_v1 = vpop.eup %1603  ;;  %625 = vst.msk [vmem:[#allocation2 + $0x28] sm:$0xf] %vm614_vm0, %v1602_v0  ;;  %v900_v0 = vrot.slane %v1875_v61, %v1699_v2 }
  0x5a   : > { %v1606_v9 = vpop.eup %1605  ;;  %626 = vst.msk [vmem:[#allocation2 + $0x2c] sm:$0xf] %vm614_vm0, %v1604_v1  ;;  %v732_v1 = vcombine.high %v1875_v61, %v1875_v61 }
  0x5b   : > { %v1608_v10 = vpop.eup %1607  ;;  %627 = vst.msk [vmem:[#allocation2 + $0x30] sm:$0xf] %vm614_vm0, %v1606_v9 }
  0x5c   : > { %v1610_v11 = vpop.eup %1609  ;;  %628 = vst.msk [vmem:[#allocation2 + $0x34] sm:$0xf] %vm614_vm0, %v1608_v10  ;;  %v908_v12 = vrot.slane %v732_v1, %v1699_v2 }
  0x5d   : > { %v1612_v52 = vpop.eup %1611  ;;  %629 = vst.msk [vmem:[#allocation2 + $0x38] sm:$0xf] %vm614_vm0, %v1610_v11 }
  0x5e   : > { %630 = vst.msk [vmem:[#allocation2 + $0x3c] sm:$0xf] %vm614_vm0, %v1612_v52 }
  0x85   : > { %v753_v21 = vpop.permute.xlu1 %752  ;;  %v739_v22 = vpop.permute.xlu0 %738 }
  0x86   : > { %v927_v23 = vmul.f32 %v856_v13, %v753_v21  ;;  %v925_v24 = vmul.f32 %v848_v17, %v739_v22  ;;  %v1637_v21 = vmov 0.0  }
  0x88   : > { %943 = vst.msk [vmem:[#allocation3 + $0x8] sm:$0xf] %vm614_vm0, %v927_v23  ;;  %941 = vst.msk [vmem:[#allocation3] sm:$0xf] %vm614_vm0, %v925_v24 }
  0x89   : > { %v760_v27 = vpop.permute.xlu1 %759  ;;  %v746_v28 = vpop.permute.xlu0 %745 }
  0x8a   : > { %v928_v30 = vmul.f32 %v860_v25, %v760_v27  ;;  %v926_v31 = vmul.f32 %v852_v26, %v746_v28 }
  0x8c   : > { %944 = vst.msk [vmem:[#allocation3 + $0xc] sm:$0xf] %vm614_vm0, %v928_v30  ;;  %942 = vst.msk [vmem:[#allocation3 + $0x4] sm:$0xf] %vm614_vm0, %v926_v31 }
  0x8d   : > { %v774_v33 = vpop.permute.xlu1 %773  ;;  %v767_v34 = vpop.permute.xlu0 %766 }
  0x8e   : > { %v930_v35 = vmul.f32 %v868_v32, %v774_v33  ;;  %v929_v36 = vmul.f32 %v864_v16, %v767_v34 }
  0x90   : > { %946 = vst.msk [vmem:[#allocation3 + $0x14] sm:$0xf] %vm614_vm0, %v930_v35  ;;  %945 = vst.msk [vmem:[#allocation3 + $0x10] sm:$0xf] %vm614_vm0, %v929_v36 }
  0x91   : > { %v788_v38 = vpop.permute.xlu1 %787  ;;  %v781_v39 = vpop.permute.xlu0 %780 }
  0x92   : > { %v932_v41 = vmul.f32 %v876_v37, %v788_v38  ;;  %v931_v42 = vmul.f32 %v872_v55, %v781_v39 }
  0x94   : > { %948 = vst.msk [vmem:[#allocation3 + $0x1c] sm:$0xf] %vm614_vm0, %v932_v41  ;;  %947 = vst.msk [vmem:[#allocation3 + $0x18] sm:$0xf] %vm614_vm0, %v931_v42 }
  0x95   : > { %v802_v45 = vpop.permute.xlu1 %801  ;;  %v795_v46 = vpop.permute.xlu0 %794 }
  0x96   : > { %v934_v6 = vmul.f32 %v884_v43, %v802_v45  ;;  %v933_v47 = vmul.f32 %v880_v60, %v795_v46 }
  0x98   : > { %950 = vst.msk [vmem:[#allocation3 + $0x24] sm:$0xf] %vm614_vm0, %v934_v6  ;;  %949 = vst.msk [vmem:[#allocation3 + $0x20] sm:$0xf] %vm614_vm0, %v933_v47 }
  0x99   : > { %v816_v53 = vpop.permute.xlu1 %815  ;;  %v809_v56 = vpop.permute.xlu0 %808 }
  0x9a   : > { %v936_v62 = vmul.f32 %v892_v51, %v816_v53  ;;  %v935_v63 = vmul.f32 %v888_v49, %v809_v56 }
  0x9c   : > { %952 = vst.msk [vmem:[#allocation3 + $0x2c] sm:$0xf] %vm614_vm0, %v936_v62  ;;  %951 = vst.msk [vmem:[#allocation3 + $0x28] sm:$0xf] %vm614_vm0, %v935_v63 }
  0x9d   : > { %v830_v9 = vpop.permute.xlu1 %829  ;;  %v823_v10 = vpop.permute.xlu0 %822 }
  0x9e   : > { %v938_v11 = vmul.f32 %v900_v0, %v830_v9  ;;  %v937_v52 = vmul.f32 %v896_v59, %v823_v10 }
  0xa0   : > { %954 = vst.msk [vmem:[#allocation3 + $0x34] sm:$0xf] %vm614_vm0, %v938_v11  ;;  %953 = vst.msk [vmem:[#allocation3 + $0x30] sm:$0xf] %vm614_vm0, %v937_v52 }
  0xa1   : > { %v844_v13 = vpop.permute.xlu1 %843  ;;  %v837_v17 = vpop.permute.xlu0 %836 }
  0xa2   : > { %v940_v18 = vmul.f32 %v908_v12, %v844_v13  ;;  %v939_v61 = vmul.f32 %v904_v58, %v837_v17 }
  0xa4   : > { %956 = vst.msk [vmem:[#allocation3 + $0x3c] sm:$0xf] %vm614_vm0, %v940_v18  ;;  %955 = vst.msk [vmem:[#allocation3 + $0x38] sm:$0xf] %vm614_vm0, %v939_v61 }
  0xa5 LB: >> { %s1538_s26 = sshll.u32 %s1643_s25, 2  ;;  %s962_s25 = sadd.s32 1, %s1643_s25   ;;  %s1643_s25 = sphi %s1641_s25, %s962_s25   ;;  %v1639_v21 = vphi %v1637_v21, %v970_v21  }
  0xa6   : >> { %s965_s27 = scalar_lea.vmem [#allocation2], %s1538_s26  ;;  %s968_s28 = scalar_lea.vmem [#allocation3], %s1538_s26 }
  0xa7   : >> { %v966_v22 = vld [vmem:[%s965_s27] sm:$0xf]  ;;  %s971_s29 = scalar_lea.vmem [#allocation4], %s1538_s26  ;;  %p959_p4 = scmp.ge.s32.totalorder %s962_s25, 16  }
  0xa8   : >> { %v967_v24 = vmul.f32 %v1639_v21, %v966_v22  ;;  %v1006_v25 = vrot.slane (%p959_p4), %v1733_v7, %v1702_v3  ;;  %v999_v26 = vrot.slane (%p959_p4), %v1733_v7, %v1718_v5  ;;  %v1062_v27 = vrot.slane (%p959_p4), %v1735_v8, %v1702_v3  ;;  %v1286_v34 = vld [vmem:[%s1724_s12] sm:$0xff] (%p959_p4)  ;;  %v1976_v35 = vld [vmem:[%s1724_s12 + $0x8] sm:$0xff] (%p959_p4) }
  0xa9   : > { %961 = sbr.rel (!%p959_p4) target bundleno = 165 (0xa5), region = 100  ;;  %v1055_v28 = vrot.slane (%p959_p4), %v1735_v8, %v1718_v5  ;;  %v1013_v16 = vrot.slane (%p959_p4), %v1733_v7, %v1715_v4  ;;  %v992_v29 = vrot.slane (%p959_p4), %v1733_v7, %v1699_v2  ;;  %v1069_v30 = vrot.slane (%p959_p4), %v1735_v8, %v1715_v4 }
  0xaa   : > { %1008 = vbcast.lane.b32.xlu1 (%p959_p4), %v1006_v25, 256  ;;  %1001 = vbcast.lane.b32.xlu0 (%p959_p4), %v999_v26, 256  ;;  %v1048_v31 = vrot.slane (%p959_p4), %v1735_v8, %v1699_v2  ;;  %v1076_v3 = vrot.slane (%p959_p4), %v1735_v8, %v1751_v15  ;;  %v1020_v5 = vrot.slane (%p959_p4), %v1733_v7, %v1751_v15  ;;  %v1289_v37 = vsub.f32 (%p959_p4), 0.0, %v1976_v35 }
  0xab   : >> { %v969_v23 = vld [vmem:[%s968_s28] sm:$0xf]  ;;  %v1083_v32 = vrot.slane (%p959_p4), %v1735_v8, %v1748_v14  ;;  %v1027_v4 = vrot.slane (%p959_p4), %v1733_v7, %v1748_v14  ;;  %v1090_v2 = vrot.slane (%p959_p4), %v1735_v8, %v1758_v20  ;;  %v1034_v48 = vrot.slane (%p959_p4), %v1733_v7, %v1758_v20 }
  0xac   : >> { %v970_v21 = vadd.f32 %v969_v23, %v967_v24   ;;  %v1097_v15 = vrot.slane (%p959_p4), %v1735_v8, %v1755_v19  ;;  %v1041_v33 = vrot.slane (%p959_p4), %v1733_v7, %v1755_v19  ;;  %v1288_v14 = vsub.f32 (%p959_p4), 0.0, %v1286_v34  ;;  %v1539_v7 = vld [vmem:[%s2130_s6] ss:$0 sm:$0xff] (%p959_p4) }
  0xad   : > { %v1292_v55 = vmul.f32 (%p959_p4), 1.442695, %v1289_v37  ;;  %v1983_v42 = vmul.f32 (%p959_p4), %v1539_v7, %v1778_v50  ;;  %v1986_v45 = vmul.f32 (%p959_p4), %v1539_v7, %v1783_v54  ;;  %vm1365_vm1 = vcmask (%p959_p4), 1041409  }
  0xae   : >> { %972 = vst.msk [vmem:[%s971_s29] sm:$0xf] %vm614_vm0, %v970_v21  ;;  %1064 = vbcast.lane.b32.xlu1 (%p959_p4), %v1062_v27, 256  ;;  %1057 = vbcast.lane.b32.xlu0 (%p959_p4), %v1055_v28, 256  ;;  %v1290_v36 = vmul.f32 (%p959_p4), 1.442695, %v1288_v14 }
  0xaf   : > { %v1241_v50 = vrot.slane (%p959_p4), %v1983_v42, 2  ;;  %v1240_v62 = vrot.slane (%p959_p4), %v1983_v42, 1  ;;  %v1248_v9 = vrot.slane (%p959_p4), %v1986_v45, 2  ;;  %v1247_v10 = vrot.slane (%p959_p4), %v1986_v45, 1 }
  0xb0   : > { %1613 = vpow2.f32 %v1290_v36  ;;  %v1242_v13 = vrot.slane %v1983_v42, 3  ;;  %v1249_v17 = vrot.slane %v1986_v45, 3  ;;  %v1250_v27 = vrot.slane %v1986_v45, 4 }
  0xb1   : > { %1615 = vpow2.f32 %v1292_v55  ;;  %v1243_v28 = vrot.slane %v1983_v42, 4  ;;  %vm1368_vm2 = vcmask 1042434   ;;  %vm1371_vm3 = vcmask 1043459  }
  0xb2   : > { %1015 = vbcast.lane.b32.xlu1 %v1013_v16, 256  ;;  %994 = vbcast.lane.b32.xlu0 %v992_v29, 256  ;;  %vm1374_vm4 = vcmask 1044484   ;;  %vm1377_vm5 = vcmask 1045509   ;;  %vm1380_vm6 = vcmask 1046534   ;;  %vm1383_vm7 = vcmask 1047559  }
  0xb3   : > { %vm1401_vm8 = vcmask 523264  }
  0xb5   : > { %v975_v19 = vld [vmem:[#allocation4 + $0x8] sm:$0xf]  ;;  %v974_v60 = vld [vmem:[#allocation4 + $0x4] sm:$0xf]  ;;  %v976_v11 = vld [vmem:[#allocation4 + $0xc] sm:$0xf] }
  0xb6   : > { %1071 = vbcast.lane.b32.xlu1 %v1069_v30, 256  ;;  %1050 = vbcast.lane.b32.xlu0 %v1048_v31, 256  ;;  %v983_v46 = vld [vmem:[#allocation4 + $0x28] sm:$0xf]  ;;  %v982_v6 = vld [vmem:[#allocation4 + $0x24] sm:$0xf] }
  0xb7   : > { %v973_v52 = vld [vmem:[#allocation4] sm:$0xf]  ;;  %v984_v31 = vld [vmem:[#allocation4 + $0x2c] sm:$0xf] }
  0xba   : > { %1078 = vbcast.lane.b32.xlu1 %v1076_v3, 256  ;;  %1022 = vbcast.lane.b32.xlu0 %v1020_v5, 256  ;;  %v1614_v20 = vpop.eup %1613  ;;  %v981_v3 = vld [vmem:[#allocation4 + $0x20] sm:$0xf]  ;;  %v1251_v5 = vrot.slane %v1986_v45, 5 }
  0xbb   : > { %v1294_v38 = vadd.f32 1.0, %v1614_v20  ;;  %v1616_v39 = vpop.eup %1615 }
  0xbc   : > { %v1295_v8 = vadd.f32 1.0, %v1616_v39 }
  0xbd   : > { %1617 = vrcp.f32 %v1294_v38 }
  0xbe   : > { %1085 = vbcast.lane.b32.xlu1 %v1083_v32, 256  ;;  %1029 = vbcast.lane.b32.xlu0 %v1027_v4, 256  ;;  %1619 = vrcp.f32 %v1295_v8 }
  0xc2   : > { %1092 = vbcast.lane.b32.xlu1 %v1090_v2, 256  ;;  %1036 = vbcast.lane.b32.xlu0 %v1034_v48, 256 }
  0xc6   : > { %1099 = vbcast.lane.b32.xlu1 %v1097_v15, 256  ;;  %1043 = vbcast.lane.b32.xlu0 %v1041_v33, 256  ;;  %v1244_v15 = vrot.slane %v1983_v42, 5 }
  0xc7   : > { %v1618_v57 = vpop.eup %1617 }
  0xc8   : > { %v1998_v18 = vmul.f32 %v1618_v57, %v1286_v34  ;;  %v1620_v32 = vpop.eup %1619 }
  0xca   : > { %v1303_v33 = vrot.slane %v1998_v18, 2  ;;  %v1302_v34 = vrot.slane %v1998_v18, 1 }
 0x11c   : > { %v1009_v40 = vpop.permute.xlu1 %1008  ;;  %v1002_v41 = vpop.permute.xlu0 %1001 }
 0x11d   : > { %v1103_v43 = vmul.f32 %v1009_v40, %v975_v19  ;;  %v1102_v44 = vmul.f32 %v1002_v41, %v974_v60  ;;  %v2009_v19 = vmul.f32 %v1620_v32, %v1976_v35  ;;  %v1304_v40 = vrot.slane %v1998_v18, 3 }
 0x11f   : > { %v1131_v47 = vsel %vm614_vm0, %v1103_v43, 0.0  ;;  %v1124_v51 = vsel %vm614_vm0, %v1102_v44, 0.0 }
 0x120   : > { %v1132_v49 = vrot.slane %v1131_v47, 4  ;;  %v1125_v53 = vrot.slane %v1124_v51, 4  ;;  %v1065_v56 = vpop.permute.xlu1 %1064  ;;  %v1058_v59 = vpop.permute.xlu0 %1057 }
 0x121   : > { %v1111_v63 = vmul.f32 %v1065_v56, %v983_v46  ;;  %v1110_v0 = vmul.f32 %v1058_v59, %v982_v6  ;;  %v1252_v56 = vrot.slane %v1986_v45, 6 }
 0x122   : > { %v1133_v1 = vadd.f32 %v1132_v49, %v1131_v47  ;;  %v1126_v54 = vadd.f32 %v1125_v53, %v1124_v51  ;;  %v1305_v51 = vrot.slane %v1998_v18, 4  ;;  %v1306_v53 = vrot.slane %v1998_v18, 5 }
 0x123   : > { %v1187_v12 = vsel %vm614_vm0, %v1111_v63, 0.0  ;;  %v1180_v58 = vsel %vm614_vm0, %v1110_v0, 0.0  ;;  %v1310_v0 = vrot.slane %v2009_v19, 2 }
 0x124   : > { %v1127_v61 = vrot.slane %v1126_v54, 2  ;;  %v1188_v21 = vrot.slane %v1187_v12, 4  ;;  %v1181_v22 = vrot.slane %v1180_v58, 4  ;;  %v1016_v23 = vpop.permute.xlu1 %1015  ;;  %v995_v24 = vpop.permute.xlu0 %994  ;;  %v1134_v16 = vrot.slane %v1133_v1, 2 }
 0x125   : > { %v1104_v25 = vmul.f32 %v1016_v23, %v976_v11  ;;  %v1101_v26 = vmul.f32 %v995_v24, %v973_v52  ;;  %v1245_v11 = vrot.slane %v1983_v42, 6  ;;  %v1312_v24 = vrot.slane %v2009_v19, 4 }
 0x126   : > { %v1189_v29 = vadd.f32 %v1188_v21, %v1187_v12  ;;  %v1182_v30 = vadd.f32 %v1181_v22, %v1180_v58  ;;  %v1128_v4 = vadd.f32 %v1127_v61, %v1126_v54  ;;  %v1135_v7 = vadd.f32 %v1134_v16, %v1133_v1  ;;  %v985_v21 = vld [vmem:[#allocation4 + $0x30] sm:$0xf] }
 0x127   : > { %v1138_v2 = vsel %vm614_vm0, %v1104_v25, 0.0  ;;  %v1117_v48 = vsel %vm614_vm0, %v1101_v26, 0.0  ;;  %v1309_v1 = vrot.slane %v2009_v19, 1  ;;  %v1311_v54 = vrot.slane %v2009_v19, 3  ;;  %v977_v22 = vld [vmem:[#allocation4 + $0x10] sm:$0xf] }
 0x128   : > { %v1190_v14 = vrot.slane %v1189_v29, 2  ;;  %v1183_v36 = vrot.slane %v1182_v30, 2  ;;  %v1072_v37 = vpop.permute.xlu1 %1071  ;;  %v1051_v55 = vpop.permute.xlu0 %1050  ;;  %v1139_v20 = vrot.slane %v1138_v2, 4  ;;  %v1118_v38 = vrot.slane %v1117_v48, 4 }
 0x129   : > { %v1112_v39 = vmul.f32 %v1072_v37, %v984_v31  ;;  %v1109_v8 = vmul.f32 %v1051_v55, %v981_v3  ;;  %v1129_v41 = vrot.slane %v1128_v4, 1  ;;  %v1136_v52 = vrot.slane %v1135_v7, 1 }
 0x12a   : > { %v1184_v60 = vadd.f32 %v1183_v36, %v1182_v30  ;;  %v1119_v43 = vadd.f32 %v1118_v38, %v1117_v48  ;;  %v1191_v6 = vadd.f32 %v1190_v14, %v1189_v29  ;;  %v1140_v59 = vadd.f32 %v1139_v20, %v1138_v2  ;;  %v986_v20 = vld [vmem:[#allocation4 + $0x34] sm:$0xf] }
 0x12b   : > { %v1194_v44 = vsel %vm614_vm0, %v1112_v39, 0.0  ;;  %v1173_v46 = vsel %vm614_vm0, %v1109_v8, 0.0  ;;  %v1130_v12 = vadd.f32 %v1129_v41, %v1128_v4  ;;  %v1313_v25 = vrot.slane %v2009_v19, 5  ;;  %v978_v38 = vld [vmem:[#allocation4 + $0x14] sm:$0xf] }
 0x12c   : > { %v1079_v47 = vpop.permute.xlu1 %1078  ;;  %v1023_v49 = vpop.permute.xlu0 %1022  ;;  %v1185_v35 = vrot.slane %v1184_v60, 1  ;;  %v1195_v57 = vrot.slane %v1194_v44, 4  ;;  %v1174_v63 = vrot.slane %v1173_v46, 4  ;;  %v1120_v58 = vrot.slane %v1119_v43, 2 }
 0x12d   : > { %v1192_v23 = vrot.slane %v1191_v6, 1  ;;  %v1314_v26 = vrot.slane %v2009_v19, 6  ;;  %v1141_v29 = vrot.slane %v1140_v59, 2  ;;  %v1113_v3 = vmul.f32 %v1079_v47, %v985_v21 }
 0x12e   : > { %v1175_v61 = vadd.f32 %v1174_v63, %v1173_v46  ;;  %v1186_v16 = vadd.f32 %v1185_v35, %v1184_v60  ;;  %v1196_v30 = vadd.f32 %v1195_v57, %v1194_v44  ;;  %v1105_v32 = vmul.f32 %v1023_v49, %v977_v22 }
 0x12f   : > { %v1307_v4 = vrot.slane %v1998_v18, 6  ;;  %v1253_v14 = vrot.slane %v1986_v45, 7  ;;  %v1137_v36 = vadd.f32 %v1136_v52, %v1135_v7  ;;  %v1271_v37 = vadd.f32 %v1240_v62, %v1130_v12 }
 0x130   : > { %v1176_v31 = vrot.slane %v1175_v61, 2  ;;  %v1086_v2 = vpop.permute.xlu1 %1085  ;;  %v1030_v48 = vpop.permute.xlu0 %1029  ;;  %v1121_v55 = vadd.f32 %v1120_v58, %v1119_v43  ;;  %v1246_v39 = vrot.slane %v1983_v42, 7  ;;  %v1193_v8 = vadd.f32 %v1192_v23, %v1191_v6 }
 0x131   : > { %v1201_v60 = vsel %vm614_vm0, %v1113_v3, 0.0  ;;  %v1145_v41 = vsel %vm614_vm0, %v1105_v32, 0.0  ;;  %v1315_v44 = vrot.slane %v2009_v19, 7  ;;  %v1279_v46 = vadd.f32 %v1247_v10, %v1186_v16 }
 0x132   : > { %v1142_v47 = vadd.f32 %v1141_v29, %v1140_v59  ;;  %v1197_v7 = vrot.slane %v1196_v30, 2  ;;  %v1177_v49 = vadd.f32 %v1176_v31, %v1175_v61  ;;  %v1202_v35 = vrot.slane %v1201_v60, 4 }
 0x133   : > { %v1146_v62 = vrot.slane %v1145_v41, 4  ;;  %v1114_v43 = vmul.f32 %v1086_v2, %v986_v20  ;;  %v1106_v57 = vmul.f32 %v1030_v48, %v978_v38  ;;  %v1272_v63 = vadd.f32 %v1241_v50, %v1137_v36  ;;  %v979_v48 = vld [vmem:[#allocation4 + $0x18] sm:$0xf] }
 0x134   : > { %v2038_v6 = vmul.f32 %v1302_v34, %v1271_v37  ;;  %v1122_v52 = vrot.slane %v1121_v55, 1  ;;  %v1203_v58 = vadd.f32 %v1202_v35, %v1201_v60  ;;  %v1093_v61 = vpop.permute.xlu1 %1092  ;;  %v1037_v22 = vpop.permute.xlu0 %1036  ;;  %v1280_v23 = vadd.f32 %v1248_v9, %v1193_v8  ;;  %v987_v34 = vld [vmem:[#allocation4 + $0x38] sm:$0xf]  ;;  %v988_v35 = vld [vmem:[#allocation4 + $0x3c] sm:$0xf] }
 0x135   : > { %v1147_v21 = vadd.f32 %v1146_v62, %v1145_v41  ;;  %v1208_v10 = vsel %vm614_vm0, %v1114_v43, 0.0  ;;  %v1152_v59 = vsel %vm614_vm0, %v1106_v57, 0.0  ;;  %v2045_v16 = vmul.f32 %v1309_v1, %v1279_v46 }
 0x136   : > { %v1143_v50 = vrot.slane %v1142_v47, 1  ;;  %v1198_v29 = vadd.f32 %v1197_v7, %v1196_v30  ;;  %v1178_v31 = vrot.slane %v1177_v49, 1  ;;  %v1204_v3 = vrot.slane %v1203_v58, 2 }
 0x137   : > { %v1148_v32 = vrot.slane %v1147_v21, 2  ;;  %v1209_v2 = vrot.slane %v1208_v10, 4  ;;  %v2049_v36 = vmul.f32 %v1303_v33, %v1272_v63  ;;  %v1364_v37 = vrot.slane %v2038_v6, 7 }
 0x138   : > { %v1123_v20 = vadd.f32 %v1122_v52, %v1121_v55  ;;  %v1153_v38 = vrot.slane %v1152_v59, 4  ;;  %v1205_v60 = vadd.f32 %v1204_v3, %v1203_v58  ;;  %v1115_v8 = vmul.f32 %v1093_v61, %v987_v34  ;;  %v1100_v63 = vpop.permute.xlu1 %1099  ;;  %v1044_v55 = vpop.permute.xlu0 %1043  ;;  %v980_v52 = vld [vmem:[#allocation4 + $0x1c] sm:$0xf] }
 0x139   : > { %v1149_v9 = vadd.f32 %v1148_v32, %v1147_v21  ;;  %v1210_v1 = vadd.f32 %v1209_v2, %v1208_v10  ;;  %v2054_v30 = vmul.f32 %v1310_v0, %v1280_v23  ;;  %v1144_v41 = vadd.f32 %v1143_v50, %v1142_v47 }
 0x13a   : > { %v1154_v46 = vadd.f32 %v1153_v38, %v1152_v59  ;;  %v1107_v7 = vmul.f32 %v1037_v22, %v979_v48  ;;  %v1385_v62 = vrot.slane %v2045_v16, 7  ;;  %v1199_v33 = vrot.slane %v1198_v29, 1 }
 0x13b   : > { %v1179_v43 = vadd.f32 %v1178_v31, %v1177_v49  ;;  %v1211_v57 = vrot.slane %v1210_v1, 2  ;;  %v1270_v58 = vadd.f32 %v1983_v42, %v1123_v20  ;;  %v1215_v10 = vsel %vm614_vm0, %v1115_v8, 0.0 }
 0x13c   : > { %v1155_v21 = vrot.slane %v1154_v46, 2  ;;  %v1159_v0 = vsel %vm614_vm0, %v1107_v7, 0.0  ;;  %v1206_v47 = vrot.slane %v1205_v60, 1  ;;  %v1150_v59 = vrot.slane %v1149_v9, 1 }
 0x13d   : > { %v1212_v61 = vadd.f32 %v1211_v57, %v1210_v1  ;;  %v1216_v22 = vrot.slane %v1215_v10, 4  ;;  %v1160_v16 = vrot.slane %v1159_v0, 4  ;;  %v1116_v50 = vmul.f32 %v1100_v63, %v988_v35 }
 0x13e   : > { %v1156_v23 = vadd.f32 %v1155_v21, %v1154_v46  ;;  %v1108_v49 = vmul.f32 %v1044_v55, %v980_v52  ;;  %v1200_v34 = vadd.f32 %v1199_v33, %v1198_v29  ;;  %v1278_v31 = vadd.f32 %v1986_v45, %v1179_v43 }
 0x13f   : > { %v1213_v3 = vrot.slane %v1212_v61, 1  ;;  %v1217_v32 = vadd.f32 %v1216_v22, %v1215_v10  ;;  %v1161_v48 = vadd.f32 %v1160_v16, %v1159_v0  ;;  %v1222_v20 = vsel %vm614_vm0, %v1116_v50, 0.0 }
 0x140   : > { %v1157_v2 = vrot.slane %v1156_v23, 1  ;;  %v1166_v38 = vsel %vm614_vm0, %v1108_v49, 0.0  ;;  %v1207_v8 = vadd.f32 %v1206_v47, %v1205_v60  ;;  %v1151_v7 = vadd.f32 %v1150_v59, %v1149_v9 }
 0x141   : > { %v1214_v12 = vadd.f32 %v1213_v3, %v1212_v61  ;;  %v1218_v1 = vrot.slane %v1217_v32, 2  ;;  %v1162_v57 = vrot.slane %v1161_v48, 2  ;;  %v1223_v35 = vrot.slane %v1222_v20, 4 }
 0x142   : > { %v1158_v46 = vadd.f32 %v1157_v2, %v1156_v23  ;;  %v1167_v63 = vrot.slane %v1166_v38, 4  ;;  %v1273_v29 = vadd.f32 %v1242_v13, %v1144_v41  ;;  %v1332_v33 = vmul.f32 %v1998_v18, %v1270_v58 }
 0x143   : > { %v1281_v43 = vadd.f32 %v1249_v17, %v1200_v34  ;;  %v1219_v55 = vadd.f32 %v1218_v1, %v1217_v32  ;;  %v1340_v52 = vmul.f32 %v2009_v19, %v1278_v31  ;;  %v1163_v60 = vadd.f32 %v1162_v57, %v1161_v48 }
 0x144   : > { %v1224_v9 = vadd.f32 %v1223_v35, %v1222_v20  ;;  %v1168_v21 = vadd.f32 %v1167_v63, %v1166_v38  ;;  %v1282_v10 = vadd.f32 %v1250_v27, %v1207_v8  ;;  %v1274_v0 = vadd.f32 %v1243_v28, %v1151_v7 }
 0x145   : > { %v1283_v13 = vadd.f32 %v1251_v5, %v1214_v12  ;;  %v1220_v41 = vrot.slane %v1219_v55, 1  ;;  %v1275_v17 = vadd.f32 %v1244_v15, %v1158_v46  ;;  %v1164_v58 = vrot.slane %v1163_v60, 1 }
 0x146   : > { %v1225_v47 = vrot.slane %v1224_v9, 2  ;;  %v1169_v59 = vrot.slane %v1168_v21, 2  ;;  %v1335_v61 = vmul.f32 %v1304_v40, %v1273_v29  ;;  %v1366_v27 = vsel %vm1365_vm1, %v1364_v37, %v1332_v33 }
 0x147   : > { %v1343_v28 = vmul.f32 %v1311_v54, %v1281_v43  ;;  %v1221_v22 = vadd.f32 %v1220_v41, %v1219_v55  ;;  %v1386_v5 = vsel %vm1365_vm1, %v1385_v62, %v1340_v52  ;;  %v1165_v12 = vadd.f32 %v1164_v58, %v1163_v60 }
 0x148   : > { %v1226_v23 = vadd.f32 %v1225_v47, %v1224_v9  ;;  %v1170_v16 = vadd.f32 %v1169_v59, %v1168_v21  ;;  %v1344_v15 = vmul.f32 %v1312_v24, %v1282_v10  ;;  %v1336_v50 = vmul.f32 %v1305_v51, %v1274_v0 }
 0x149   : > { %v1345_v40 = vmul.f32 %v1313_v25, %v1283_v13  ;;  %v1284_v6 = vadd.f32 %v1252_v56, %v1221_v22  ;;  %v1337_v54 = vmul.f32 %v1306_v53, %v1275_v17  ;;  %v1276_v37 = vadd.f32 %v1245_v11, %v1165_v12 }
 0x14a   : > { %v1227_v62 = vrot.slane %v1226_v23, 1  ;;  %v1171_v49 = vrot.slane %v1170_v16, 1  ;;  %v1367_v34 = vrot.slane %v2049_v36, 6  ;;  %v1387_v24 = vrot.slane %v2054_v30, 6 }
 0x14b   : > { %v1370_v31 = vrot.slane %v1335_v61, 5  ;;  %v1346_v51 = vmul.f32 %v1314_v26, %v1284_v6  ;;  %v1389_v25 = vrot.slane %v1343_v28, 5  ;;  %v1338_v56 = vmul.f32 %v1307_v4, %v1276_v37 }
 0x14c   : > { %v1228_v3 = vadd.f32 %v1227_v62, %v1226_v23  ;;  %v1172_v32 = vadd.f32 %v1171_v49, %v1170_v16  ;;  %v1369_v53 = vsel %vm1368_vm2, %v1367_v34, %v1366_v27  ;;  %v1388_v11 = vsel %vm1368_vm2, %v1387_v24, %v1386_v5 }
 0x14d   : > { %v1391_v2 = vrot.slane %v1344_v15, 4  ;;  %v1373_v48 = vrot.slane %v1336_v50, 4  ;;  %v1393_v20 = vrot.slane %v1345_v40, 3  ;;  %v1376_v36 = vrot.slane %v1337_v54, 3 }
 0x14e   : > { %v1285_v30 = vadd.f32 %v1253_v14, %v1228_v3  ;;  %v1277_v26 = vadd.f32 %v1246_v39, %v1172_v32  ;;  %v1395_v38 = vrot.slane %v1346_v51, 2  ;;  %v1379_v4 = vrot.slane %v1338_v56, 2 }
 0x14f   : > { %v1390_v8 = vsel %vm1371_vm3, %v1389_v25, %v1388_v11  ;;  %v1372_v7 = vsel %vm1371_vm3, %v1370_v31, %v1369_v53  ;;  %v2132_v46 = vrot.slane %v1998_v18, 7 }
 0x150   : > { %v1347_v1 = vmul.f32 %v1315_v44, %v1285_v30  ;;  %v1392_v14 = vsel %vm1374_vm4, %v1391_v2, %v1390_v8  ;;  %v1375_v42 = vsel %vm1374_vm4, %v1373_v48, %v1372_v7 }
 0x151   : > { %v1339_v45 = vmul.f32 %v2132_v46, %v1277_v26  ;;  %v1394_v39 = vsel %vm1377_vm5, %v1393_v20, %v1392_v14  ;;  %v1378_v57 = vsel %vm1377_vm5, %v1376_v36, %v1375_v42 }
 0x152   : > { %v1397_v35 = vrot.slane %v1347_v1, 1  ;;  %v1396_v29 = vsel %vm1380_vm6, %v1395_v38, %v1394_v39  ;;  %v1381_v33 = vsel %vm1380_vm6, %v1379_v4, %v1378_v57 }
 0x153   : > { %v1382_v63 = vrot.slane %v1339_v45, 1 }
 0x154   : > { %v1398_v19 = vsel %vm1383_vm7, %v1397_v35, %v1396_v29 }
 0x155   : > { %v1384_v43 = vsel %vm1383_vm7, %v1382_v63, %v1381_v33  ;;  %1403 = vst.msk [vmem:[%s1730_s15 + $0x8] sm:$0xff] %vm1401_vm8, %v1398_v19 }
 0x156   : > { %1402 = vst.msk [vmem:[%s1730_s15] sm:$0xff] %vm1401_vm8, %v1384_v43 }
 0x157 PF: > { %s17_s24 = sadd.s32 1, %s1635_s24  }
 0x158   : > { %p14_p5 = scmp.ge.s32.totalorder %s17_s24, 6  }
 0x15a   :  { %16 = sbr.rel (!%p14_p5) target bundleno = 1 (0x1), region = 111 }

</bundles_post_ra>
